<compile_context>
chip_gen: v6e
topology: v6e:2x2x1
jax: 0.10.0
libtpu: 0.0.40
codegen_flags: <defaults>
</compile_context>

<pallas_src>
import functools

import jax
import jax.numpy as jnp
from jax.experimental import pallas as pl
from jax.experimental.pallas import tpu as pltpu


# -----------------------------------------------------------------------------
# Fused Pallas kernel (whole model, one call)
# -----------------------------------------------------------------------------
def _fused_lstm_ner_kernel(ids_ref, mask_ref, emb_ref, w_in_ref, b_in_ref,
                           whh0_ref, wout0_ref, bout0_ref,
                           whh1_ref, wout1_ref, bout1_ref,
                           out_ref, gp_sc, y_sc,
                           *, seq_len, batch_pad, hidden):
    """Embedding + mask + 2-layer biLSTM + classifier, all in VMEM.

    ids_ref  : (T*Bp, 1)  int32   time-major, batch padded to Bp rows
    mask_ref : (T*Bp, 1)  f32     attention mask (0 for padded rows/cols)
    emb_ref  : (Vp, D)    f32     embedding table, vocab lane-padded, row0=0
    w_in_ref : (D, 8H)    bf16    layer-0 W_ih (fwd gates | bwd gates)
    b_in_ref : (1, 8H)    f32     fused b_ih + b_hh for both directions
    whh*_ref : (2H, 8H)   bf16    block-diagonal recurrent weights per layer
    wout*_ref: (2H, O)    bf16    fused epilogue weight (next layer's input
                                  projection, or the lane-padded classifier)
    bout*_ref: (1, O)     f32
    out_ref  : (T*Bp, 128) f32    lane-dense classifier output
    gp_sc    : (T*Bp, 8H) f32     gate pre-activations of the current layer
    y_sc     : (T*Bp, 2H) f32     per-timestep hidden output [h_fwd | h_bwd]
    """
    T, Bp, H = seq_len, batch_pad, hidden
    G = 4 * H
    TB = T * Bp
    Vp = emb_ref.shape[0]

    # --- Prologue: embedding gather (exact one-hot matmul), mask, layer-0
    #     input projection for both directions and all timesteps at once.
    col = jax.lax.broadcasted_iota(jnp.int32, (TB, Vp), 1)
    onehot = (col == ids_ref[...]).astype(jnp.float32)            # (TB, Vp)
    embedded = jnp.dot(onehot, emb_ref[...],
                       preferred_element_type=jnp.float32)        # (TB, D)
    embedded = embedded * mask_ref[...]
    gp_sc[...] = (
        jnp.dot(embedded.astype(w_in_ref.dtype), w_in_ref[...],
                preferred_element_type=jnp.float32)
        + b_in_ref[...]
    )                                                              # (TB, 8H)

    # g-gate lane mask (PyTorch gate order i,f,g,o per direction), hoisted.
    lane = jax.lax.broadcasted_iota(jnp.int32, (Bp, 2 * G), 1)
    is_g = ((lane >= 2 * H) & (lane < 3 * H)) | \
           ((lane >= G + 2 * H) & (lane < G + 3 * H))

    def run_layer(whh_ref, wout_ref, bout_ref, dst_ref):
        wdt = whh_ref.dtype
        whh = whh_ref[...]                      # hoisted out of the time loop
        h = jnp.zeros((Bp, 2 * H), jnp.float32)   # [h_fwd | h_bwd]
        c = jnp.zeros((Bp, 2 * H), jnp.float32)   # [c_fwd | c_bwd]
        # Fully unrolled static loop; fwd direction at time t, bwd at T-1-t.
        for t in range(T):
            tb = T - 1 - t
            gp_f = gp_sc[pl.ds(t * Bp, Bp), :G]    # aligned (Bp, 4H) loads
            gp_b = gp_sc[pl.ds(tb * Bp, Bp), G:]
            hh = jnp.dot(h.astype(wdt), whh,
                         preferred_element_type=jnp.float32)      # (Bp, 8H)
            gates = jnp.concatenate([gp_f, gp_b], axis=-1) + hh
            # One sigmoid pass on the EUP; tanh(x) = 2*sigmoid(2x) - 1 on the
            # g-gate lanes via two cheap VPU selects.
            a = jax.nn.sigmoid(jnp.where(is_g, 2.0 * gates, gates))
            act = jnp.where(is_g, 2.0 * a - 1.0, a)

            def pair(off):
                # gather [fwd | bwd] lanes of one gate -> (Bp, 2H)
                return jnp.concatenate(
                    [act[:, off:off + H], act[:, G + off:G + off + H]],
                    axis=-1)

            i_a, f_a, g_a, o_a = pair(0), pair(H), pair(2 * H), pair(3 * H)
            c = f_a * c + i_a * g_a
            h = o_a * jnp.tanh(c)
            y_sc[pl.ds(t * Bp, Bp), :H] = h[:, :H]
            y_sc[pl.ds(tb * Bp, Bp), H:] = h[:, H:]
        # Epilogue: one big M = T*Bp, K = 2H matmul (next layer's input
        # projection, or the lane-padded classifier).
        # TODO(synk): training-mode dropout on the layer output would go here;
        # identity in eval mode.
        odt = wout_ref.dtype
        dst_ref[...] = (
            jnp.dot(y_sc[...].astype(odt), wout_ref[...],
                    preferred_element_type=jnp.float32)
            + bout_ref[...]
        )

    # TODO(synk): on v7x, shard the two directions over the 2 TensorCores
    # (pl.core_map / parallel leading grid axis); single-core here.
    # TODO(synk): for large T/B/H, chunk the time axis over a grid with h/c
    # carries in scratch and an explicit vmem_limit_bytes.
    run_layer(whh0_ref, wout0_ref, bout0_ref, gp_sc)   # layer 0 -> layer-1 gp
    run_layer(whh1_ref, wout1_ref, bout1_ref, out_ref)  # layer 1 -> classifier


def _full_spec(arr):
    """BlockSpec covering the whole (tiny) array in one block."""
    return pl.BlockSpec(arr.shape, lambda i, _n=arr.ndim: (0,) * _n)


# -----------------------------------------------------------------------------
# Parameter construction (deterministic, synthetic, PyTorch layout then packed)
# -----------------------------------------------------------------------------
def init_params(key, vocab_size, embedding_dim, hidden_dim, num_labels,
                num_layers=2):
    assert num_layers == 2, "fused kernel is specialized to the spec's 2 layers"
    H = hidden_dim
    keys = list(jax.random.split(key, 1 + num_layers * 2 * 4 + 2))
    ki = iter(keys)

    # Embedding (padding_idx=0 -> zero row, as in nn.Embedding); vocab padded
    # to a multiple of 128 with zero rows so the in-kernel one-hot is lane-dense.
    emb = 0.1 * jax.random.normal(next(ki), (vocab_size, embedding_dim),
                                  jnp.float32)
    emb = emb.at[0].set(0.0)
    v_pad = ((vocab_size + 127) // 128) * 128
    emb_padded = jnp.zeros((v_pad, embedding_dim), jnp.float32)
    emb_padded = emb_padded.at[:vocab_size].set(emb)

    scale = 1.0 / jnp.sqrt(jnp.float32(H))

    # Raw PyTorch-layout LSTM params: per layer, per direction (fwd, bwd):
    # W_ih (4H, in), W_hh (4H, H), b_ih (4H,), b_hh (4H,), gate order i,f,g,o.
    raw_layers = []
    in_dim = embedding_dim
    for _layer in range(num_layers):
        dirs = []
        for _d in range(2):
            w_ih = scale * jax.random.normal(next(ki), (4 * H, in_dim), jnp.float32)
            w_hh = scale * jax.random.normal(next(ki), (4 * H, H), jnp.float32)
            b_ih = scale * jax.random.normal(next(ki), (4 * H,), jnp.float32)
            b_hh = scale * jax.random.normal(next(ki), (4 * H,), jnp.float32)
            dirs.append((w_ih, w_hh, b_ih, b_hh))
        raw_layers.append(dirs)
        in_dim = 2 * H

    w_cls = scale * jax.random.normal(next(ki), (num_labels, 2 * H), jnp.float32)
    b_cls = scale * jax.random.normal(next(ki), (num_labels,), jnp.float32)

    def pack_input_proj(dirs):
        # (in_dim, 8H) bf16; cols [0:4H)=fwd gates, [4H:8H)=bwd gates.
        # Both LSTM biases fused into the hoisted input projection.
        w = jnp.concatenate([dirs[0][0].T, dirs[1][0].T], axis=1)
        b = jnp.concatenate([dirs[0][2] + dirs[0][3],
                             dirs[1][2] + dirs[1][3]])[None, :]
        return w.astype(jnp.bfloat16), b.astype(jnp.float32)

    def pack_whh_blockdiag(dirs):
        # (2H, 8H): top-left block = W_hh_fwd^T, bottom-right = W_hh_bwd^T.
        w = jnp.zeros((2 * H, 8 * H), jnp.float32)
        w = w.at[:H, :4 * H].set(dirs[0][1].T)
        w = w.at[H:, 4 * H:].set(dirs[1][1].T)
        return w.astype(jnp.bfloat16)

    # Lane-dense classifier: pad num_labels up to 128 with zero cols.
    o_pad = ((num_labels + 127) // 128) * 128
    wcls_pad = jnp.zeros((2 * H, o_pad), jnp.float32).at[:, :num_labels].set(w_cls.T)
    bcls_pad = jnp.zeros((1, o_pad), jnp.float32).at[0, :num_labels].set(b_cls)

    params = {"embedding": emb_padded}
    params["in_proj_w"], params["in_proj_b"] = pack_input_proj(raw_layers[0])

    layers = []
    for li in range(num_layers):
        whh = pack_whh_blockdiag(raw_layers[li])
        if li + 1 < num_layers:
            # Fuse the NEXT layer's input projection into this layer's epilogue.
            wout, bout = pack_input_proj(raw_layers[li + 1])       # (2H, 8H)
        else:
            # Last layer: fuse the (lane-padded) classifier into the epilogue.
            wout, bout = wcls_pad.astype(jnp.bfloat16), bcls_pad   # (2H, 128)
        layers.append({"whh": whh, "wout": wout, "bout": bout})
    params["layers"] = layers
    return params


# -----------------------------------------------------------------------------
# Full forward pass (single pallas_call; only tiny int/logit glue in XLA)
# -----------------------------------------------------------------------------
@functools.partial(jax.jit, static_argnames=("num_labels",))
def lstm_for_ner_forward(params, input_ids, attention_mask=None, *, num_labels):
    """input_ids: (B, T) int32; attention_mask: (B, T) float or None.

    Returns logits (B, T, num_labels) float32.
    """
    B, T = input_ids.shape
    H = params["layers"][0]["whh"].shape[0] // 2
    OP = params["layers"][-1]["wout"].shape[1]        # lane-padded labels (128)
    Bp = max(8, ((B + 7) // 8) * 8)                    # sublane-aligned batch

    # Tiny time-major, batch-padded id / mask slabs (row = t*Bp + b).
    ids_tm = jnp.transpose(input_ids).astype(jnp.int32)             # (T, B)
    ids_pad = jnp.zeros((T, Bp), jnp.int32).at[:, :B].set(ids_tm)
    if attention_mask is None:
        m_tm = jnp.ones((T, B), jnp.float32)
    else:
        m_tm = jnp.transpose(attention_mask).astype(jnp.float32)
    mask_pad = jnp.zeros((T, Bp), jnp.float32).at[:, :B].set(m_tm)
    ids_p = ids_pad.reshape(T * Bp, 1)
    mask_p = mask_pad.reshape(T * Bp, 1)

    l0, l1 = params["layers"]
    args = (ids_p, mask_p, params["embedding"],
            params["in_proj_w"], params["in_proj_b"],
            l0["whh"], l0["wout"], l0["bout"],
            l1["whh"], l1["wout"], l1["bout"])

    kernel = functools.partial(_fused_lstm_ner_kernel,
                               seq_len=T, batch_pad=Bp, hidden=H)
    out = pl.pallas_call(
        kernel,
        out_shape=jax.ShapeDtypeStruct((T * Bp, OP), jnp.float32),
        grid_spec=pltpu.PrefetchScalarGridSpec(
            num_scalar_prefetch=0,
            grid=(1,),
            in_specs=[_full_spec(a) for a in args],
            out_specs=pl.BlockSpec((T * Bp, OP), lambda i: (0, 0)),
            scratch_shapes=[
                pltpu.VMEM((T * Bp, 8 * H), jnp.float32),   # gate pre-acts
                pltpu.VMEM((T * Bp, 2 * H), jnp.float32),   # [h_fwd | h_bwd]
            ],
        ),
        compiler_params=pltpu.CompilerParams(
            dimension_semantics=("arbitrary",),
        ),
    )(*args)

    # Drop batch-padding rows and label-padding lanes; back to (B, T, L).
    logits = out.reshape(T, Bp, OP)[:, :B, :num_labels]
    return jnp.transpose(logits, (1, 0, 2))


# -----------------------------------------------------------------------------
# Main
# -----------------------------------------------------------------------------
if __name__ == "__main__":
    vocab_size = 100
    embedding_dim = 32
    hidden_dim = 32
    num_labels = 8
    batch = 2
    seq_len = 8

    key = jax.random.PRNGKey(0)
    k_param, k_ids = jax.random.split(key, 2)

    params = init_params(k_param, vocab_size, embedding_dim, hidden_dim,
                         num_labels, num_layers=2)

    input_ids = jax.random.randint(k_ids, (batch, seq_len), 1, vocab_size,
                                   dtype=jnp.int32)
    # Simple attention mask: last two tokens of batch element 1 are padding.
    attention_mask = jnp.ones((batch, seq_len), jnp.float32)
    attention_mask = attention_mask.at[1, -2:].set(0.0)
    input_ids = input_ids.at[1, -2:].set(0)

    logits = lstm_for_ner_forward(params, input_ids, attention_mask,
                                  num_labels=num_labels)
    logits = jax.block_until_ready(logits)

    assert logits.shape == (batch, seq_len, num_labels), logits.shape
    assert logits.dtype == jnp.float32
    assert bool(jnp.all(jnp.isfinite(logits)))
    print("KERNEL_OK")
</pallas_src>

<mosaic_0001>
module attributes {stable_mosaic.version = 11 : i64} {
  func.func @_fused_lstm_ner_kernel(%arg0: i32, %arg1: memref<64x1xi32, #tpu.memory_space<vmem>>, %arg2: memref<64x1xf32, #tpu.memory_space<vmem>>, %arg3: memref<128x32xf32, #tpu.memory_space<vmem>>, %arg4: memref<32x256xbf16, #tpu.memory_space<vmem>>, %arg5: memref<1x256xf32, #tpu.memory_space<vmem>>, %arg6: memref<64x256xbf16, #tpu.memory_space<vmem>>, %arg7: memref<64x256xbf16, #tpu.memory_space<vmem>>, %arg8: memref<1x256xf32, #tpu.memory_space<vmem>>, %arg9: memref<64x256xbf16, #tpu.memory_space<vmem>>, %arg10: memref<64x128xbf16, #tpu.memory_space<vmem>>, %arg11: memref<1x128xf32, #tpu.memory_space<vmem>>, %arg12: memref<64x128xf32, #tpu.memory_space<vmem>>, %arg13: memref<64x256xf32, #tpu.memory_space<vmem>>, %arg14: memref<64x64xf32, #tpu.memory_space<vmem>>) attributes {dimension_semantics = [#tpu.dimension_semantics<arbitrary>], iteration_bounds = array<i64: 1>, scalar_prefetch = 0 : i64, scratch_operands = 2 : i64, tpu.core_type = #tpu.core_type<tc>, window_params = [{pipeline_mode = #tpu.pipeline_mode<synchronous>, transform_indices = @transform_0, window_bounds = array<i64: 64, 1>}, {pipeline_mode = #tpu.pipeline_mode<synchronous>, transform_indices = @transform_1, window_bounds = array<i64: 64, 1>}, {pipeline_mode = #tpu.pipeline_mode<synchronous>, transform_indices = @transform_2, window_bounds = array<i64: 128, 32>}, {pipeline_mode = #tpu.pipeline_mode<synchronous>, transform_indices = @transform_3, window_bounds = array<i64: 32, 256>}, {pipeline_mode = #tpu.pipeline_mode<synchronous>, transform_indices = @transform_4, window_bounds = array<i64: 1, 256>}, {pipeline_mode = #tpu.pipeline_mode<synchronous>, transform_indices = @transform_5, window_bounds = array<i64: 64, 256>}, {pipeline_mode = #tpu.pipeline_mode<synchronous>, transform_indices = @transform_6, window_bounds = array<i64: 64, 256>}, {pipeline_mode = #tpu.pipeline_mode<synchronous>, transform_indices = @transform_7, window_bounds = array<i64: 1, 256>}, {pipeline_mode = #tpu.pipeline_mode<synchronous>, transform_indices = @transform_8, window_bounds = array<i64: 64, 256>}, {pipeline_mode = #tpu.pipeline_mode<synchronous>, transform_indices = @transform_9, window_bounds = array<i64: 64, 128>}, {pipeline_mode = #tpu.pipeline_mode<synchronous>, transform_indices = @transform_10, window_bounds = array<i64: 1, 128>}, {pipeline_mode = #tpu.pipeline_mode<synchronous>, transform_indices = @transform_11, window_bounds = array<i64: 64, 128>}]} {
    %0 = tpu.iota {dimensions = array<i32: 1>} : vector<64x128xi32>
    %c0 = arith.constant 0 : index
    %c0_0 = arith.constant 0 : index
    %1 = vector.load %arg1[%c0, %c0_0] : memref<64x1xi32, #tpu.memory_space<vmem>>, vector<64x1xi32>
    %2 = vector.broadcast %1 : vector<64x1xi32> to vector<64x128xi32>
    %3 = arith.cmpi eq, %0, %2 : vector<64x128xi32>
    %4 = arith.extui %3 : vector<64x128xi1> to vector<64x128xi32>
    %5 = arith.sitofp %4 : vector<64x128xi32> to vector<64x128xf32>
    %c0_1 = arith.constant 0 : index
    %c0_2 = arith.constant 0 : index
    %6 = vector.load %arg3[%c0_1, %c0_2] : memref<128x32xf32, #tpu.memory_space<vmem>>, vector<128x32xf32>
    %cst = arith.constant dense<0.000000e+00> : vector<64x32xf32>
    %7 = tpu.matmul %5, %6, %cst {dimension_numbers = #tpu.dot_dimension_numbers<[1], [0], [0], [1], [0, 0, 1, 1], [], []>} : vector<64x128xf32>, vector<128x32xf32>, vector<64x32xf32> -> vector<64x32xf32>
    %c0_3 = arith.constant 0 : index
    %c0_4 = arith.constant 0 : index
    %8 = vector.load %arg2[%c0_3, %c0_4] : memref<64x1xf32, #tpu.memory_space<vmem>>, vector<64x1xf32>
    %9 = vector.broadcast %8 : vector<64x1xf32> to vector<64x32xf32>
    %10 = arith.mulf %7, %9 : vector<64x32xf32>
    %11 = arith.truncf %10 : vector<64x32xf32> to vector<64x32xbf16>
    %c0_5 = arith.constant 0 : index
    %c0_6 = arith.constant 0 : index
    %12 = vector.load %arg4[%c0_5, %c0_6] : memref<32x256xbf16, #tpu.memory_space<vmem>>, vector<32x256xbf16>
    %cst_7 = arith.constant dense<0.000000e+00> : vector<64x256xf32>
    %13 = tpu.matmul %11, %12, %cst_7 {dimension_numbers = #tpu.dot_dimension_numbers<[1], [0], [0], [1], [0, 0, 1, 1], [], []>} : vector<64x32xbf16>, vector<32x256xbf16>, vector<64x256xf32> -> vector<64x256xf32>
    %c0_8 = arith.constant 0 : index
    %c0_9 = arith.constant 0 : index
    %14 = vector.load %arg5[%c0_8, %c0_9] : memref<1x256xf32, #tpu.memory_space<vmem>>, vector<1x256xf32>
    %15 = vector.broadcast %14 : vector<1x256xf32> to vector<64x256xf32>
    %16 = arith.addf %13, %15 : vector<64x256xf32>
    %c0_10 = arith.constant 0 : index
    %c0_11 = arith.constant 0 : index
    %17 = vector.load %arg13[%c0_10, %c0_11] : memref<64x256xf32, #tpu.memory_space<vmem>>, vector<64x256xf32>
    tpu.vector_store %arg13[%c0_10, %c0_11], %16 {strides = array<i32>} : memref<64x256xf32, #tpu.memory_space<vmem>>, vector<64x256xf32>,
    %18 = tpu.iota {dimensions = array<i32: 1>} : vector<8x256xi32>
    %c64_i32 = arith.constant 64 : i32
    %19 = vector.broadcast %c64_i32 : i32 to vector<8x256xi32>
    %20 = arith.cmpi sge, %18, %19 : vector<8x256xi32>
    %c96_i32 = arith.constant 96 : i32
    %21 = vector.broadcast %c96_i32 : i32 to vector<8x256xi32>
    %22 = arith.cmpi slt, %18, %21 : vector<8x256xi32>
    %23 = arith.andi %20, %22 : vector<8x256xi1>
    %c192_i32 = arith.constant 192 : i32
    %24 = vector.broadcast %c192_i32 : i32 to vector<8x256xi32>
    %25 = arith.cmpi sge, %18, %24 : vector<8x256xi32>
    %c224_i32 = arith.constant 224 : i32
    %26 = vector.broadcast %c224_i32 : i32 to vector<8x256xi32>
    %27 = arith.cmpi slt, %18, %26 : vector<8x256xi32>
    %28 = arith.andi %25, %27 : vector<8x256xi1>
    %29 = arith.ori %23, %28 : vector<8x256xi1>
    %c0_12 = arith.constant 0 : index
    %c0_13 = arith.constant 0 : index
    %30 = vector.load %arg6[%c0_12, %c0_13] : memref<64x256xbf16, #tpu.memory_space<vmem>>, vector<64x256xbf16>
    %cst_14 = arith.constant 0.000000e+00 : f32
    %31 = vector.broadcast %cst_14 : f32 to vector<8x64xf32>
    %cst_15 = arith.constant 0.000000e+00 : f32
    %32 = vector.broadcast %cst_15 : f32 to vector<8x64xf32>
    %c0_16 = arith.constant 0 : index
    %c0_17 = arith.constant 0 : index
    %33 = vector.load %arg13[%c0_16, %c0_17] : memref<64x256xf32, #tpu.memory_space<vmem>>, vector<8x128xf32>
    %c56 = arith.constant 56 : index
    %c128 = arith.constant 128 : index
    %34 = vector.load %arg13[%c56, %c128] : memref<64x256xf32, #tpu.memory_space<vmem>>, vector<8x128xf32>
    %35 = arith.truncf %31 : vector<8x64xf32> to vector<8x64xbf16>
    %cst_18 = arith.constant dense<0.000000e+00> : vector<8x256xf32>
    %36 = tpu.matmul %35, %30, %cst_18 {dimension_numbers = #tpu.dot_dimension_numbers<[1], [0], [0], [1], [0, 0, 1, 1], [], []>} : vector<8x64xbf16>, vector<64x256xbf16>, vector<8x256xf32> -> vector<8x256xf32>
    %37 = tpu.concatenate %33, %34 in 1 : vector<8x128xf32>, vector<8x128xf32> -> vector<8x256xf32>
    %38 = arith.addf %37, %36 : vector<8x256xf32>
    %cst_19 = arith.constant 2.000000e+00 : f32
    %39 = vector.broadcast %cst_19 : f32 to vector<8x256xf32>
    %40 = arith.mulf %39, %38 : vector<8x256xf32>
    %41 = arith.select %29, %40, %38 : vector<8x256xi1>, vector<8x256xf32>
    %42 = arith.negf %41 : vector<8x256xf32>
    %43 = math.exp %42 : vector<8x256xf32>
    %cst_20 = arith.constant 1.000000e+00 : f32
    %44 = vector.broadcast %cst_20 : f32 to vector<8x256xf32>
    %45 = arith.addf %44, %43 : vector<8x256xf32>
    %46 = arith.divf %44, %45 : vector<8x256xf32>
    %cst_21 = arith.constant 2.000000e+00 : f32
    %47 = vector.broadcast %cst_21 : f32 to vector<8x256xf32>
    %48 = arith.mulf %47, %46 : vector<8x256xf32>
    %cst_22 = arith.constant 1.000000e+00 : f32
    %49 = vector.broadcast %cst_22 : f32 to vector<8x256xf32>
    %50 = arith.subf %48, %49 : vector<8x256xf32>
    %51 = arith.select %29, %50, %46 : vector<8x256xi1>, vector<8x256xf32>
    %52 = vector.extract_strided_slice %51 {offsets = [0, 0], sizes = [8, 32], strides = [1, 1]} : vector<8x256xf32> to vector<8x32xf32>
    %53 = vector.extract_strided_slice %51 {offsets = [0, 128], sizes = [8, 32], strides = [1, 1]} : vector<8x256xf32> to vector<8x32xf32>
    %54 = tpu.concatenate %52, %53 in 1 : vector<8x32xf32>, vector<8x32xf32> -> vector<8x64xf32>
    %55 = vector.extract_strided_slice %51 {offsets = [0, 32], sizes = [8, 32], strides = [1, 1]} : vector<8x256xf32> to vector<8x32xf32>
    %56 = vector.extract_strided_slice %51 {offsets = [0, 160], sizes = [8, 32], strides = [1, 1]} : vector<8x256xf32> to vector<8x32xf32>
    %57 = tpu.concatenate %55, %56 in 1 : vector<8x32xf32>, vector<8x32xf32> -> vector<8x64xf32>
    %58 = vector.extract_strided_slice %51 {offsets = [0, 64], sizes = [8, 32], strides = [1, 1]} : vector<8x256xf32> to vector<8x32xf32>
    %59 = vector.extract_strided_slice %51 {offsets = [0, 192], sizes = [8, 32], strides = [1, 1]} : vector<8x256xf32> to vector<8x32xf32>
    %60 = tpu.concatenate %58, %59 in 1 : vector<8x32xf32>, vector<8x32xf32> -> vector<8x64xf32>
    %61 = vector.extract_strided_slice %51 {offsets = [0, 96], sizes = [8, 32], strides = [1, 1]} : vector<8x256xf32> to vector<8x32xf32>
    %62 = vector.extract_strided_slice %51 {offsets = [0, 224], sizes = [8, 32], strides = [1, 1]} : vector<8x256xf32> to vector<8x32xf32>
    %63 = tpu.concatenate %61, %62 in 1 : vector<8x32xf32>, vector<8x32xf32> -> vector<8x64xf32>
    %64 = arith.mulf %57, %32 : vector<8x64xf32>
    %65 = arith.mulf %54, %60 : vector<8x64xf32>
    %66 = arith.addf %64, %65 : vector<8x64xf32>
    %67 = math.tanh %66 : vector<8x64xf32>
    %68 = arith.mulf %63, %67 : vector<8x64xf32>
    %69 = vector.extract_strided_slice %68 {offsets = [0, 0], sizes = [8, 32], strides = [1, 1]} : vector<8x64xf32> to vector<8x32xf32>
    %c0_23 = arith.constant 0 : index
    %c0_24 = arith.constant 0 : index
    %70 = vector.load %arg14[%c0_23, %c0_24] : memref<64x64xf32, #tpu.memory_space<vmem>>, vector<8x32xf32>
    tpu.vector_store %arg14[%c0_23, %c0_24], %69 {strides = array<i32>} : memref<64x64xf32, #tpu.memory_space<vmem>>, vector<8x32xf32>,
    %71 = vector.extract_strided_slice %68 {offsets = [0, 32], sizes = [8, 32], strides = [1, 1]} : vector<8x64xf32> to vector<8x32xf32>
    %c56_25 = arith.constant 56 : index
    %c32 = arith.constant 32 : index
    %72 = vector.load %arg14[%c56_25, %c32] : memref<64x64xf32, #tpu.memory_space<vmem>>, vector<8x32xf32>
    tpu.vector_store %arg14[%c56_25, %c32], %71 {strides = array<i32>} : memref<64x64xf32, #tpu.memory_space<vmem>>, vector<8x32xf32>,
    %c8 = arith.constant 8 : index
    %c0_26 = arith.constant 0 : index
    %73 = vector.load %arg13[%c8, %c0_26] : memref<64x256xf32, #tpu.memory_space<vmem>>, vector<8x128xf32>
    %c48 = arith.constant 48 : index
    %c128_27 = arith.constant 128 : index
    %74 = vector.load %arg13[%c48, %c128_27] : memref<64x256xf32, #tpu.memory_space<vmem>>, vector<8x128xf32>
    %75 = arith.truncf %68 : vector<8x64xf32> to vector<8x64xbf16>
    %cst_28 = arith.constant dense<0.000000e+00> : vector<8x256xf32>
    %76 = tpu.matmul %75, %30, %cst_28 {dimension_numbers = #tpu.dot_dimension_numbers<[1], [0], [0], [1], [0, 0, 1, 1], [], []>} : vector<8x64xbf16>, vector<64x256xbf16>, vector<8x256xf32> -> vector<8x256xf32>
    %77 = tpu.concatenate %73, %74 in 1 : vector<8x128xf32>, vector<8x128xf32> -> vector<8x256xf32>
    %78 = arith.addf %77, %76 : vector<8x256xf32>
    %cst_29 = arith.constant 2.000000e+00 : f32
    %79 = vector.broadcast %cst_29 : f32 to vector<8x256xf32>
    %80 = arith.mulf %79, %78 : vector<8x256xf32>
    %81 = arith.select %29, %80, %78 : vector<8x256xi1>, vector<8x256xf32>
    %82 = arith.negf %81 : vector<8x256xf32>
    %83 = math.exp %82 : vector<8x256xf32>
    %cst_30 = arith.constant 1.000000e+00 : f32
    %84 = vector.broadcast %cst_30 : f32 to vector<8x256xf32>
    %85 = arith.addf %84, %83 : vector<8x256xf32>
    %86 = arith.divf %84, %85 : vector<8x256xf32>
    %cst_31 = arith.constant 2.000000e+00 : f32
    %87 = vector.broadcast %cst_31 : f32 to vector<8x256xf32>
    %88 = arith.mulf %87, %86 : vector<8x256xf32>
    %cst_32 = arith.constant 1.000000e+00 : f32
    %89 = vector.broadcast %cst_32 : f32 to vector<8x256xf32>
    %90 = arith.subf %88, %89 : vector<8x256xf32>
    %91 = arith.select %29, %90, %86 : vector<8x256xi1>, vector<8x256xf32>
    %92 = vector.extract_strided_slice %91 {offsets = [0, 0], sizes = [8, 32], strides = [1, 1]} : vector<8x256xf32> to vector<8x32xf32>
    %93 = vector.extract_strided_slice %91 {offsets = [0, 128], sizes = [8, 32], strides = [1, 1]} : vector<8x256xf32> to vector<8x32xf32>
    %94 = tpu.concatenate %92, %93 in 1 : vector<8x32xf32>, vector<8x32xf32> -> vector<8x64xf32>
    %95 = vector.extract_strided_slice %91 {offsets = [0, 32], sizes = [8, 32], strides = [1, 1]} : vector<8x256xf32> to vector<8x32xf32>
    %96 = vector.extract_strided_slice %91 {offsets = [0, 160], sizes = [8, 32], strides = [1, 1]} : vector<8x256xf32> to vector<8x32xf32>
    %97 = tpu.concatenate %95, %96 in 1 : vector<8x32xf32>, vector<8x32xf32> -> vector<8x64xf32>
    %98 = vector.extract_strided_slice %91 {offsets = [0, 64], sizes = [8, 32], strides = [1, 1]} : vector<8x256xf32> to vector<8x32xf32>
    %99 = vector.extract_strided_slice %91 {offsets = [0, 192], sizes = [8, 32], strides = [1, 1]} : vector<8x256xf32> to vector<8x32xf32>
    %100 = tpu.concatenate %98, %99 in 1 : vector<8x32xf32>, vector<8x32xf32> -> vector<8x64xf32>
    %101 = vector.extract_strided_slice %91 {offsets = [0, 96], sizes = [8, 32], strides = [1, 1]} : vector<8x256xf32> to vector<8x32xf32>
    %102 = vector.extract_strided_slice %91 {offsets = [0, 224], sizes = [8, 32], strides = [1, 1]} : vector<8x256xf32> to vector<8x32xf32>
    %103 = tpu.concatenate %101, %102 in 1 : vector<8x32xf32>, vector<8x32xf32> -> vector<8x64xf32>
    %104 = arith.mulf %97, %66 : vector<8x64xf32>
    %105 = arith.mulf %94, %100 : vector<8x64xf32>
    %106 = arith.addf %104, %105 : vector<8x64xf32>
    %107 = math.tanh %106 : vector<8x64xf32>
    %108 = arith.mulf %103, %107 : vector<8x64xf32>
    %109 = vector.extract_strided_slice %108 {offsets = [0, 0], sizes = [8, 32], strides = [1, 1]} : vector<8x64xf32> to vector<8x32xf32>
    %c8_33 = arith.constant 8 : index
    %c0_34 = arith.constant 0 : index
    %110 = vector.load %arg14[%c8_33, %c0_34] : memref<64x64xf32, #tpu.memory_space<vmem>>, vector<8x32xf32>
    tpu.vector_store %arg14[%c8_33, %c0_34], %109 {strides = array<i32>} : memref<64x64xf32, #tpu.memory_space<vmem>>, vector<8x32xf32>,
    %111 = vector.extract_strided_slice %108 {offsets = [0, 32], sizes = [8, 32], strides = [1, 1]} : vector<8x64xf32> to vector<8x32xf32>
    %c48_35 = arith.constant 48 : index
    %c32_36 = arith.constant 32 : index
    %112 = vector.load %arg14[%c48_35, %c32_36] : memref<64x64xf32, #tpu.memory_space<vmem>>, vector<8x32xf32>
    tpu.vector_store %arg14[%c48_35, %c32_36], %111 {strides = array<i32>} : memref<64x64xf32, #tpu.memory_space<vmem>>, vector<8x32xf32>,
    %c16 = arith.constant 16 : index
    %c0_37 = arith.constant 0 : index
    %113 = vector.load %arg13[%c16, %c0_37] : memref<64x256xf32, #tpu.memory_space<vmem>>, vector<8x128xf32>
    %c40 = arith.constant 40 : index
    %c128_38 = arith.constant 128 : index
    %114 = vector.load %arg13[%c40, %c128_38] : memref<64x256xf32, #tpu.memory_space<vmem>>, vector<8x128xf32>
    %115 = arith.truncf %108 : vector<8x64xf32> to vector<8x64xbf16>
    %cst_39 = arith.constant dense<0.000000e+00> : vector<8x256xf32>
    %116 = tpu.matmul %115, %30, %cst_39 {dimension_numbers = #tpu.dot_dimension_numbers<[1], [0], [0], [1], [0, 0, 1, 1], [], []>} : vector<8x64xbf16>, vector<64x256xbf16>, vector<8x256xf32> -> vector<8x256xf32>
    %117 = tpu.concatenate %113, %114 in 1 : vector<8x128xf32>, vector<8x128xf32> -> vector<8x256xf32>
    %118 = arith.addf %117, %116 : vector<8x256xf32>
    %cst_40 = arith.constant 2.000000e+00 : f32
    %119 = vector.broadcast %cst_40 : f32 to vector<8x256xf32>
    %120 = arith.mulf %119, %118 : vector<8x256xf32>
    %121 = arith.select %29, %120, %118 : vector<8x256xi1>, vector<8x256xf32>
    %122 = arith.negf %121 : vector<8x256xf32>
    %123 = math.exp %122 : vector<8x256xf32>
    %cst_41 = arith.constant 1.000000e+00 : f32
    %124 = vector.broadcast %cst_41 : f32 to vector<8x256xf32>
    %125 = arith.addf %124, %123 : vector<8x256xf32>
    %126 = arith.divf %124, %125 : vector<8x256xf32>
    %cst_42 = arith.constant 2.000000e+00 : f32
    %127 = vector.broadcast %cst_42 : f32 to vector<8x256xf32>
    %128 = arith.mulf %127, %126 : vector<8x256xf32>
    %cst_43 = arith.constant 1.000000e+00 : f32
    %129 = vector.broadcast %cst_43 : f32 to vector<8x256xf32>
    %130 = arith.subf %128, %129 : vector<8x256xf32>
    %131 = arith.select %29, %130, %126 : vector<8x256xi1>, vector<8x256xf32>
    %132 = vector.extract_strided_slice %131 {offsets = [0, 0], sizes = [8, 32], strides = [1, 1]} : vector<8x256xf32> to vector<8x32xf32>
    %133 = vector.extract_strided_slice %131 {offsets = [0, 128], sizes = [8, 32], strides = [1, 1]} : vector<8x256xf32> to vector<8x32xf32>
    %134 = tpu.concatenate %132, %133 in 1 : vector<8x32xf32>, vector<8x32xf32> -> vector<8x64xf32>
    %135 = vector.extract_strided_slice %131 {offsets = [0, 32], sizes = [8, 32], strides = [1, 1]} : vector<8x256xf32> to vector<8x32xf32>
    %136 = vector.extract_strided_slice %131 {offsets = [0, 160], sizes = [8, 32], strides = [1, 1]} : vector<8x256xf32> to vector<8x32xf32>
    %137 = tpu.concatenate %135, %136 in 1 : vector<8x32xf32>, vector<8x32xf32> -> vector<8x64xf32>
    %138 = vector.extract_strided_slice %131 {offsets = [0, 64], sizes = [8, 32], strides = [1, 1]} : vector<8x256xf32> to vector<8x32xf32>
    %139 = vector.extract_strided_slice %131 {offsets = [0, 192], sizes = [8, 32], strides = [1, 1]} : vector<8x256xf32> to vector<8x32xf32>
    %140 = tpu.concatenate %138, %139 in 1 : vector<8x32xf32>, vector<8x32xf32> -> vector<8x64xf32>
    %141 = vector.extract_strided_slice %131 {offsets = [0, 96], sizes = [8, 32], strides = [1, 1]} : vector<8x256xf32> to vector<8x32xf32>
    %142 = vector.extract_strided_slice %131 {offsets = [0, 224], sizes = [8, 32], strides = [1, 1]} : vector<8x256xf32> to vector<8x32xf32>
    %143 = tpu.concatenate %141, %142 in 1 : vector<8x32xf32>, vector<8x32xf32> -> vector<8x64xf32>
    %144 = arith.mulf %137, %106 : vector<8x64xf32>
    %145 = arith.mulf %134, %140 : vector<8x64xf32>
    %146 = arith.addf %144, %145 : vector<8x64xf32>
    %147 = math.tanh %146 : vector<8x64xf32>
    %148 = arith.mulf %143, %147 : vector<8x64xf32>
    %149 = vector.extract_strided_slice %148 {offsets = [0, 0], sizes = [8, 32], strides = [1, 1]} : vector<8x64xf32> to vector<8x32xf32>
    %c16_44 = arith.constant 16 : index
    %c0_45 = arith.constant 0 : index
    %150 = vector.load %arg14[%c16_44, %c0_45] : memref<64x64xf32, #tpu.memory_space<vmem>>, vector<8x32xf32>
    tpu.vector_store %arg14[%c16_44, %c0_45], %149 {strides = array<i32>} : memref<64x64xf32, #tpu.memory_space<vmem>>, vector<8x32xf32>,
    %151 = vector.extract_strided_slice %148 {offsets = [0, 32], sizes = [8, 32], strides = [1, 1]} : vector<8x64xf32> to vector<8x32xf32>
    %c40_46 = arith.constant 40 : index
    %c32_47 = arith.constant 32 : index
    %152 = vector.load %arg14[%c40_46, %c32_47] : memref<64x64xf32, #tpu.memory_space<vmem>>, vector<8x32xf32>
    tpu.vector_store %arg14[%c40_46, %c32_47], %151 {strides = array<i32>} : memref<64x64xf32, #tpu.memory_space<vmem>>, vector<8x32xf32>,
    %c24 = arith.constant 24 : index
    %c0_48 = arith.constant 0 : index
    %153 = vector.load %arg13[%c24, %c0_48] : memref<64x256xf32, #tpu.memory_space<vmem>>, vector<8x128xf32>
    %c32_49 = arith.constant 32 : index
    %c128_50 = arith.constant 128 : index
    %154 = vector.load %arg13[%c32_49, %c128_50] : memref<64x256xf32, #tpu.memory_space<vmem>>, vector<8x128xf32>
    %155 = arith.truncf %148 : vector<8x64xf32> to vector<8x64xbf16>
    %cst_51 = arith.constant dense<0.000000e+00> : vector<8x256xf32>
    %156 = tpu.matmul %155, %30, %cst_51 {dimension_numbers = #tpu.dot_dimension_numbers<[1], [0], [0], [1], [0, 0, 1, 1], [], []>} : vector<8x64xbf16>, vector<64x256xbf16>, vector<8x256xf32> -> vector<8x256xf32>
    %157 = tpu.concatenate %153, %154 in 1 : vector<8x128xf32>, vector<8x128xf32> -> vector<8x256xf32>
    %158 = arith.addf %157, %156 : vector<8x256xf32>
    %cst_52 = arith.constant 2.000000e+00 : f32
    %159 = vector.broadcast %cst_52 : f32 to vector<8x256xf32>
    %160 = arith.mulf %159, %158 : vector<8x256xf32>
    %161 = arith.select %29, %160, %158 : vector<8x256xi1>, vector<8x256xf32>
    %162 = arith.negf %161 : vector<8x256xf32>
    %163 = math.exp %162 : vector<8x256xf32>
    %cst_53 = arith.constant 1.000000e+00 : f32
    %164 = vector.broadcast %cst_53 : f32 to vector<8x256xf32>
    %165 = arith.addf %164, %163 : vector<8x256xf32>
    %166 = arith.divf %164, %165 : vector<8x256xf32>
    %cst_54 = arith.constant 2.000000e+00 : f32
    %167 = vector.broadcast %cst_54 : f32 to vector<8x256xf32>
    %168 = arith.mulf %167, %166 : vector<8x256xf32>
    %cst_55 = arith.constant 1.000000e+00 : f32
    %169 = vector.broadcast %cst_55 : f32 to vector<8x256xf32>
    %170 = arith.subf %168, %169 : vector<8x256xf32>
    %171 = arith.select %29, %170, %166 : vector<8x256xi1>, vector<8x256xf32>
    %172 = vector.extract_strided_slice %171 {offsets = [0, 0], sizes = [8, 32], strides = [1, 1]} : vector<8x256xf32> to vector<8x32xf32>
    %173 = vector.extract_strided_slice %171 {offsets = [0, 128], sizes = [8, 32], strides = [1, 1]} : vector<8x256xf32> to vector<8x32xf32>
    %174 = tpu.concatenate %172, %173 in 1 : vector<8x32xf32>, vector<8x32xf32> -> vector<8x64xf32>
    %175 = vector.extract_strided_slice %171 {offsets = [0, 32], sizes = [8, 32], strides = [1, 1]} : vector<8x256xf32> to vector<8x32xf32>
    %176 = vector.extract_strided_slice %171 {offsets = [0, 160], sizes = [8, 32], strides = [1, 1]} : vector<8x256xf32> to vector<8x32xf32>
    %177 = tpu.concatenate %175, %176 in 1 : vector<8x32xf32>, vector<8x32xf32> -> vector<8x64xf32>
    %178 = vector.extract_strided_slice %171 {offsets = [0, 64], sizes = [8, 32], strides = [1, 1]} : vector<8x256xf32> to vector<8x32xf32>
    %179 = vector.extract_strided_slice %171 {offsets = [0, 192], sizes = [8, 32], strides = [1, 1]} : vector<8x256xf32> to vector<8x32xf32>
    %180 = tpu.concatenate %178, %179 in 1 : vector<8x32xf32>, vector<8x32xf32> -> vector<8x64xf32>
    %181 = vector.extract_strided_slice %171 {offsets = [0, 96], sizes = [8, 32], strides = [1, 1]} : vector<8x256xf32> to vector<8x32xf32>
    %182 = vector.extract_strided_slice %171 {offsets = [0, 224], sizes = [8, 32], strides = [1, 1]} : vector<8x256xf32> to vector<8x32xf32>
    %183 = tpu.concatenate %181, %182 in 1 : vector<8x32xf32>, vector<8x32xf32> -> vector<8x64xf32>
    %184 = arith.mulf %177, %146 : vector<8x64xf32>
    %185 = arith.mulf %174, %180 : vector<8x64xf32>
    %186 = arith.addf %184, %185 : vector<8x64xf32>
    %187 = math.tanh %186 : vector<8x64xf32>
    %188 = arith.mulf %183, %187 : vector<8x64xf32>
    %189 = vector.extract_strided_slice %188 {offsets = [0, 0], sizes = [8, 32], strides = [1, 1]} : vector<8x64xf32> to vector<8x32xf32>
    %c24_56 = arith.constant 24 : index
    %c0_57 = arith.constant 0 : index
    %190 = vector.load %arg14[%c24_56, %c0_57] : memref<64x64xf32, #tpu.memory_space<vmem>>, vector<8x32xf32>
    tpu.vector_store %arg14[%c24_56, %c0_57], %189 {strides = array<i32>} : memref<64x64xf32, #tpu.memory_space<vmem>>, vector<8x32xf32>,
    %191 = vector.extract_strided_slice %188 {offsets = [0, 32], sizes = [8, 32], strides = [1, 1]} : vector<8x64xf32> to vector<8x32xf32>
    %c32_58 = arith.constant 32 : index
    %c32_59 = arith.constant 32 : index
    %192 = vector.load %arg14[%c32_58, %c32_59] : memref<64x64xf32, #tpu.memory_space<vmem>>, vector<8x32xf32>
    tpu.vector_store %arg14[%c32_58, %c32_59], %191 {strides = array<i32>} : memref<64x64xf32, #tpu.memory_space<vmem>>, vector<8x32xf32>,
    %c32_60 = arith.constant 32 : index
    %c0_61 = arith.constant 0 : index
    %193 = vector.load %arg13[%c32_60, %c0_61] : memref<64x256xf32, #tpu.memory_space<vmem>>, vector<8x128xf32>
    %c24_62 = arith.constant 24 : index
    %c128_63 = arith.constant 128 : index
    %194 = vector.load %arg13[%c24_62, %c128_63] : memref<64x256xf32, #tpu.memory_space<vmem>>, vector<8x128xf32>
    %195 = arith.truncf %188 : vector<8x64xf32> to vector<8x64xbf16>
    %cst_64 = arith.constant dense<0.000000e+00> : vector<8x256xf32>
    %196 = tpu.matmul %195, %30, %cst_64 {dimension_numbers = #tpu.dot_dimension_numbers<[1], [0], [0], [1], [0, 0, 1, 1], [], []>} : vector<8x64xbf16>, vector<64x256xbf16>, vector<8x256xf32> -> vector<8x256xf32>
    %197 = tpu.concatenate %193, %194 in 1 : vector<8x128xf32>, vector<8x128xf32> -> vector<8x256xf32>
    %198 = arith.addf %197, %196 : vector<8x256xf32>
    %cst_65 = arith.constant 2.000000e+00 : f32
    %199 = vector.broadcast %cst_65 : f32 to vector<8x256xf32>
    %200 = arith.mulf %199, %198 : vector<8x256xf32>
    %201 = arith.select %29, %200, %198 : vector<8x256xi1>, vector<8x256xf32>
    %202 = arith.negf %201 : vector<8x256xf32>
    %203 = math.exp %202 : vector<8x256xf32>
    %cst_66 = arith.constant 1.000000e+00 : f32
    %204 = vector.broadcast %cst_66 : f32 to vector<8x256xf32>
    %205 = arith.addf %204, %203 : vector<8x256xf32>
    %206 = arith.divf %204, %205 : vector<8x256xf32>
    %cst_67 = arith.constant 2.000000e+00 : f32
    %207 = vector.broadcast %cst_67 : f32 to vector<8x256xf32>
    %208 = arith.mulf %207, %206 : vector<8x256xf32>
    %cst_68 = arith.constant 1.000000e+00 : f32
    %209 = vector.broadcast %cst_68 : f32 to vector<8x256xf32>
    %210 = arith.subf %208, %209 : vector<8x256xf32>
    %211 = arith.select %29, %210, %206 : vector<8x256xi1>, vector<8x256xf32>
    %212 = vector.extract_strided_slice %211 {offsets = [0, 0], sizes = [8, 32], strides = [1, 1]} : vector<8x256xf32> to vector<8x32xf32>
    %213 = vector.extract_strided_slice %211 {offsets = [0, 128], sizes = [8, 32], strides = [1, 1]} : vector<8x256xf32> to vector<8x32xf32>
    %214 = tpu.concatenate %212, %213 in 1 : vector<8x32xf32>, vector<8x32xf32> -> vector<8x64xf32>
    %215 = vector.extract_strided_slice %211 {offsets = [0, 32], sizes = [8, 32], strides = [1, 1]} : vector<8x256xf32> to vector<8x32xf32>
    %216 = vector.extract_strided_slice %211 {offsets = [0, 160], sizes = [8, 32], strides = [1, 1]} : vector<8x256xf32> to vector<8x32xf32>
    %217 = tpu.concatenate %215, %216 in 1 : vector<8x32xf32>, vector<8x32xf32> -> vector<8x64xf32>
    %218 = vector.extract_strided_slice %211 {offsets = [0, 64], sizes = [8, 32], strides = [1, 1]} : vector<8x256xf32> to vector<8x32xf32>
    %219 = vector.extract_strided_slice %211 {offsets = [0, 192], sizes = [8, 32], strides = [1, 1]} : vector<8x256xf32> to vector<8x32xf32>
    %220 = tpu.concatenate %218, %219 in 1 : vector<8x32xf32>, vector<8x32xf32> -> vector<8x64xf32>
    %221 = vector.extract_strided_slice %211 {offsets = [0, 96], sizes = [8, 32], strides = [1, 1]} : vector<8x256xf32> to vector<8x32xf32>
    %222 = vector.extract_strided_slice %211 {offsets = [0, 224], sizes = [8, 32], strides = [1, 1]} : vector<8x256xf32> to vector<8x32xf32>
    %223 = tpu.concatenate %221, %222 in 1 : vector<8x32xf32>, vector<8x32xf32> -> vector<8x64xf32>
    %224 = arith.mulf %217, %186 : vector<8x64xf32>
    %225 = arith.mulf %214, %220 : vector<8x64xf32>
    %226 = arith.addf %224, %225 : vector<8x64xf32>
    %227 = math.tanh %226 : vector<8x64xf32>
    %228 = arith.mulf %223, %227 : vector<8x64xf32>
    %229 = vector.extract_strided_slice %228 {offsets = [0, 0], sizes = [8, 32], strides = [1, 1]} : vector<8x64xf32> to vector<8x32xf32>
    %c32_69 = arith.constant 32 : index
    %c0_70 = arith.constant 0 : index
    %230 = vector.load %arg14[%c32_69, %c0_70] : memref<64x64xf32, #tpu.memory_space<vmem>>, vector<8x32xf32>
    tpu.vector_store %arg14[%c32_69, %c0_70], %229 {strides = array<i32>} : memref<64x64xf32, #tpu.memory_space<vmem>>, vector<8x32xf32>,
    %231 = vector.extract_strided_slice %228 {offsets = [0, 32], sizes = [8, 32], strides = [1, 1]} : vector<8x64xf32> to vector<8x32xf32>
    %c24_71 = arith.constant 24 : index
    %c32_72 = arith.constant 32 : index
    %232 = vector.load %arg14[%c24_71, %c32_72] : memref<64x64xf32, #tpu.memory_space<vmem>>, vector<8x32xf32>
    tpu.vector_store %arg14[%c24_71, %c32_72], %231 {strides = array<i32>} : memref<64x64xf32, #tpu.memory_space<vmem>>, vector<8x32xf32>,
    %c40_73 = arith.constant 40 : index
    %c0_74 = arith.constant 0 : index
    %233 = vector.load %arg13[%c40_73, %c0_74] : memref<64x256xf32, #tpu.memory_space<vmem>>, vector<8x128xf32>
    %c16_75 = arith.constant 16 : index
    %c128_76 = arith.constant 128 : index
    %234 = vector.load %arg13[%c16_75, %c128_76] : memref<64x256xf32, #tpu.memory_space<vmem>>, vector<8x128xf32>
    %235 = arith.truncf %228 : vector<8x64xf32> to vector<8x64xbf16>
    %cst_77 = arith.constant dense<0.000000e+00> : vector<8x256xf32>
    %236 = tpu.matmul %235, %30, %cst_77 {dimension_numbers = #tpu.dot_dimension_numbers<[1], [0], [0], [1], [0, 0, 1, 1], [], []>} : vector<8x64xbf16>, vector<64x256xbf16>, vector<8x256xf32> -> vector<8x256xf32>
    %237 = tpu.concatenate %233, %234 in 1 : vector<8x128xf32>, vector<8x128xf32> -> vector<8x256xf32>
    %238 = arith.addf %237, %236 : vector<8x256xf32>
    %cst_78 = arith.constant 2.000000e+00 : f32
    %239 = vector.broadcast %cst_78 : f32 to vector<8x256xf32>
    %240 = arith.mulf %239, %238 : vector<8x256xf32>
    %241 = arith.select %29, %240, %238 : vector<8x256xi1>, vector<8x256xf32>
    %242 = arith.negf %241 : vector<8x256xf32>
    %243 = math.exp %242 : vector<8x256xf32>
    %cst_79 = arith.constant 1.000000e+00 : f32
    %244 = vector.broadcast %cst_79 : f32 to vector<8x256xf32>
    %245 = arith.addf %244, %243 : vector<8x256xf32>
    %246 = arith.divf %244, %245 : vector<8x256xf32>
    %cst_80 = arith.constant 2.000000e+00 : f32
    %247 = vector.broadcast %cst_80 : f32 to vector<8x256xf32>
    %248 = arith.mulf %247, %246 : vector<8x256xf32>
    %cst_81 = arith.constant 1.000000e+00 : f32
    %249 = vector.broadcast %cst_81 : f32 to vector<8x256xf32>
    %250 = arith.subf %248, %249 : vector<8x256xf32>
    %251 = arith.select %29, %250, %246 : vector<8x256xi1>, vector<8x256xf32>
    %252 = vector.extract_strided_slice %251 {offsets = [0, 0], sizes = [8, 32], strides = [1, 1]} : vector<8x256xf32> to vector<8x32xf32>
    %253 = vector.extract_strided_slice %251 {offsets = [0, 128], sizes = [8, 32], strides = [1, 1]} : vector<8x256xf32> to vector<8x32xf32>
    %254 = tpu.concatenate %252, %253 in 1 : vector<8x32xf32>, vector<8x32xf32> -> vector<8x64xf32>
    %255 = vector.extract_strided_slice %251 {offsets = [0, 32], sizes = [8, 32], strides = [1, 1]} : vector<8x256xf32> to vector<8x32xf32>
    %256 = vector.extract_strided_slice %251 {offsets = [0, 160], sizes = [8, 32], strides = [1, 1]} : vector<8x256xf32> to vector<8x32xf32>
    %257 = tpu.concatenate %255, %256 in 1 : vector<8x32xf32>, vector<8x32xf32> -> vector<8x64xf32>
    %258 = vector.extract_strided_slice %251 {offsets = [0, 64], sizes = [8, 32], strides = [1, 1]} : vector<8x256xf32> to vector<8x32xf32>
    %259 = vector.extract_strided_slice %251 {offsets = [0, 192], sizes = [8, 32], strides = [1, 1]} : vector<8x256xf32> to vector<8x32xf32>
    %260 = tpu.concatenate %258, %259 in 1 : vector<8x32xf32>, vector<8x32xf32> -> vector<8x64xf32>
    %261 = vector.extract_strided_slice %251 {offsets = [0, 96], sizes = [8, 32], strides = [1, 1]} : vector<8x256xf32> to vector<8x32xf32>
    %262 = vector.extract_strided_slice %251 {offsets = [0, 224], sizes = [8, 32], strides = [1, 1]} : vector<8x256xf32> to vector<8x32xf32>
    %263 = tpu.concatenate %261, %262 in 1 : vector<8x32xf32>, vector<8x32xf32> -> vector<8x64xf32>
    %264 = arith.mulf %257, %226 : vector<8x64xf32>
    %265 = arith.mulf %254, %260 : vector<8x64xf32>
    %266 = arith.addf %264, %265 : vector<8x64xf32>
    %267 = math.tanh %266 : vector<8x64xf32>
    %268 = arith.mulf %263, %267 : vector<8x64xf32>
    %269 = vector.extract_strided_slice %268 {offsets = [0, 0], sizes = [8, 32], strides = [1, 1]} : vector<8x64xf32> to vector<8x32xf32>
    %c40_82 = arith.constant 40 : index
    %c0_83 = arith.constant 0 : index
    %270 = vector.load %arg14[%c40_82, %c0_83] : memref<64x64xf32, #tpu.memory_space<vmem>>, vector<8x32xf32>
    tpu.vector_store %arg14[%c40_82, %c0_83], %269 {strides = array<i32>} : memref<64x64xf32, #tpu.memory_space<vmem>>, vector<8x32xf32>,
    %271 = vector.extract_strided_slice %268 {offsets = [0, 32], sizes = [8, 32], strides = [1, 1]} : vector<8x64xf32> to vector<8x32xf32>
    %c16_84 = arith.constant 16 : index
    %c32_85 = arith.constant 32 : index
    %272 = vector.load %arg14[%c16_84, %c32_85] : memref<64x64xf32, #tpu.memory_space<vmem>>, vector<8x32xf32>
    tpu.vector_store %arg14[%c16_84, %c32_85], %271 {strides = array<i32>} : memref<64x64xf32, #tpu.memory_space<vmem>>, vector<8x32xf32>,
    %c48_86 = arith.constant 48 : index
    %c0_87 = arith.constant 0 : index
    %273 = vector.load %arg13[%c48_86, %c0_87] : memref<64x256xf32, #tpu.memory_space<vmem>>, vector<8x128xf32>
    %c8_88 = arith.constant 8 : index
    %c128_89 = arith.constant 128 : index
    %274 = vector.load %arg13[%c8_88, %c128_89] : memref<64x256xf32, #tpu.memory_space<vmem>>, vector<8x128xf32>
    %275 = arith.truncf %268 : vector<8x64xf32> to vector<8x64xbf16>
    %cst_90 = arith.constant dense<0.000000e+00> : vector<8x256xf32>
    %276 = tpu.matmul %275, %30, %cst_90 {dimension_numbers = #tpu.dot_dimension_numbers<[1], [0], [0], [1], [0, 0, 1, 1], [], []>} : vector<8x64xbf16>, vector<64x256xbf16>, vector<8x256xf32> -> vector<8x256xf32>
    %277 = tpu.concatenate %273, %274 in 1 : vector<8x128xf32>, vector<8x128xf32> -> vector<8x256xf32>
    %278 = arith.addf %277, %276 : vector<8x256xf32>
    %cst_91 = arith.constant 2.000000e+00 : f32
    %279 = vector.broadcast %cst_91 : f32 to vector<8x256xf32>
    %280 = arith.mulf %279, %278 : vector<8x256xf32>
    %281 = arith.select %29, %280, %278 : vector<8x256xi1>, vector<8x256xf32>
    %282 = arith.negf %281 : vector<8x256xf32>
    %283 = math.exp %282 : vector<8x256xf32>
    %cst_92 = arith.constant 1.000000e+00 : f32
    %284 = vector.broadcast %cst_92 : f32 to vector<8x256xf32>
    %285 = arith.addf %284, %283 : vector<8x256xf32>
    %286 = arith.divf %284, %285 : vector<8x256xf32>
    %cst_93 = arith.constant 2.000000e+00 : f32
    %287 = vector.broadcast %cst_93 : f32 to vector<8x256xf32>
    %288 = arith.mulf %287, %286 : vector<8x256xf32>
    %cst_94 = arith.constant 1.000000e+00 : f32
    %289 = vector.broadcast %cst_94 : f32 to vector<8x256xf32>
    %290 = arith.subf %288, %289 : vector<8x256xf32>
    %291 = arith.select %29, %290, %286 : vector<8x256xi1>, vector<8x256xf32>
    %292 = vector.extract_strided_slice %291 {offsets = [0, 0], sizes = [8, 32], strides = [1, 1]} : vector<8x256xf32> to vector<8x32xf32>
    %293 = vector.extract_strided_slice %291 {offsets = [0, 128], sizes = [8, 32], strides = [1, 1]} : vector<8x256xf32> to vector<8x32xf32>
    %294 = tpu.concatenate %292, %293 in 1 : vector<8x32xf32>, vector<8x32xf32> -> vector<8x64xf32>
    %295 = vector.extract_strided_slice %291 {offsets = [0, 32], sizes = [8, 32], strides = [1, 1]} : vector<8x256xf32> to vector<8x32xf32>
    %296 = vector.extract_strided_slice %291 {offsets = [0, 160], sizes = [8, 32], strides = [1, 1]} : vector<8x256xf32> to vector<8x32xf32>
    %297 = tpu.concatenate %295, %296 in 1 : vector<8x32xf32>, vector<8x32xf32> -> vector<8x64xf32>
    %298 = vector.extract_strided_slice %291 {offsets = [0, 64], sizes = [8, 32], strides = [1, 1]} : vector<8x256xf32> to vector<8x32xf32>
    %299 = vector.extract_strided_slice %291 {offsets = [0, 192], sizes = [8, 32], strides = [1, 1]} : vector<8x256xf32> to vector<8x32xf32>
    %300 = tpu.concatenate %298, %299 in 1 : vector<8x32xf32>, vector<8x32xf32> -> vector<8x64xf32>
    %301 = vector.extract_strided_slice %291 {offsets = [0, 96], sizes = [8, 32], strides = [1, 1]} : vector<8x256xf32> to vector<8x32xf32>
    %302 = vector.extract_strided_slice %291 {offsets = [0, 224], sizes = [8, 32], strides = [1, 1]} : vector<8x256xf32> to vector<8x32xf32>
    %303 = tpu.concatenate %301, %302 in 1 : vector<8x32xf32>, vector<8x32xf32> -> vector<8x64xf32>
    %304 = arith.mulf %297, %266 : vector<8x64xf32>
    %305 = arith.mulf %294, %300 : vector<8x64xf32>
    %306 = arith.addf %304, %305 : vector<8x64xf32>
    %307 = math.tanh %306 : vector<8x64xf32>
    %308 = arith.mulf %303, %307 : vector<8x64xf32>
    %309 = vector.extract_strided_slice %308 {offsets = [0, 0], sizes = [8, 32], strides = [1, 1]} : vector<8x64xf32> to vector<8x32xf32>
    %c48_95 = arith.constant 48 : index
    %c0_96 = arith.constant 0 : index
    %310 = vector.load %arg14[%c48_95, %c0_96] : memref<64x64xf32, #tpu.memory_space<vmem>>, vector<8x32xf32>
    tpu.vector_store %arg14[%c48_95, %c0_96], %309 {strides = array<i32>} : memref<64x64xf32, #tpu.memory_space<vmem>>, vector<8x32xf32>,
    %311 = vector.extract_strided_slice %308 {offsets = [0, 32], sizes = [8, 32], strides = [1, 1]} : vector<8x64xf32> to vector<8x32xf32>
    %c8_97 = arith.constant 8 : index
    %c32_98 = arith.constant 32 : index
    %312 = vector.load %arg14[%c8_97, %c32_98] : memref<64x64xf32, #tpu.memory_space<vmem>>, vector<8x32xf32>
    tpu.vector_store %arg14[%c8_97, %c32_98], %311 {strides = array<i32>} : memref<64x64xf32, #tpu.memory_space<vmem>>, vector<8x32xf32>,
    %c56_99 = arith.constant 56 : index
    %c0_100 = arith.constant 0 : index
    %313 = vector.load %arg13[%c56_99, %c0_100] : memref<64x256xf32, #tpu.memory_space<vmem>>, vector<8x128xf32>
    %c0_101 = arith.constant 0 : index
    %c128_102 = arith.constant 128 : index
    %314 = vector.load %arg13[%c0_101, %c128_102] : memref<64x256xf32, #tpu.memory_space<vmem>>, vector<8x128xf32>
    %315 = arith.truncf %308 : vector<8x64xf32> to vector<8x64xbf16>
    %cst_103 = arith.constant dense<0.000000e+00> : vector<8x256xf32>
    %316 = tpu.matmul %315, %30, %cst_103 {dimension_numbers = #tpu.dot_dimension_numbers<[1], [0], [0], [1], [0, 0, 1, 1], [], []>} : vector<8x64xbf16>, vector<64x256xbf16>, vector<8x256xf32> -> vector<8x256xf32>
    %317 = tpu.concatenate %313, %314 in 1 : vector<8x128xf32>, vector<8x128xf32> -> vector<8x256xf32>
    %318 = arith.addf %317, %316 : vector<8x256xf32>
    %cst_104 = arith.constant 2.000000e+00 : f32
    %319 = vector.broadcast %cst_104 : f32 to vector<8x256xf32>
    %320 = arith.mulf %319, %318 : vector<8x256xf32>
    %321 = arith.select %29, %320, %318 : vector<8x256xi1>, vector<8x256xf32>
    %322 = arith.negf %321 : vector<8x256xf32>
    %323 = math.exp %322 : vector<8x256xf32>
    %cst_105 = arith.constant 1.000000e+00 : f32
    %324 = vector.broadcast %cst_105 : f32 to vector<8x256xf32>
    %325 = arith.addf %324, %323 : vector<8x256xf32>
    %326 = arith.divf %324, %325 : vector<8x256xf32>
    %cst_106 = arith.constant 2.000000e+00 : f32
    %327 = vector.broadcast %cst_106 : f32 to vector<8x256xf32>
    %328 = arith.mulf %327, %326 : vector<8x256xf32>
    %cst_107 = arith.constant 1.000000e+00 : f32
    %329 = vector.broadcast %cst_107 : f32 to vector<8x256xf32>
    %330 = arith.subf %328, %329 : vector<8x256xf32>
    %331 = arith.select %29, %330, %326 : vector<8x256xi1>, vector<8x256xf32>
    %332 = vector.extract_strided_slice %331 {offsets = [0, 0], sizes = [8, 32], strides = [1, 1]} : vector<8x256xf32> to vector<8x32xf32>
    %333 = vector.extract_strided_slice %331 {offsets = [0, 128], sizes = [8, 32], strides = [1, 1]} : vector<8x256xf32> to vector<8x32xf32>
    %334 = tpu.concatenate %332, %333 in 1 : vector<8x32xf32>, vector<8x32xf32> -> vector<8x64xf32>
    %335 = vector.extract_strided_slice %331 {offsets = [0, 32], sizes = [8, 32], strides = [1, 1]} : vector<8x256xf32> to vector<8x32xf32>
    %336 = vector.extract_strided_slice %331 {offsets = [0, 160], sizes = [8, 32], strides = [1, 1]} : vector<8x256xf32> to vector<8x32xf32>
    %337 = tpu.concatenate %335, %336 in 1 : vector<8x32xf32>, vector<8x32xf32> -> vector<8x64xf32>
    %338 = vector.extract_strided_slice %331 {offsets = [0, 64], sizes = [8, 32], strides = [1, 1]} : vector<8x256xf32> to vector<8x32xf32>
    %339 = vector.extract_strided_slice %331 {offsets = [0, 192], sizes = [8, 32], strides = [1, 1]} : vector<8x256xf32> to vector<8x32xf32>
    %340 = tpu.concatenate %338, %339 in 1 : vector<8x32xf32>, vector<8x32xf32> -> vector<8x64xf32>
    %341 = vector.extract_strided_slice %331 {offsets = [0, 96], sizes = [8, 32], strides = [1, 1]} : vector<8x256xf32> to vector<8x32xf32>
    %342 = vector.extract_strided_slice %331 {offsets = [0, 224], sizes = [8, 32], strides = [1, 1]} : vector<8x256xf32> to vector<8x32xf32>
    %343 = tpu.concatenate %341, %342 in 1 : vector<8x32xf32>, vector<8x32xf32> -> vector<8x64xf32>
    %344 = arith.mulf %337, %306 : vector<8x64xf32>
    %345 = arith.mulf %334, %340 : vector<8x64xf32>
    %346 = arith.addf %344, %345 : vector<8x64xf32>
    %347 = math.tanh %346 : vector<8x64xf32>
    %348 = arith.mulf %343, %347 : vector<8x64xf32>
    %349 = vector.extract_strided_slice %348 {offsets = [0, 0], sizes = [8, 32], strides = [1, 1]} : vector<8x64xf32> to vector<8x32xf32>
    %c56_108 = arith.constant 56 : index
    %c0_109 = arith.constant 0 : index
    %350 = vector.load %arg14[%c56_108, %c0_109] : memref<64x64xf32, #tpu.memory_space<vmem>>, vector<8x32xf32>
    tpu.vector_store %arg14[%c56_108, %c0_109], %349 {strides = array<i32>} : memref<64x64xf32, #tpu.memory_space<vmem>>, vector<8x32xf32>,
    %351 = vector.extract_strided_slice %348 {offsets = [0, 32], sizes = [8, 32], strides = [1, 1]} : vector<8x64xf32> to vector<8x32xf32>
    %c0_110 = arith.constant 0 : index
    %c32_111 = arith.constant 32 : index
    %352 = vector.load %arg14[%c0_110, %c32_111] : memref<64x64xf32, #tpu.memory_space<vmem>>, vector<8x32xf32>
    tpu.vector_store %arg14[%c0_110, %c32_111], %351 {strides = array<i32>} : memref<64x64xf32, #tpu.memory_space<vmem>>, vector<8x32xf32>,
    %c0_112 = arith.constant 0 : index
    %c0_113 = arith.constant 0 : index
    %353 = vector.load %arg14[%c0_112, %c0_113] : memref<64x64xf32, #tpu.memory_space<vmem>>, vector<64x64xf32>
    %354 = arith.truncf %353 : vector<64x64xf32> to vector<64x64xbf16>
    %c0_114 = arith.constant 0 : index
    %c0_115 = arith.constant 0 : index
    %355 = vector.load %arg7[%c0_114, %c0_115] : memref<64x256xbf16, #tpu.memory_space<vmem>>, vector<64x256xbf16>
    %cst_116 = arith.constant dense<0.000000e+00> : vector<64x256xf32>
    %356 = tpu.matmul %354, %355, %cst_116 {dimension_numbers = #tpu.dot_dimension_numbers<[1], [0], [0], [1], [0, 0, 1, 1], [], []>} : vector<64x64xbf16>, vector<64x256xbf16>, vector<64x256xf32> -> vector<64x256xf32>
    %c0_117 = arith.constant 0 : index
    %c0_118 = arith.constant 0 : index
    %357 = vector.load %arg8[%c0_117, %c0_118] : memref<1x256xf32, #tpu.memory_space<vmem>>, vector<1x256xf32>
    %358 = vector.broadcast %357 : vector<1x256xf32> to vector<64x256xf32>
    %359 = arith.addf %356, %358 : vector<64x256xf32>
    %c0_119 = arith.constant 0 : index
    %c0_120 = arith.constant 0 : index
    %360 = vector.load %arg13[%c0_119, %c0_120] : memref<64x256xf32, #tpu.memory_space<vmem>>, vector<64x256xf32>
    tpu.vector_store %arg13[%c0_119, %c0_120], %359 {strides = array<i32>} : memref<64x256xf32, #tpu.memory_space<vmem>>, vector<64x256xf32>,
    %c0_121 = arith.constant 0 : index
    %c0_122 = arith.constant 0 : index
    %361 = vector.load %arg9[%c0_121, %c0_122] : memref<64x256xbf16, #tpu.memory_space<vmem>>, vector<64x256xbf16>
    %cst_123 = arith.constant 0.000000e+00 : f32
    %362 = vector.broadcast %cst_123 : f32 to vector<8x64xf32>
    %cst_124 = arith.constant 0.000000e+00 : f32
    %363 = vector.broadcast %cst_124 : f32 to vector<8x64xf32>
    %c0_125 = arith.constant 0 : index
    %c0_126 = arith.constant 0 : index
    %364 = vector.load %arg13[%c0_125, %c0_126] : memref<64x256xf32, #tpu.memory_space<vmem>>, vector<8x128xf32>
    %c56_127 = arith.constant 56 : index
    %c128_128 = arith.constant 128 : index
    %365 = vector.load %arg13[%c56_127, %c128_128] : memref<64x256xf32, #tpu.memory_space<vmem>>, vector<8x128xf32>
    %366 = arith.truncf %362 : vector<8x64xf32> to vector<8x64xbf16>
    %cst_129 = arith.constant dense<0.000000e+00> : vector<8x256xf32>
    %367 = tpu.matmul %366, %361, %cst_129 {dimension_numbers = #tpu.dot_dimension_numbers<[1], [0], [0], [1], [0, 0, 1, 1], [], []>} : vector<8x64xbf16>, vector<64x256xbf16>, vector<8x256xf32> -> vector<8x256xf32>
    %368 = tpu.concatenate %364, %365 in 1 : vector<8x128xf32>, vector<8x128xf32> -> vector<8x256xf32>
    %369 = arith.addf %368, %367 : vector<8x256xf32>
    %cst_130 = arith.constant 2.000000e+00 : f32
    %370 = vector.broadcast %cst_130 : f32 to vector<8x256xf32>
    %371 = arith.mulf %370, %369 : vector<8x256xf32>
    %372 = arith.select %29, %371, %369 : vector<8x256xi1>, vector<8x256xf32>
    %373 = arith.negf %372 : vector<8x256xf32>
    %374 = math.exp %373 : vector<8x256xf32>
    %cst_131 = arith.constant 1.000000e+00 : f32
    %375 = vector.broadcast %cst_131 : f32 to vector<8x256xf32>
    %376 = arith.addf %375, %374 : vector<8x256xf32>
    %377 = arith.divf %375, %376 : vector<8x256xf32>
    %cst_132 = arith.constant 2.000000e+00 : f32
    %378 = vector.broadcast %cst_132 : f32 to vector<8x256xf32>
    %379 = arith.mulf %378, %377 : vector<8x256xf32>
    %cst_133 = arith.constant 1.000000e+00 : f32
    %380 = vector.broadcast %cst_133 : f32 to vector<8x256xf32>
    %381 = arith.subf %379, %380 : vector<8x256xf32>
    %382 = arith.select %29, %381, %377 : vector<8x256xi1>, vector<8x256xf32>
    %383 = vector.extract_strided_slice %382 {offsets = [0, 0], sizes = [8, 32], strides = [1, 1]} : vector<8x256xf32> to vector<8x32xf32>
    %384 = vector.extract_strided_slice %382 {offsets = [0, 128], sizes = [8, 32], strides = [1, 1]} : vector<8x256xf32> to vector<8x32xf32>
    %385 = tpu.concatenate %383, %384 in 1 : vector<8x32xf32>, vector<8x32xf32> -> vector<8x64xf32>
    %386 = vector.extract_strided_slice %382 {offsets = [0, 32], sizes = [8, 32], strides = [1, 1]} : vector<8x256xf32> to vector<8x32xf32>
    %387 = vector.extract_strided_slice %382 {offsets = [0, 160], sizes = [8, 32], strides = [1, 1]} : vector<8x256xf32> to vector<8x32xf32>
    %388 = tpu.concatenate %386, %387 in 1 : vector<8x32xf32>, vector<8x32xf32> -> vector<8x64xf32>
    %389 = vector.extract_strided_slice %382 {offsets = [0, 64], sizes = [8, 32], strides = [1, 1]} : vector<8x256xf32> to vector<8x32xf32>
    %390 = vector.extract_strided_slice %382 {offsets = [0, 192], sizes = [8, 32], strides = [1, 1]} : vector<8x256xf32> to vector<8x32xf32>
    %391 = tpu.concatenate %389, %390 in 1 : vector<8x32xf32>, vector<8x32xf32> -> vector<8x64xf32>
    %392 = vector.extract_strided_slice %382 {offsets = [0, 96], sizes = [8, 32], strides = [1, 1]} : vector<8x256xf32> to vector<8x32xf32>
    %393 = vector.extract_strided_slice %382 {offsets = [0, 224], sizes = [8, 32], strides = [1, 1]} : vector<8x256xf32> to vector<8x32xf32>
    %394 = tpu.concatenate %392, %393 in 1 : vector<8x32xf32>, vector<8x32xf32> -> vector<8x64xf32>
    %395 = arith.mulf %388, %363 : vector<8x64xf32>
    %396 = arith.mulf %385, %391 : vector<8x64xf32>
    %397 = arith.addf %395, %396 : vector<8x64xf32>
    %398 = math.tanh %397 : vector<8x64xf32>
    %399 = arith.mulf %394, %398 : vector<8x64xf32>
    %400 = vector.extract_strided_slice %399 {offsets = [0, 0], sizes = [8, 32], strides = [1, 1]} : vector<8x64xf32> to vector<8x32xf32>
    %c0_134 = arith.constant 0 : index
    %c0_135 = arith.constant 0 : index
    %401 = vector.load %arg14[%c0_134, %c0_135] : memref<64x64xf32, #tpu.memory_space<vmem>>, vector<8x32xf32>
    tpu.vector_store %arg14[%c0_134, %c0_135], %400 {strides = array<i32>} : memref<64x64xf32, #tpu.memory_space<vmem>>, vector<8x32xf32>,
    %402 = vector.extract_strided_slice %399 {offsets = [0, 32], sizes = [8, 32], strides = [1, 1]} : vector<8x64xf32> to vector<8x32xf32>
    %c56_136 = arith.constant 56 : index
    %c32_137 = arith.constant 32 : index
    %403 = vector.load %arg14[%c56_136, %c32_137] : memref<64x64xf32, #tpu.memory_space<vmem>>, vector<8x32xf32>
    tpu.vector_store %arg14[%c56_136, %c32_137], %402 {strides = array<i32>} : memref<64x64xf32, #tpu.memory_space<vmem>>, vector<8x32xf32>,
    %c8_138 = arith.constant 8 : index
    %c0_139 = arith.constant 0 : index
    %404 = vector.load %arg13[%c8_138, %c0_139] : memref<64x256xf32, #tpu.memory_space<vmem>>, vector<8x128xf32>
    %c48_140 = arith.constant 48 : index
    %c128_141 = arith.constant 128 : index
    %405 = vector.load %arg13[%c48_140, %c128_141] : memref<64x256xf32, #tpu.memory_space<vmem>>, vector<8x128xf32>
    %406 = arith.truncf %399 : vector<8x64xf32> to vector<8x64xbf16>
    %cst_142 = arith.constant dense<0.000000e+00> : vector<8x256xf32>
    %407 = tpu.matmul %406, %361, %cst_142 {dimension_numbers = #tpu.dot_dimension_numbers<[1], [0], [0], [1], [0, 0, 1, 1], [], []>} : vector<8x64xbf16>, vector<64x256xbf16>, vector<8x256xf32> -> vector<8x256xf32>
    %408 = tpu.concatenate %404, %405 in 1 : vector<8x128xf32>, vector<8x128xf32> -> vector<8x256xf32>
    %409 = arith.addf %408, %407 : vector<8x256xf32>
    %cst_143 = arith.constant 2.000000e+00 : f32
    %410 = vector.broadcast %cst_143 : f32 to vector<8x256xf32>
    %411 = arith.mulf %410, %409 : vector<8x256xf32>
    %412 = arith.select %29, %411, %409 : vector<8x256xi1>, vector<8x256xf32>
    %413 = arith.negf %412 : vector<8x256xf32>
    %414 = math.exp %413 : vector<8x256xf32>
    %cst_144 = arith.constant 1.000000e+00 : f32
    %415 = vector.broadcast %cst_144 : f32 to vector<8x256xf32>
    %416 = arith.addf %415, %414 : vector<8x256xf32>
    %417 = arith.divf %415, %416 : vector<8x256xf32>
    %cst_145 = arith.constant 2.000000e+00 : f32
    %418 = vector.broadcast %cst_145 : f32 to vector<8x256xf32>
    %419 = arith.mulf %418, %417 : vector<8x256xf32>
    %cst_146 = arith.constant 1.000000e+00 : f32
    %420 = vector.broadcast %cst_146 : f32 to vector<8x256xf32>
    %421 = arith.subf %419, %420 : vector<8x256xf32>
    %422 = arith.select %29, %421, %417 : vector<8x256xi1>, vector<8x256xf32>
    %423 = vector.extract_strided_slice %422 {offsets = [0, 0], sizes = [8, 32], strides = [1, 1]} : vector<8x256xf32> to vector<8x32xf32>
    %424 = vector.extract_strided_slice %422 {offsets = [0, 128], sizes = [8, 32], strides = [1, 1]} : vector<8x256xf32> to vector<8x32xf32>
    %425 = tpu.concatenate %423, %424 in 1 : vector<8x32xf32>, vector<8x32xf32> -> vector<8x64xf32>
    %426 = vector.extract_strided_slice %422 {offsets = [0, 32], sizes = [8, 32], strides = [1, 1]} : vector<8x256xf32> to vector<8x32xf32>
    %427 = vector.extract_strided_slice %422 {offsets = [0, 160], sizes = [8, 32], strides = [1, 1]} : vector<8x256xf32> to vector<8x32xf32>
    %428 = tpu.concatenate %426, %427 in 1 : vector<8x32xf32>, vector<8x32xf32> -> vector<8x64xf32>
    %429 = vector.extract_strided_slice %422 {offsets = [0, 64], sizes = [8, 32], strides = [1, 1]} : vector<8x256xf32> to vector<8x32xf32>
    %430 = vector.extract_strided_slice %422 {offsets = [0, 192], sizes = [8, 32], strides = [1, 1]} : vector<8x256xf32> to vector<8x32xf32>
    %431 = tpu.concatenate %429, %430 in 1 : vector<8x32xf32>, vector<8x32xf32> -> vector<8x64xf32>
    %432 = vector.extract_strided_slice %422 {offsets = [0, 96], sizes = [8, 32], strides = [1, 1]} : vector<8x256xf32> to vector<8x32xf32>
    %433 = vector.extract_strided_slice %422 {offsets = [0, 224], sizes = [8, 32], strides = [1, 1]} : vector<8x256xf32> to vector<8x32xf32>
    %434 = tpu.concatenate %432, %433 in 1 : vector<8x32xf32>, vector<8x32xf32> -> vector<8x64xf32>
    %435 = arith.mulf %428, %397 : vector<8x64xf32>
    %436 = arith.mulf %425, %431 : vector<8x64xf32>
    %437 = arith.addf %435, %436 : vector<8x64xf32>
    %438 = math.tanh %437 : vector<8x64xf32>
    %439 = arith.mulf %434, %438 : vector<8x64xf32>
    %440 = vector.extract_strided_slice %439 {offsets = [0, 0], sizes = [8, 32], strides = [1, 1]} : vector<8x64xf32> to vector<8x32xf32>
    %c8_147 = arith.constant 8 : index
    %c0_148 = arith.constant 0 : index
    %441 = vector.load %arg14[%c8_147, %c0_148] : memref<64x64xf32, #tpu.memory_space<vmem>>, vector<8x32xf32>
    tpu.vector_store %arg14[%c8_147, %c0_148], %440 {strides = array<i32>} : memref<64x64xf32, #tpu.memory_space<vmem>>, vector<8x32xf32>,
    %442 = vector.extract_strided_slice %439 {offsets = [0, 32], sizes = [8, 32], strides = [1, 1]} : vector<8x64xf32> to vector<8x32xf32>
    %c48_149 = arith.constant 48 : index
    %c32_150 = arith.constant 32 : index
    %443 = vector.load %arg14[%c48_149, %c32_150] : memref<64x64xf32, #tpu.memory_space<vmem>>, vector<8x32xf32>
    tpu.vector_store %arg14[%c48_149, %c32_150], %442 {strides = array<i32>} : memref<64x64xf32, #tpu.memory_space<vmem>>, vector<8x32xf32>,
    %c16_151 = arith.constant 16 : index
    %c0_152 = arith.constant 0 : index
    %444 = vector.load %arg13[%c16_151, %c0_152] : memref<64x256xf32, #tpu.memory_space<vmem>>, vector<8x128xf32>
    %c40_153 = arith.constant 40 : index
    %c128_154 = arith.constant 128 : index
    %445 = vector.load %arg13[%c40_153, %c128_154] : memref<64x256xf32, #tpu.memory_space<vmem>>, vector<8x128xf32>
    %446 = arith.truncf %439 : vector<8x64xf32> to vector<8x64xbf16>
    %cst_155 = arith.constant dense<0.000000e+00> : vector<8x256xf32>
    %447 = tpu.matmul %446, %361, %cst_155 {dimension_numbers = #tpu.dot_dimension_numbers<[1], [0], [0], [1], [0, 0, 1, 1], [], []>} : vector<8x64xbf16>, vector<64x256xbf16>, vector<8x256xf32> -> vector<8x256xf32>
    %448 = tpu.concatenate %444, %445 in 1 : vector<8x128xf32>, vector<8x128xf32> -> vector<8x256xf32>
    %449 = arith.addf %448, %447 : vector<8x256xf32>
    %cst_156 = arith.constant 2.000000e+00 : f32
    %450 = vector.broadcast %cst_156 : f32 to vector<8x256xf32>
    %451 = arith.mulf %450, %449 : vector<8x256xf32>
    %452 = arith.select %29, %451, %449 : vector<8x256xi1>, vector<8x256xf32>
    %453 = arith.negf %452 : vector<8x256xf32>
    %454 = math.exp %453 : vector<8x256xf32>
    %cst_157 = arith.constant 1.000000e+00 : f32
    %455 = vector.broadcast %cst_157 : f32 to vector<8x256xf32>
    %456 = arith.addf %455, %454 : vector<8x256xf32>
    %457 = arith.divf %455, %456 : vector<8x256xf32>
    %cst_158 = arith.constant 2.000000e+00 : f32
    %458 = vector.broadcast %cst_158 : f32 to vector<8x256xf32>
    %459 = arith.mulf %458, %457 : vector<8x256xf32>
    %cst_159 = arith.constant 1.000000e+00 : f32
    %460 = vector.broadcast %cst_159 : f32 to vector<8x256xf32>
    %461 = arith.subf %459, %460 : vector<8x256xf32>
    %462 = arith.select %29, %461, %457 : vector<8x256xi1>, vector<8x256xf32>
    %463 = vector.extract_strided_slice %462 {offsets = [0, 0], sizes = [8, 32], strides = [1, 1]} : vector<8x256xf32> to vector<8x32xf32>
    %464 = vector.extract_strided_slice %462 {offsets = [0, 128], sizes = [8, 32], strides = [1, 1]} : vector<8x256xf32> to vector<8x32xf32>
    %465 = tpu.concatenate %463, %464 in 1 : vector<8x32xf32>, vector<8x32xf32> -> vector<8x64xf32>
    %466 = vector.extract_strided_slice %462 {offsets = [0, 32], sizes = [8, 32], strides = [1, 1]} : vector<8x256xf32> to vector<8x32xf32>
    %467 = vector.extract_strided_slice %462 {offsets = [0, 160], sizes = [8, 32], strides = [1, 1]} : vector<8x256xf32> to vector<8x32xf32>
    %468 = tpu.concatenate %466, %467 in 1 : vector<8x32xf32>, vector<8x32xf32> -> vector<8x64xf32>
    %469 = vector.extract_strided_slice %462 {offsets = [0, 64], sizes = [8, 32], strides = [1, 1]} : vector<8x256xf32> to vector<8x32xf32>
    %470 = vector.extract_strided_slice %462 {offsets = [0, 192], sizes = [8, 32], strides = [1, 1]} : vector<8x256xf32> to vector<8x32xf32>
    %471 = tpu.concatenate %469, %470 in 1 : vector<8x32xf32>, vector<8x32xf32> -> vector<8x64xf32>
    %472 = vector.extract_strided_slice %462 {offsets = [0, 96], sizes = [8, 32], strides = [1, 1]} : vector<8x256xf32> to vector<8x32xf32>
    %473 = vector.extract_strided_slice %462 {offsets = [0, 224], sizes = [8, 32], strides = [1, 1]} : vector<8x256xf32> to vector<8x32xf32>
    %474 = tpu.concatenate %472, %473 in 1 : vector<8x32xf32>, vector<8x32xf32> -> vector<8x64xf32>
    %475 = arith.mulf %468, %437 : vector<8x64xf32>
    %476 = arith.mulf %465, %471 : vector<8x64xf32>
    %477 = arith.addf %475, %476 : vector<8x64xf32>
    %478 = math.tanh %477 : vector<8x64xf32>
    %479 = arith.mulf %474, %478 : vector<8x64xf32>
    %480 = vector.extract_strided_slice %479 {offsets = [0, 0], sizes = [8, 32], strides = [1, 1]} : vector<8x64xf32> to vector<8x32xf32>
    %c16_160 = arith.constant 16 : index
    %c0_161 = arith.constant 0 : index
    %481 = vector.load %arg14[%c16_160, %c0_161] : memref<64x64xf32, #tpu.memory_space<vmem>>, vector<8x32xf32>
    tpu.vector_store %arg14[%c16_160, %c0_161], %480 {strides = array<i32>} : memref<64x64xf32, #tpu.memory_space<vmem>>, vector<8x32xf32>,
    %482 = vector.extract_strided_slice %479 {offsets = [0, 32], sizes = [8, 32], strides = [1, 1]} : vector<8x64xf32> to vector<8x32xf32>
    %c40_162 = arith.constant 40 : index
    %c32_163 = arith.constant 32 : index
    %483 = vector.load %arg14[%c40_162, %c32_163] : memref<64x64xf32, #tpu.memory_space<vmem>>, vector<8x32xf32>
    tpu.vector_store %arg14[%c40_162, %c32_163], %482 {strides = array<i32>} : memref<64x64xf32, #tpu.memory_space<vmem>>, vector<8x32xf32>,
    %c24_164 = arith.constant 24 : index
    %c0_165 = arith.constant 0 : index
    %484 = vector.load %arg13[%c24_164, %c0_165] : memref<64x256xf32, #tpu.memory_space<vmem>>, vector<8x128xf32>
    %c32_166 = arith.constant 32 : index
    %c128_167 = arith.constant 128 : index
    %485 = vector.load %arg13[%c32_166, %c128_167] : memref<64x256xf32, #tpu.memory_space<vmem>>, vector<8x128xf32>
    %486 = arith.truncf %479 : vector<8x64xf32> to vector<8x64xbf16>
    %cst_168 = arith.constant dense<0.000000e+00> : vector<8x256xf32>
    %487 = tpu.matmul %486, %361, %cst_168 {dimension_numbers = #tpu.dot_dimension_numbers<[1], [0], [0], [1], [0, 0, 1, 1], [], []>} : vector<8x64xbf16>, vector<64x256xbf16>, vector<8x256xf32> -> vector<8x256xf32>
    %488 = tpu.concatenate %484, %485 in 1 : vector<8x128xf32>, vector<8x128xf32> -> vector<8x256xf32>
    %489 = arith.addf %488, %487 : vector<8x256xf32>
    %cst_169 = arith.constant 2.000000e+00 : f32
    %490 = vector.broadcast %cst_169 : f32 to vector<8x256xf32>
    %491 = arith.mulf %490, %489 : vector<8x256xf32>
    %492 = arith.select %29, %491, %489 : vector<8x256xi1>, vector<8x256xf32>
    %493 = arith.negf %492 : vector<8x256xf32>
    %494 = math.exp %493 : vector<8x256xf32>
    %cst_170 = arith.constant 1.000000e+00 : f32
    %495 = vector.broadcast %cst_170 : f32 to vector<8x256xf32>
    %496 = arith.addf %495, %494 : vector<8x256xf32>
    %497 = arith.divf %495, %496 : vector<8x256xf32>
    %cst_171 = arith.constant 2.000000e+00 : f32
    %498 = vector.broadcast %cst_171 : f32 to vector<8x256xf32>
    %499 = arith.mulf %498, %497 : vector<8x256xf32>
    %cst_172 = arith.constant 1.000000e+00 : f32
    %500 = vector.broadcast %cst_172 : f32 to vector<8x256xf32>
    %501 = arith.subf %499, %500 : vector<8x256xf32>
    %502 = arith.select %29, %501, %497 : vector<8x256xi1>, vector<8x256xf32>
    %503 = vector.extract_strided_slice %502 {offsets = [0, 0], sizes = [8, 32], strides = [1, 1]} : vector<8x256xf32> to vector<8x32xf32>
    %504 = vector.extract_strided_slice %502 {offsets = [0, 128], sizes = [8, 32], strides = [1, 1]} : vector<8x256xf32> to vector<8x32xf32>
    %505 = tpu.concatenate %503, %504 in 1 : vector<8x32xf32>, vector<8x32xf32> -> vector<8x64xf32>
    %506 = vector.extract_strided_slice %502 {offsets = [0, 32], sizes = [8, 32], strides = [1, 1]} : vector<8x256xf32> to vector<8x32xf32>
    %507 = vector.extract_strided_slice %502 {offsets = [0, 160], sizes = [8, 32], strides = [1, 1]} : vector<8x256xf32> to vector<8x32xf32>
    %508 = tpu.concatenate %506, %507 in 1 : vector<8x32xf32>, vector<8x32xf32> -> vector<8x64xf32>
    %509 = vector.extract_strided_slice %502 {offsets = [0, 64], sizes = [8, 32], strides = [1, 1]} : vector<8x256xf32> to vector<8x32xf32>
    %510 = vector.extract_strided_slice %502 {offsets = [0, 192], sizes = [8, 32], strides = [1, 1]} : vector<8x256xf32> to vector<8x32xf32>
    %511 = tpu.concatenate %509, %510 in 1 : vector<8x32xf32>, vector<8x32xf32> -> vector<8x64xf32>
    %512 = vector.extract_strided_slice %502 {offsets = [0, 96], sizes = [8, 32], strides = [1, 1]} : vector<8x256xf32> to vector<8x32xf32>
    %513 = vector.extract_strided_slice %502 {offsets = [0, 224], sizes = [8, 32], strides = [1, 1]} : vector<8x256xf32> to vector<8x32xf32>
    %514 = tpu.concatenate %512, %513 in 1 : vector<8x32xf32>, vector<8x32xf32> -> vector<8x64xf32>
    %515 = arith.mulf %508, %477 : vector<8x64xf32>
    %516 = arith.mulf %505, %511 : vector<8x64xf32>
    %517 = arith.addf %515, %516 : vector<8x64xf32>
    %518 = math.tanh %517 : vector<8x64xf32>
    %519 = arith.mulf %514, %518 : vector<8x64xf32>
    %520 = vector.extract_strided_slice %519 {offsets = [0, 0], sizes = [8, 32], strides = [1, 1]} : vector<8x64xf32> to vector<8x32xf32>
    %c24_173 = arith.constant 24 : index
    %c0_174 = arith.constant 0 : index
    %521 = vector.load %arg14[%c24_173, %c0_174] : memref<64x64xf32, #tpu.memory_space<vmem>>, vector<8x32xf32>
    tpu.vector_store %arg14[%c24_173, %c0_174], %520 {strides = array<i32>} : memref<64x64xf32, #tpu.memory_space<vmem>>, vector<8x32xf32>,
    %522 = vector.extract_strided_slice %519 {offsets = [0, 32], sizes = [8, 32], strides = [1, 1]} : vector<8x64xf32> to vector<8x32xf32>
    %c32_175 = arith.constant 32 : index
    %c32_176 = arith.constant 32 : index
    %523 = vector.load %arg14[%c32_175, %c32_176] : memref<64x64xf32, #tpu.memory_space<vmem>>, vector<8x32xf32>
    tpu.vector_store %arg14[%c32_175, %c32_176], %522 {strides = array<i32>} : memref<64x64xf32, #tpu.memory_space<vmem>>, vector<8x32xf32>,
    %c32_177 = arith.constant 32 : index
    %c0_178 = arith.constant 0 : index
    %524 = vector.load %arg13[%c32_177, %c0_178] : memref<64x256xf32, #tpu.memory_space<vmem>>, vector<8x128xf32>
    %c24_179 = arith.constant 24 : index
    %c128_180 = arith.constant 128 : index
    %525 = vector.load %arg13[%c24_179, %c128_180] : memref<64x256xf32, #tpu.memory_space<vmem>>, vector<8x128xf32>
    %526 = arith.truncf %519 : vector<8x64xf32> to vector<8x64xbf16>
    %cst_181 = arith.constant dense<0.000000e+00> : vector<8x256xf32>
    %527 = tpu.matmul %526, %361, %cst_181 {dimension_numbers = #tpu.dot_dimension_numbers<[1], [0], [0], [1], [0, 0, 1, 1], [], []>} : vector<8x64xbf16>, vector<64x256xbf16>, vector<8x256xf32> -> vector<8x256xf32>
    %528 = tpu.concatenate %524, %525 in 1 : vector<8x128xf32>, vector<8x128xf32> -> vector<8x256xf32>
    %529 = arith.addf %528, %527 : vector<8x256xf32>
    %cst_182 = arith.constant 2.000000e+00 : f32
    %530 = vector.broadcast %cst_182 : f32 to vector<8x256xf32>
    %531 = arith.mulf %530, %529 : vector<8x256xf32>
    %532 = arith.select %29, %531, %529 : vector<8x256xi1>, vector<8x256xf32>
    %533 = arith.negf %532 : vector<8x256xf32>
    %534 = math.exp %533 : vector<8x256xf32>
    %cst_183 = arith.constant 1.000000e+00 : f32
    %535 = vector.broadcast %cst_183 : f32 to vector<8x256xf32>
    %536 = arith.addf %535, %534 : vector<8x256xf32>
    %537 = arith.divf %535, %536 : vector<8x256xf32>
    %cst_184 = arith.constant 2.000000e+00 : f32
    %538 = vector.broadcast %cst_184 : f32 to vector<8x256xf32>
    %539 = arith.mulf %538, %537 : vector<8x256xf32>
    %cst_185 = arith.constant 1.000000e+00 : f32
    %540 = vector.broadcast %cst_185 : f32 to vector<8x256xf32>
    %541 = arith.subf %539, %540 : vector<8x256xf32>
    %542 = arith.select %29, %541, %537 : vector<8x256xi1>, vector<8x256xf32>
    %543 = vector.extract_strided_slice %542 {offsets = [0, 0], sizes = [8, 32], strides = [1, 1]} : vector<8x256xf32> to vector<8x32xf32>
    %544 = vector.extract_strided_slice %542 {offsets = [0, 128], sizes = [8, 32], strides = [1, 1]} : vector<8x256xf32> to vector<8x32xf32>
    %545 = tpu.concatenate %543, %544 in 1 : vector<8x32xf32>, vector<8x32xf32> -> vector<8x64xf32>
    %546 = vector.extract_strided_slice %542 {offsets = [0, 32], sizes = [8, 32], strides = [1, 1]} : vector<8x256xf32> to vector<8x32xf32>
    %547 = vector.extract_strided_slice %542 {offsets = [0, 160], sizes = [8, 32], strides = [1, 1]} : vector<8x256xf32> to vector<8x32xf32>
    %548 = tpu.concatenate %546, %547 in 1 : vector<8x32xf32>, vector<8x32xf32> -> vector<8x64xf32>
    %549 = vector.extract_strided_slice %542 {offsets = [0, 64], sizes = [8, 32], strides = [1, 1]} : vector<8x256xf32> to vector<8x32xf32>
    %550 = vector.extract_strided_slice %542 {offsets = [0, 192], sizes = [8, 32], strides = [1, 1]} : vector<8x256xf32> to vector<8x32xf32>
    %551 = tpu.concatenate %549, %550 in 1 : vector<8x32xf32>, vector<8x32xf32> -> vector<8x64xf32>
    %552 = vector.extract_strided_slice %542 {offsets = [0, 96], sizes = [8, 32], strides = [1, 1]} : vector<8x256xf32> to vector<8x32xf32>
    %553 = vector.extract_strided_slice %542 {offsets = [0, 224], sizes = [8, 32], strides = [1, 1]} : vector<8x256xf32> to vector<8x32xf32>
    %554 = tpu.concatenate %552, %553 in 1 : vector<8x32xf32>, vector<8x32xf32> -> vector<8x64xf32>
    %555 = arith.mulf %548, %517 : vector<8x64xf32>
    %556 = arith.mulf %545, %551 : vector<8x64xf32>
    %557 = arith.addf %555, %556 : vector<8x64xf32>
    %558 = math.tanh %557 : vector<8x64xf32>
    %559 = arith.mulf %554, %558 : vector<8x64xf32>
    %560 = vector.extract_strided_slice %559 {offsets = [0, 0], sizes = [8, 32], strides = [1, 1]} : vector<8x64xf32> to vector<8x32xf32>
    %c32_186 = arith.constant 32 : index
    %c0_187 = arith.constant 0 : index
    %561 = vector.load %arg14[%c32_186, %c0_187] : memref<64x64xf32, #tpu.memory_space<vmem>>, vector<8x32xf32>
    tpu.vector_store %arg14[%c32_186, %c0_187], %560 {strides = array<i32>} : memref<64x64xf32, #tpu.memory_space<vmem>>, vector<8x32xf32>,
    %562 = vector.extract_strided_slice %559 {offsets = [0, 32], sizes = [8, 32], strides = [1, 1]} : vector<8x64xf32> to vector<8x32xf32>
    %c24_188 = arith.constant 24 : index
    %c32_189 = arith.constant 32 : index
    %563 = vector.load %arg14[%c24_188, %c32_189] : memref<64x64xf32, #tpu.memory_space<vmem>>, vector<8x32xf32>
    tpu.vector_store %arg14[%c24_188, %c32_189], %562 {strides = array<i32>} : memref<64x64xf32, #tpu.memory_space<vmem>>, vector<8x32xf32>,
    %c40_190 = arith.constant 40 : index
    %c0_191 = arith.constant 0 : index
    %564 = vector.load %arg13[%c40_190, %c0_191] : memref<64x256xf32, #tpu.memory_space<vmem>>, vector<8x128xf32>
    %c16_192 = arith.constant 16 : index
    %c128_193 = arith.constant 128 : index
    %565 = vector.load %arg13[%c16_192, %c128_193] : memref<64x256xf32, #tpu.memory_space<vmem>>, vector<8x128xf32>
    %566 = arith.truncf %559 : vector<8x64xf32> to vector<8x64xbf16>
    %cst_194 = arith.constant dense<0.000000e+00> : vector<8x256xf32>
    %567 = tpu.matmul %566, %361, %cst_194 {dimension_numbers = #tpu.dot_dimension_numbers<[1], [0], [0], [1], [0, 0, 1, 1], [], []>} : vector<8x64xbf16>, vector<64x256xbf16>, vector<8x256xf32> -> vector<8x256xf32>
    %568 = tpu.concatenate %564, %565 in 1 : vector<8x128xf32>, vector<8x128xf32> -> vector<8x256xf32>
    %569 = arith.addf %568, %567 : vector<8x256xf32>
    %cst_195 = arith.constant 2.000000e+00 : f32
    %570 = vector.broadcast %cst_195 : f32 to vector<8x256xf32>
    %571 = arith.mulf %570, %569 : vector<8x256xf32>
    %572 = arith.select %29, %571, %569 : vector<8x256xi1>, vector<8x256xf32>
    %573 = arith.negf %572 : vector<8x256xf32>
    %574 = math.exp %573 : vector<8x256xf32>
    %cst_196 = arith.constant 1.000000e+00 : f32
    %575 = vector.broadcast %cst_196 : f32 to vector<8x256xf32>
    %576 = arith.addf %575, %574 : vector<8x256xf32>
    %577 = arith.divf %575, %576 : vector<8x256xf32>
    %cst_197 = arith.constant 2.000000e+00 : f32
    %578 = vector.broadcast %cst_197 : f32 to vector<8x256xf32>
    %579 = arith.mulf %578, %577 : vector<8x256xf32>
    %cst_198 = arith.constant 1.000000e+00 : f32
    %580 = vector.broadcast %cst_198 : f32 to vector<8x256xf32>
    %581 = arith.subf %579, %580 : vector<8x256xf32>
    %582 = arith.select %29, %581, %577 : vector<8x256xi1>, vector<8x256xf32>
    %583 = vector.extract_strided_slice %582 {offsets = [0, 0], sizes = [8, 32], strides = [1, 1]} : vector<8x256xf32> to vector<8x32xf32>
    %584 = vector.extract_strided_slice %582 {offsets = [0, 128], sizes = [8, 32], strides = [1, 1]} : vector<8x256xf32> to vector<8x32xf32>
    %585 = tpu.concatenate %583, %584 in 1 : vector<8x32xf32>, vector<8x32xf32> -> vector<8x64xf32>
    %586 = vector.extract_strided_slice %582 {offsets = [0, 32], sizes = [8, 32], strides = [1, 1]} : vector<8x256xf32> to vector<8x32xf32>
    %587 = vector.extract_strided_slice %582 {offsets = [0, 160], sizes = [8, 32], strides = [1, 1]} : vector<8x256xf32> to vector<8x32xf32>
    %588 = tpu.concatenate %586, %587 in 1 : vector<8x32xf32>, vector<8x32xf32> -> vector<8x64xf32>
    %589 = vector.extract_strided_slice %582 {offsets = [0, 64], sizes = [8, 32], strides = [1, 1]} : vector<8x256xf32> to vector<8x32xf32>
    %590 = vector.extract_strided_slice %582 {offsets = [0, 192], sizes = [8, 32], strides = [1, 1]} : vector<8x256xf32> to vector<8x32xf32>
    %591 = tpu.concatenate %589, %590 in 1 : vector<8x32xf32>, vector<8x32xf32> -> vector<8x64xf32>
    %592 = vector.extract_strided_slice %582 {offsets = [0, 96], sizes = [8, 32], strides = [1, 1]} : vector<8x256xf32> to vector<8x32xf32>
    %593 = vector.extract_strided_slice %582 {offsets = [0, 224], sizes = [8, 32], strides = [1, 1]} : vector<8x256xf32> to vector<8x32xf32>
    %594 = tpu.concatenate %592, %593 in 1 : vector<8x32xf32>, vector<8x32xf32> -> vector<8x64xf32>
    %595 = arith.mulf %588, %557 : vector<8x64xf32>
    %596 = arith.mulf %585, %591 : vector<8x64xf32>
    %597 = arith.addf %595, %596 : vector<8x64xf32>
    %598 = math.tanh %597 : vector<8x64xf32>
    %599 = arith.mulf %594, %598 : vector<8x64xf32>
    %600 = vector.extract_strided_slice %599 {offsets = [0, 0], sizes = [8, 32], strides = [1, 1]} : vector<8x64xf32> to vector<8x32xf32>
    %c40_199 = arith.constant 40 : index
    %c0_200 = arith.constant 0 : index
    %601 = vector.load %arg14[%c40_199, %c0_200] : memref<64x64xf32, #tpu.memory_space<vmem>>, vector<8x32xf32>
    tpu.vector_store %arg14[%c40_199, %c0_200], %600 {strides = array<i32>} : memref<64x64xf32, #tpu.memory_space<vmem>>, vector<8x32xf32>,
    %602 = vector.extract_strided_slice %599 {offsets = [0, 32], sizes = [8, 32], strides = [1, 1]} : vector<8x64xf32> to vector<8x32xf32>
    %c16_201 = arith.constant 16 : index
    %c32_202 = arith.constant 32 : index
    %603 = vector.load %arg14[%c16_201, %c32_202] : memref<64x64xf32, #tpu.memory_space<vmem>>, vector<8x32xf32>
    tpu.vector_store %arg14[%c16_201, %c32_202], %602 {strides = array<i32>} : memref<64x64xf32, #tpu.memory_space<vmem>>, vector<8x32xf32>,
    %c48_203 = arith.constant 48 : index
    %c0_204 = arith.constant 0 : index
    %604 = vector.load %arg13[%c48_203, %c0_204] : memref<64x256xf32, #tpu.memory_space<vmem>>, vector<8x128xf32>
    %c8_205 = arith.constant 8 : index
    %c128_206 = arith.constant 128 : index
    %605 = vector.load %arg13[%c8_205, %c128_206] : memref<64x256xf32, #tpu.memory_space<vmem>>, vector<8x128xf32>
    %606 = arith.truncf %599 : vector<8x64xf32> to vector<8x64xbf16>
    %cst_207 = arith.constant dense<0.000000e+00> : vector<8x256xf32>
    %607 = tpu.matmul %606, %361, %cst_207 {dimension_numbers = #tpu.dot_dimension_numbers<[1], [0], [0], [1], [0, 0, 1, 1], [], []>} : vector<8x64xbf16>, vector<64x256xbf16>, vector<8x256xf32> -> vector<8x256xf32>
    %608 = tpu.concatenate %604, %605 in 1 : vector<8x128xf32>, vector<8x128xf32> -> vector<8x256xf32>
    %609 = arith.addf %608, %607 : vector<8x256xf32>
    %cst_208 = arith.constant 2.000000e+00 : f32
    %610 = vector.broadcast %cst_208 : f32 to vector<8x256xf32>
    %611 = arith.mulf %610, %609 : vector<8x256xf32>
    %612 = arith.select %29, %611, %609 : vector<8x256xi1>, vector<8x256xf32>
    %613 = arith.negf %612 : vector<8x256xf32>
    %614 = math.exp %613 : vector<8x256xf32>
    %cst_209 = arith.constant 1.000000e+00 : f32
    %615 = vector.broadcast %cst_209 : f32 to vector<8x256xf32>
    %616 = arith.addf %615, %614 : vector<8x256xf32>
    %617 = arith.divf %615, %616 : vector<8x256xf32>
    %cst_210 = arith.constant 2.000000e+00 : f32
    %618 = vector.broadcast %cst_210 : f32 to vector<8x256xf32>
    %619 = arith.mulf %618, %617 : vector<8x256xf32>
    %cst_211 = arith.constant 1.000000e+00 : f32
    %620 = vector.broadcast %cst_211 : f32 to vector<8x256xf32>
    %621 = arith.subf %619, %620 : vector<8x256xf32>
    %622 = arith.select %29, %621, %617 : vector<8x256xi1>, vector<8x256xf32>
    %623 = vector.extract_strided_slice %622 {offsets = [0, 0], sizes = [8, 32], strides = [1, 1]} : vector<8x256xf32> to vector<8x32xf32>
    %624 = vector.extract_strided_slice %622 {offsets = [0, 128], sizes = [8, 32], strides = [1, 1]} : vector<8x256xf32> to vector<8x32xf32>
    %625 = tpu.concatenate %623, %624 in 1 : vector<8x32xf32>, vector<8x32xf32> -> vector<8x64xf32>
    %626 = vector.extract_strided_slice %622 {offsets = [0, 32], sizes = [8, 32], strides = [1, 1]} : vector<8x256xf32> to vector<8x32xf32>
    %627 = vector.extract_strided_slice %622 {offsets = [0, 160], sizes = [8, 32], strides = [1, 1]} : vector<8x256xf32> to vector<8x32xf32>
    %628 = tpu.concatenate %626, %627 in 1 : vector<8x32xf32>, vector<8x32xf32> -> vector<8x64xf32>
    %629 = vector.extract_strided_slice %622 {offsets = [0, 64], sizes = [8, 32], strides = [1, 1]} : vector<8x256xf32> to vector<8x32xf32>
    %630 = vector.extract_strided_slice %622 {offsets = [0, 192], sizes = [8, 32], strides = [1, 1]} : vector<8x256xf32> to vector<8x32xf32>
    %631 = tpu.concatenate %629, %630 in 1 : vector<8x32xf32>, vector<8x32xf32> -> vector<8x64xf32>
    %632 = vector.extract_strided_slice %622 {offsets = [0, 96], sizes = [8, 32], strides = [1, 1]} : vector<8x256xf32> to vector<8x32xf32>
    %633 = vector.extract_strided_slice %622 {offsets = [0, 224], sizes = [8, 32], strides = [1, 1]} : vector<8x256xf32> to vector<8x32xf32>
    %634 = tpu.concatenate %632, %633 in 1 : vector<8x32xf32>, vector<8x32xf32> -> vector<8x64xf32>
    %635 = arith.mulf %628, %597 : vector<8x64xf32>
    %636 = arith.mulf %625, %631 : vector<8x64xf32>
    %637 = arith.addf %635, %636 : vector<8x64xf32>
    %638 = math.tanh %637 : vector<8x64xf32>
    %639 = arith.mulf %634, %638 : vector<8x64xf32>
    %640 = vector.extract_strided_slice %639 {offsets = [0, 0], sizes = [8, 32], strides = [1, 1]} : vector<8x64xf32> to vector<8x32xf32>
    %c48_212 = arith.constant 48 : index
    %c0_213 = arith.constant 0 : index
    %641 = vector.load %arg14[%c48_212, %c0_213] : memref<64x64xf32, #tpu.memory_space<vmem>>, vector<8x32xf32>
    tpu.vector_store %arg14[%c48_212, %c0_213], %640 {strides = array<i32>} : memref<64x64xf32, #tpu.memory_space<vmem>>, vector<8x32xf32>,
    %642 = vector.extract_strided_slice %639 {offsets = [0, 32], sizes = [8, 32], strides = [1, 1]} : vector<8x64xf32> to vector<8x32xf32>
    %c8_214 = arith.constant 8 : index
    %c32_215 = arith.constant 32 : index
    %643 = vector.load %arg14[%c8_214, %c32_215] : memref<64x64xf32, #tpu.memory_space<vmem>>, vector<8x32xf32>
    tpu.vector_store %arg14[%c8_214, %c32_215], %642 {strides = array<i32>} : memref<64x64xf32, #tpu.memory_space<vmem>>, vector<8x32xf32>,
    %c56_216 = arith.constant 56 : index
    %c0_217 = arith.constant 0 : index
    %644 = vector.load %arg13[%c56_216, %c0_217] : memref<64x256xf32, #tpu.memory_space<vmem>>, vector<8x128xf32>
    %c0_218 = arith.constant 0 : index
    %c128_219 = arith.constant 128 : index
    %645 = vector.load %arg13[%c0_218, %c128_219] : memref<64x256xf32, #tpu.memory_space<vmem>>, vector<8x128xf32>
    %646 = arith.truncf %639 : vector<8x64xf32> to vector<8x64xbf16>
    %cst_220 = arith.constant dense<0.000000e+00> : vector<8x256xf32>
    %647 = tpu.matmul %646, %361, %cst_220 {dimension_numbers = #tpu.dot_dimension_numbers<[1], [0], [0], [1], [0, 0, 1, 1], [], []>} : vector<8x64xbf16>, vector<64x256xbf16>, vector<8x256xf32> -> vector<8x256xf32>
    %648 = tpu.concatenate %644, %645 in 1 : vector<8x128xf32>, vector<8x128xf32> -> vector<8x256xf32>
    %649 = arith.addf %648, %647 : vector<8x256xf32>
    %cst_221 = arith.constant 2.000000e+00 : f32
    %650 = vector.broadcast %cst_221 : f32 to vector<8x256xf32>
    %651 = arith.mulf %650, %649 : vector<8x256xf32>
    %652 = arith.select %29, %651, %649 : vector<8x256xi1>, vector<8x256xf32>
    %653 = arith.negf %652 : vector<8x256xf32>
    %654 = math.exp %653 : vector<8x256xf32>
    %cst_222 = arith.constant 1.000000e+00 : f32
    %655 = vector.broadcast %cst_222 : f32 to vector<8x256xf32>
    %656 = arith.addf %655, %654 : vector<8x256xf32>
    %657 = arith.divf %655, %656 : vector<8x256xf32>
    %cst_223 = arith.constant 2.000000e+00 : f32
    %658 = vector.broadcast %cst_223 : f32 to vector<8x256xf32>
    %659 = arith.mulf %658, %657 : vector<8x256xf32>
    %cst_224 = arith.constant 1.000000e+00 : f32
    %660 = vector.broadcast %cst_224 : f32 to vector<8x256xf32>
    %661 = arith.subf %659, %660 : vector<8x256xf32>
    %662 = arith.select %29, %661, %657 : vector<8x256xi1>, vector<8x256xf32>
    %663 = vector.extract_strided_slice %662 {offsets = [0, 0], sizes = [8, 32], strides = [1, 1]} : vector<8x256xf32> to vector<8x32xf32>
    %664 = vector.extract_strided_slice %662 {offsets = [0, 128], sizes = [8, 32], strides = [1, 1]} : vector<8x256xf32> to vector<8x32xf32>
    %665 = tpu.concatenate %663, %664 in 1 : vector<8x32xf32>, vector<8x32xf32> -> vector<8x64xf32>
    %666 = vector.extract_strided_slice %662 {offsets = [0, 32], sizes = [8, 32], strides = [1, 1]} : vector<8x256xf32> to vector<8x32xf32>
    %667 = vector.extract_strided_slice %662 {offsets = [0, 160], sizes = [8, 32], strides = [1, 1]} : vector<8x256xf32> to vector<8x32xf32>
    %668 = tpu.concatenate %666, %667 in 1 : vector<8x32xf32>, vector<8x32xf32> -> vector<8x64xf32>
    %669 = vector.extract_strided_slice %662 {offsets = [0, 64], sizes = [8, 32], strides = [1, 1]} : vector<8x256xf32> to vector<8x32xf32>
    %670 = vector.extract_strided_slice %662 {offsets = [0, 192], sizes = [8, 32], strides = [1, 1]} : vector<8x256xf32> to vector<8x32xf32>
    %671 = tpu.concatenate %669, %670 in 1 : vector<8x32xf32>, vector<8x32xf32> -> vector<8x64xf32>
    %672 = vector.extract_strided_slice %662 {offsets = [0, 96], sizes = [8, 32], strides = [1, 1]} : vector<8x256xf32> to vector<8x32xf32>
    %673 = vector.extract_strided_slice %662 {offsets = [0, 224], sizes = [8, 32], strides = [1, 1]} : vector<8x256xf32> to vector<8x32xf32>
    %674 = tpu.concatenate %672, %673 in 1 : vector<8x32xf32>, vector<8x32xf32> -> vector<8x64xf32>
    %675 = arith.mulf %668, %637 : vector<8x64xf32>
    %676 = arith.mulf %665, %671 : vector<8x64xf32>
    %677 = arith.addf %675, %676 : vector<8x64xf32>
    %678 = math.tanh %677 : vector<8x64xf32>
    %679 = arith.mulf %674, %678 : vector<8x64xf32>
    %680 = vector.extract_strided_slice %679 {offsets = [0, 0], sizes = [8, 32], strides = [1, 1]} : vector<8x64xf32> to vector<8x32xf32>
    %c56_225 = arith.constant 56 : index
    %c0_226 = arith.constant 0 : index
    %681 = vector.load %arg14[%c56_225, %c0_226] : memref<64x64xf32, #tpu.memory_space<vmem>>, vector<8x32xf32>
    tpu.vector_store %arg14[%c56_225, %c0_226], %680 {strides = array<i32>} : memref<64x64xf32, #tpu.memory_space<vmem>>, vector<8x32xf32>,
    %682 = vector.extract_strided_slice %679 {offsets = [0, 32], sizes = [8, 32], strides = [1, 1]} : vector<8x64xf32> to vector<8x32xf32>
    %c0_227 = arith.constant 0 : index
    %c32_228 = arith.constant 32 : index
    %683 = vector.load %arg14[%c0_227, %c32_228] : memref<64x64xf32, #tpu.memory_space<vmem>>, vector<8x32xf32>
    tpu.vector_store %arg14[%c0_227, %c32_228], %682 {strides = array<i32>} : memref<64x64xf32, #tpu.memory_space<vmem>>, vector<8x32xf32>,
    %c0_229 = arith.constant 0 : index
    %c0_230 = arith.constant 0 : index
    %684 = vector.load %arg14[%c0_229, %c0_230] : memref<64x64xf32, #tpu.memory_space<vmem>>, vector<64x64xf32>
    %685 = arith.truncf %684 : vector<64x64xf32> to vector<64x64xbf16>
    %c0_231 = arith.constant 0 : index
    %c0_232 = arith.constant 0 : index
    %686 = vector.load %arg10[%c0_231, %c0_232] : memref<64x128xbf16, #tpu.memory_space<vmem>>, vector<64x128xbf16>
    %cst_233 = arith.constant dense<0.000000e+00> : vector<64x128xf32>
    %687 = tpu.matmul %685, %686, %cst_233 {dimension_numbers = #tpu.dot_dimension_numbers<[1], [0], [0], [1], [0, 0, 1, 1], [], []>} : vector<64x64xbf16>, vector<64x128xbf16>, vector<64x128xf32> -> vector<64x128xf32>
    %c0_234 = arith.constant 0 : index
    %c0_235 = arith.constant 0 : index
    %688 = vector.load %arg11[%c0_234, %c0_235] : memref<1x128xf32, #tpu.memory_space<vmem>>, vector<1x128xf32>
    %689 = vector.broadcast %688 : vector<1x128xf32> to vector<64x128xf32>
    %690 = arith.addf %687, %689 : vector<64x128xf32>
    %c0_236 = arith.constant 0 : index
    %c0_237 = arith.constant 0 : index
    %691 = vector.load %arg12[%c0_236, %c0_237] : memref<64x128xf32, #tpu.memory_space<vmem>>, vector<64x128xf32>
    tpu.vector_store %arg12[%c0_236, %c0_237], %690 {strides = array<i32>} : memref<64x128xf32, #tpu.memory_space<vmem>>, vector<64x128xf32>,
    return
  }
  func.func @transform_0(%arg0: i32) -> (i32, i32) {
    %c0_i32 = arith.constant 0 : i32
    %c0_i32_0 = arith.constant 0 : i32
    %c0_i32_1 = arith.constant 0 : i32
    return %c0_i32, %c0_i32_0 : i32, i32
  }
  func.func @transform_1(%arg0: i32) -> (i32, i32) {
    %c0_i32 = arith.constant 0 : i32
    %c0_i32_0 = arith.constant 0 : i32
    %c0_i32_1 = arith.constant 0 : i32
    return %c0_i32, %c0_i32_0 : i32, i32
  }
  func.func @transform_2(%arg0: i32) -> (i32, i32) {
    %c0_i32 = arith.constant 0 : i32
    %c0_i32_0 = arith.constant 0 : i32
    %c0_i32_1 = arith.constant 0 : i32
    return %c0_i32, %c0_i32_0 : i32, i32
  }
  func.func @transform_3(%arg0: i32) -> (i32, i32) {
    %c0_i32 = arith.constant 0 : i32
    %c0_i32_0 = arith.constant 0 : i32
    %c0_i32_1 = arith.constant 0 : i32
    return %c0_i32, %c0_i32_0 : i32, i32
  }
  func.func @transform_4(%arg0: i32) -> (i32, i32) {
    %c0_i32 = arith.constant 0 : i32
    %c0_i32_0 = arith.constant 0 : i32
    %c0_i32_1 = arith.constant 0 : i32
    return %c0_i32, %c0_i32_0 : i32, i32
  }
  func.func @transform_5(%arg0: i32) -> (i32, i32) {
    %c0_i32 = arith.constant 0 : i32
    %c0_i32_0 = arith.constant 0 : i32
    %c0_i32_1 = arith.constant 0 : i32
    return %c0_i32, %c0_i32_0 : i32, i32
  }
  func.func @transform_6(%arg0: i32) -> (i32, i32) {
    %c0_i32 = arith.constant 0 : i32
    %c0_i32_0 = arith.constant 0 : i32
    %c0_i32_1 = arith.constant 0 : i32
    return %c0_i32, %c0_i32_0 : i32, i32
  }
  func.func @transform_7(%arg0: i32) -> (i32, i32) {
    %c0_i32 = arith.constant 0 : i32
    %c0_i32_0 = arith.constant 0 : i32
    %c0_i32_1 = arith.constant 0 : i32
    return %c0_i32, %c0_i32_0 : i32, i32
  }
  func.func @transform_8(%arg0: i32) -> (i32, i32) {
    %c0_i32 = arith.constant 0 : i32
    %c0_i32_0 = arith.constant 0 : i32
    %c0_i32_1 = arith.constant 0 : i32
    return %c0_i32, %c0_i32_0 : i32, i32
  }
  func.func @transform_9(%arg0: i32) -> (i32, i32) {
    %c0_i32 = arith.constant 0 : i32
    %c0_i32_0 = arith.constant 0 : i32
    %c0_i32_1 = arith.constant 0 : i32
    return %c0_i32, %c0_i32_0 : i32, i32
  }
  func.func @transform_10(%arg0: i32) -> (i32, i32) {
    %c0_i32 = arith.constant 0 : i32
    %c0_i32_0 = arith.constant 0 : i32
    %c0_i32_1 = arith.constant 0 : i32
    return %c0_i32, %c0_i32_0 : i32, i32
  }
  func.func @transform_11(%arg0: i32) -> (i32, i32) {
    %c0_i32 = arith.constant 0 : i32
    %c0_i32_0 = arith.constant 0 : i32
    %c0_i32_1 = arith.constant 0 : i32
    return %c0_i32, %c0_i32_0 : i32, i32
  }
}

</mosaic_0001>

<bundles_post_ra>
// kernel: lstm_for_ner_forward.1
= control target key start
LH: loop header
LB: loop body
LE: loop exit
PB: predicated region body
PF: predicated region fallthrough
CT: control target
= control target key end

     0   :  { %v2913_v0 = vmov 0   ;;  %v39_v35 = vlaneseq  ;;  %v2914_v39 = vmov 1.0   ;;  %vm314_vm8 = vcmask 261120   ;;  %s2916_s23 = smov 32   ;;  %s2917_s24 = smov 64   ;;  %s3865_s0 = inlined_call_operand.vmem [shape: s32[64,1], index: 0, kind: input, shape index: {}]   ;;  %s3866_s2 = inlined_call_operand.vmem [shape: f32[128,32], index: 2, kind: input, shape index: {}]   ;;  %s3867_s1 = inlined_call_operand.vmem [shape: f32[64,1], index: 1, kind: input, shape index: {}]   ;;  %s3868_s3 = inlined_call_operand.vmem [shape: bf16[32,256], index: 3, kind: input, shape index: {}]   ;;  %s3869_s5 = inlined_call_operand.vmem [shape: bf16[64,256], index: 5, kind: input, shape index: {}]   ;;  %s3870_s4 = inlined_call_operand.vmem [shape: f32[1,256], index: 4, kind: input, shape index: {}]   ;;  %s3871_s6 = inlined_call_operand.vmem [shape: bf16[64,256], index: 6, kind: input, shape index: {}]   ;;  %s3872_s8 = inlined_call_operand.vmem [shape: bf16[64,256], index: 8, kind: input, shape index: {}]   ;;  %s3873_s7 = inlined_call_operand.vmem [shape: f32[1,256], index: 7, kind: input, shape index: {}]   ;;  %s3874_s9 = inlined_call_operand.vmem [shape: bf16[64,128], index: 9, kind: input, shape index: {}]   ;;  %s3875_s10 = inlined_call_operand.vmem [shape: f32[1,128], index: 10, kind: input, shape index: {}]   ;;  %s3876_s11 = inlined_call_operand.vmem [shape: f32[64,128], index: 11, kind: output, shape index: {}]  }
   0x1   :  { %2706 = vset.pattern.permute.xlu1 %v2913_v0  ;;  %2705 = vset.pattern.permute.xlu0 %v2913_v0  ;;  %v43_v1 = vld [vmem:[%s3865_s0 + $0x10] sm:$0xff]  ;;  %v41_v2 = vld [vmem:[%s3865_s0] sm:$0xff]  ;;  %v44_v3 = vld [vmem:[%s3865_s0 + $0x18] sm:$0xff]  ;;  %vm580_vm15 = vcmask 523520  }
   0x2   :  { %56 = vperm.xlu1 %2706, %v43_v1   ;;  %50 = vperm.xlu0 %2705, %v41_v2   ;;  %v42_v4 = vld [vmem:[%s3865_s0 + $0x8] sm:$0xff]  ;;  %v112_v5 = vld [vmem:[%s3866_s2 + $0x78] sm:$0xff]  ;;  %v111_v6 = vld [vmem:[%s3866_s2 + $0x70] sm:$0xff]  ;;  %v3084_v36 = vand.u32 127, %v39_v35 }
   0x3   :  { %359 = vmatprep.mubr.bf16.mxu1 %v2913_v0  ;;  %v46_v7 = vld [vmem:[%s3865_s0 + $0x28] sm:$0xff]  ;;  %v45_v8 = vld [vmem:[%s3865_s0 + $0x20] sm:$0xff]  ;;  %2640 = vmatprep.subr.mxu0 %v112_v5  ;;  %v48_v10 = vld [vmem:[%s3865_s0 + $0x38] sm:$0xff] }
   0x4   :  { %2641 = vmatpush3.msra.mxu0 %v112_v5  ;;  %v110_v9 = vld [vmem:[%s3866_s2 + $0x68] sm:$0xff]  ;;  %v47_v11 = vld [vmem:[%s3865_s0 + $0x30] sm:$0xff]  ;;  %v109_v12 = vld [vmem:[%s3866_s2 + $0x60] sm:$0xff]  ;;  %vm417_vm9 = vcmp.ge.s32.totalorder %v3084_v36, 64  ;;  %vm419_vm10 = vcmp.lt.s32.totalorder %v3084_v36, 96 }
   0x5   :  { %2642 = vmatprep.subr.mxu0 %v111_v6  ;;  %v108_v13 = vld [vmem:[%s3866_s2 + $0x58] sm:$0xff]  ;;  %v219_v14 = vld [vmem:[%s3867_s1 + $0x8] sm:$0xff]  ;;  %v218_v15 = vld [vmem:[%s3867_s1] sm:$0xff] }
   0x6   :  { %59 = vperm.xlu1 %2706, %v44_v3   ;;  %53 = vperm.xlu0 %2705, %v42_v4   ;;  %v107_v16 = vld [vmem:[%s3866_s2 + $0x50] sm:$0xff]  ;;  %v221_v17 = vld [vmem:[%s3867_s1 + $0x18] sm:$0xff]  ;;  %v106_v19 = vld [vmem:[%s3866_s2 + $0x48] sm:$0xff] }
   0x7   :  { %2643 = vmatpush3.msra.mxu0 %v111_v6  ;;  %v220_v18 = vld [vmem:[%s3867_s1 + $0x10] sm:$0xff]  ;;  %v105_v20 = vld [vmem:[%s3866_s2 + $0x40] sm:$0xff]  ;;  %v223_v21 = vld [vmem:[%s3867_s1 + $0x28] sm:$0xff] }
   0x8   :  { %2644 = vmatprep.subr.mxu0 %v110_v9  ;;  %v222_v22 = vld [vmem:[%s3867_s1 + $0x20] sm:$0xff]  ;;  %v225_v23 = vld [vmem:[%s3867_s1 + $0x38] sm:$0xff]  ;;  %v224_v24 = vld [vmem:[%s3867_s1 + $0x30] sm:$0xff] }
   0x9   :  { %2645 = vmatpush3.msra.mxu0 %v110_v9  ;;  %v104_v25 = vld [vmem:[%s3866_s2 + $0x38] sm:$0xff]  ;;  %v103_v28 = vld [vmem:[%s3866_s2 + $0x30] sm:$0xff]  ;;  %v102_v29 = vld [vmem:[%s3866_s2 + $0x28] sm:$0xff] }
   0xa   :  { %65 = vperm.xlu1 %2706, %v46_v7   ;;  %62 = vperm.xlu0 %2705, %v45_v8   ;;  %v2707_v26 = vld [vmem:[%s3868_s3 + $0x14] ss:$8 sps:$4 sm:$0xff]   ;;  %v2709_v27 = vld [vmem:[%s3868_s3 + $0x10] ss:$8 sps:$4 sm:$0xff]   ;;  %v101_v30 = vld [vmem:[%s3866_s2 + $0x20] sm:$0xff] }
   0xb   :  { %2646 = vmatprep.subr.mxu0 %v109_v12  ;;  %339 = vmatprep.subr.bf16.mxu1 %v2707_v26  ;;  %v100_v31 = vld [vmem:[%s3866_s2 + $0x18] sm:$0xff]  ;;  %v99_v32 = vld [vmem:[%s3866_s2 + $0x10] sm:$0xff]  ;;  %v98_v33 = vld [vmem:[%s3866_s2 + $0x8] sm:$0xff] }
   0xc   :  { %2647 = vmatpush3.msra.mxu0 %v109_v12  ;;  %340 = vmatpush1.bf16.msra.mxu1 %v2709_v27  ;;  %v97_v34 = vld [vmem:[%s3866_s2] sm:$0xff]  ;;  %v3104_v48 = vld [vmem:[%s3869_s5 + $0x34] ss:$8 sps:$4 sm:$0xff]   ;;  %v3109_v49 = vld [vmem:[%s3869_s5 + $0x30] ss:$8 sps:$4 sm:$0xff]  }
   0xd   :  { %2648 = vmatprep.subr.mxu0 %v108_v13  ;;  %v2710_v46 = vld [vmem:[%s3868_s3 + $0x4] ss:$8 sps:$4 sm:$0xff]   ;;  %v2712_v47 = vld [vmem:[%s3868_s3] ss:$8 sps:$4 sm:$0xff]   ;;  %v3127_v52 = vld [vmem:[%s3869_s5 + $0x14] ss:$8 sps:$4 sm:$0xff]  }
   0xe   :  { %71 = vperm.xlu1 %2706, %v48_v10   ;;  %68 = vperm.xlu0 %2705, %v47_v11   ;;  %v3117_v50 = vld [vmem:[%s3869_s5 + $0x24] ss:$8 sps:$4 sm:$0xff]   ;;  %v3122_v51 = vld [vmem:[%s3869_s5 + $0x20] ss:$8 sps:$4 sm:$0xff]   ;;  %v3135_v53 = vld [vmem:[%s3869_s5 + $0x10] ss:$8 sps:$4 sm:$0xff]  }
   0xf   :  { %2649 = vmatpush3.msra.mxu0 %v108_v13  ;;  %341 = vmatprep.subr.bf16.mxu1 %v2710_v46  ;;  %v3140_v54 = vld [vmem:[%s3869_s5 + $0x4] ss:$8 sps:$4 sm:$0xff]   ;;  %v3147_v55 = vld [vmem:[%s3869_s5] ss:$8 sps:$4 sm:$0xff]   ;;  %vm3220_vm13 = vmand %vm417_vm9, %vm419_vm10 }
  0x10   :  { %2650 = vmatprep.subr.mxu0 %v107_v16  ;;  %342 = vmatpush1.bf16.msra.mxu1 %v2712_v47 }
  0x11   :  { %2651 = vmatpush3.msra.mxu0 %v107_v16  ;;  %493 = vmatprep.subr.bf16.mxu1 %v3104_v48 }
  0x12   :  { %233 = vperm.xlu1 %2706, %v219_v14   ;;  %228 = vperm.xlu0 %2705, %v218_v15  }
  0x13   :  { %2652 = vmatprep.subr.mxu0 %v106_v19 }
  0x14   :  { %2653 = vmatpush3.msra.mxu0 %v106_v19 }
  0x15   :  { %2654 = vmatprep.subr.mxu0 %v105_v20 }
  0x16   :  { %243 = vperm.xlu1 %2706, %v221_v17   ;;  %238 = vperm.xlu0 %2705, %v220_v18  }
  0x17   :  { %2655 = vmatpush3.msra.mxu0 %v105_v20 }
  0x18   :  { %2656 = vmatprep.subr.mxu0 %v104_v25 }
  0x19   :  { %2657 = vmatpush3.msra.mxu0 %v104_v25 }
  0x1a   :  { %253 = vperm.xlu1 %2706, %v223_v21   ;;  %248 = vperm.xlu0 %2705, %v222_v22   ;;  %v3178_v21 = vshrl.u32 %v39_v35, 7 }
  0x1b   :  { %2658 = vmatprep.subr.mxu0 %v103_v28 }
  0x1c   :  { %2659 = vmatpush3.msra.mxu0 %v103_v28  ;;  %v290_v22 = vsub.s32 1, %v3178_v21 }
  0x1d   :  { %2660 = vmatprep.subr.mxu0 %v102_v29 }
  0x1e   :  { %263 = vperm.xlu1 %2706, %v225_v23   ;;  %258 = vperm.xlu0 %2705, %v224_v24   ;;  %v282_v23 = vld [vmem:[%s3870_s4] sm:$0x3]  ;;  %v286_v24 = vsub.s32 0, %v3178_v21  ;;  %s2915_s4 = smov 96  }
  0x1f   :  { %2661 = vmatpush3.msra.mxu0 %v102_v29  ;;  %v291_v25 = vrot.slane %v282_v23, %v290_v22 }
  0x20   :  { %2662 = vmatprep.subr.mxu0 %v101_v30  ;;  %v287_v28 = vrot.slane %v282_v23, %v286_v24 }
  0x21   :  { %2663 = vmatpush3.msra.mxu0 %v101_v30 }
  0x22   :  { %2664 = vmatprep.subr.mxu0 %v100_v31 }
  0x23   :  { %2665 = vmatpush3.msra.mxu0 %v100_v31 }
  0x24   :  { %2666 = vmatprep.subr.mxu0 %v99_v32 }
  0x25   :  { %2667 = vmatpush3.msra.mxu0 %v99_v32 }
  0x26   :  { %2668 = vmatprep.subr.mxu0 %v98_v33 }
  0x27   :  { %2669 = vmatpush3.msra.mxu0 %v98_v33 }
  0x28   :  { %2670 = vmatprep.subr.mxu0 %v97_v34 }
  0x29   :  { %2671 = vmatpush3.msra.mxu0 %v97_v34 }
  0x2a   :  { %596 = vmatprep.subr.bf16.mxu0 %v3104_v48 }
  0x7d   :  { %v57_v37 = vpop.permute.xlu1 %56  ;;  %v51_v38 = vpop.permute.xlu0 %50 }
  0x7e   :  { %vm73_vm0 = vcmp.eq.s32.totalorder %v3084_v36, %v51_v38  ;;  %vm75_vm1 = vcmp.eq.s32.totalorder %v3084_v36, %v57_v37 }
  0x7f   :  { %2672 = vmatprep.mubr.msk.f32.mxu0 %vm73_vm0, %v2914_v39  ;;  %vm481_vm0 = vcmask 523264  }
  0x81   :  { %v60_v40 = vpop.permute.xlu1 %59  ;;  %v54_v41 = vpop.permute.xlu0 %53 }
  0x82   :  { %vm74_vm2 = vcmp.eq.s32.totalorder %v3084_v36, %v54_v41  ;;  %vm76_vm3 = vcmp.eq.s32.totalorder %v3084_v36, %v60_v40 }
  0x83   :  { %2673 = vmatmul.mubr.msk.f32.vlgmr.msra.gmra.mxu0 %vm74_vm2, %v2914_v39 }
  0x84   :  { %2675 = vmatprep.mubr.msk.f32.mxu0 %vm75_vm1, %v2914_v39  ;;  %597 = vmatpush1.bf16.msra.mxu0 %v3109_v49 }
  0x85   :  { %v66_v42 = vpop.permute.xlu1 %65  ;;  %v63_v43 = vpop.permute.xlu0 %62  ;;  %598 = vmatprep.subr.bf16.mxu0 %v3117_v50 }
  0x86   :  { %vm77_vm4 = vcmp.eq.s32.totalorder %v3084_v36, %v63_v43  ;;  %vm78_vm5 = vcmp.eq.s32.totalorder %v3084_v36, %v66_v42 }
  0x87   :  { %2676 = vmatmul.mubr.msk.f32.gmra.mxu0 %vm76_vm3, %v2914_v39 }
  0x88   :  { %2678 = vmatprep.mubr.msk.f32.mxu0 %vm77_vm4, %v2914_v39  ;;  %599 = vmatpush1.bf16.msra.mxu0 %v3122_v51 }
  0x89   :  { %v69_v44 = vpop.permute.xlu0 %68  ;;  %v72_v45 = vpop.permute.xlu1 %71  ;;  %600 = vmatprep.subr.bf16.mxu0 %v3127_v52 }
  0x8a   :  { %vm79_vm6 = vcmp.eq.s32.totalorder %v3084_v36, %v69_v44  ;;  %vm80_vm7 = vcmp.eq.s32.totalorder %v3084_v36, %v72_v45 }
  0x8b   :  { %2679 = vmatmul.mubr.msk.f32.gmra.mxu0 %vm78_vm5, %v2914_v39 }
  0x8c   :  { %2681 = vmatprep.mubr.msk.f32.mxu0 %vm79_vm6, %v2914_v39  ;;  %601 = vmatpush1.bf16.msra.mxu0 %v3135_v53 }
  0x8d   :  { %602 = vmatprep.subr.bf16.mxu0 %v3140_v54  ;;  %v234_v57 = vpop.permute.xlu1 %233  ;;  %v229_v58 = vpop.permute.xlu0 %228 }
  0x8f   :  { %2682 = vmatmul.mubr.msk.f32.gmra.mxu0 %vm80_vm7, %v2914_v39 }
  0x90   :  { %620 = vmatprep.mubr.bf16.mxu0 %v2913_v0  ;;  %603 = vmatpush1.bf16.msra.mxu0 %v3147_v55 }
  0x91   :  { %800 = vmatprep.subr.bf16.mxu0 %v3104_v48  ;;  %v239_v2 = vpop.permute.xlu0 %238  ;;  %v244_v4 = vpop.permute.xlu1 %243 }
  0x95   :  { %v249_v9 = vpop.permute.xlu0 %248  ;;  %v254_v11 = vpop.permute.xlu1 %253 }
  0x99   :  { %v259_v16 = vpop.permute.xlu0 %258  ;;  %v264_v18 = vpop.permute.xlu1 %263 }
 0x143   :  { %v2674_v56 = vpop.f32.mrf.mxu0 }
 0x144   :  { %v267_v60 = vmul.f32 %v2674_v56, %v234_v57 }
 0x145   :  { %v179_v59 = vpop.f32.mrf.mxu0 }
 0x146   :  { %v266_v61 = vmul.f32 %v229_v58, %v179_v59 }
 0x147   :  { %v2677_v62 = vpop.f32.mrf.mxu0 }
 0x148   :  { %v274_v63 = vpack.c.bf16 %v267_v60, %v266_v61  ;;  %v269_v6 = vmul.f32 %v2677_v62, %v244_v4 }
 0x149   :  { %v189_v1 = vpop.f32.mrf.mxu0 }
 0x14a   :  { %2489 = vmatmul.mubr.msk.bf16.vlgmr.msra.gmra.mxu1 %vm314_vm8, %v274_v63  ;;  %v268_v3 = vmul.f32 %v239_v2, %v189_v1  ;;  %v416_v1 = vadd.s32 128, %v3084_v36 }
 0x14b   :  { %494 = vmatpush1.bf16.msra.mxu1 %v3109_v49  ;;  %369 = vmatprep.mubr.bf16.mxu1 %v2913_v0  ;;  %v2680_v5 = vpop.f32.mrf.mxu0 }
 0x14c   :  { %495 = vmatprep.subr.bf16.mxu1 %v3117_v50  ;;  %v275_v7 = vpack.c.bf16 %v269_v6, %v268_v3  ;;  %v271_v13 = vmul.f32 %v2680_v5, %v254_v11  ;;  %vm424_vm11 = vcmp.ge.s32.totalorder %v416_v1, 192  ;;  %vm426_vm12 = vcmp.lt.s32.totalorder %v416_v1, 224 }
 0x14d   :  { %v199_v8 = vpop.f32.mrf.mxu0  ;;  %vm3224_vm14 = vmand %vm424_vm11, %vm426_vm12 }
 0x14e   :  { %v270_v10 = vmul.f32 %v249_v9, %v199_v8  ;;  %v2750_v8 = vld [vmem:[%s3874_s9 + $0x10] sm:$0xff]  }
 0x14f   :  { %496 = vmatpush1.bf16.msra.mxu1 %v3122_v51  ;;  %v2683_v12 = vpop.f32.mrf.mxu0 }
 0x150   :  { %497 = vmatprep.subr.bf16.mxu1 %v3127_v52  ;;  %v276_v14 = vpack.c.bf16 %v271_v13, %v270_v10  ;;  %v273_v19 = vmul.f32 %v2683_v12, %v264_v18  ;;  %v2751_v12 = vld [vmem:[%s3874_s9 + $0x8] sm:$0xff]  }
 0x151   :  { %v209_v15 = vpop.f32.mrf.mxu0 }
 0x152   :  { %2490 = vmatmul.mubr.msk.bf16.gmra.mxu1 %vm314_vm8, %v275_v7  ;;  %v272_v17 = vmul.f32 %v259_v16, %v209_v15 }
 0x153   :  { %379 = vmatprep.mubr.bf16.mxu1 %v2913_v0  ;;  %498 = vmatpush1.bf16.msra.mxu1 %v3135_v53 }
 0x154   :  { %499 = vmatprep.subr.bf16.mxu1 %v3140_v54  ;;  %v277_v20 = vpack.c.bf16 %v273_v19, %v272_v17 }
 0x157   :  { %500 = vmatpush1.bf16.msra.mxu1 %v3147_v55 }
 0x158   :  { %698 = vmatprep.subr.bf16.mxu1 %v3104_v48 }
 0x15a   :  { %2491 = vmatmul.mubr.msk.bf16.gmra.mxu1 %vm314_vm8, %v276_v14 }
 0x15b   :  { %389 = vmatprep.mubr.bf16.mxu1 %v2913_v0 }
 0x162   :  { %2492 = vmatmul.mubr.msk.bf16.gmra.mxu1 %vm314_vm8, %v277_v20 }
 0x163   :  { %517 = vmatprep.mubr.bf16.mxu1 %v2913_v0 }
 0x16a   :  { %518 = vmatmul.mubr.bf16.vlgmr.msra.gmra.mxu1 %v2913_v0 }
 0x16b   :  { %699 = vmatpush1.bf16.msra.mxu1 %v3109_v49  ;;  %722 = vmatprep.mubr.bf16.mxu1 %v2913_v0 }
 0x16c   :  { %700 = vmatprep.subr.bf16.mxu1 %v3117_v50 }
 0x16f   :  { %701 = vmatpush1.bf16.msra.mxu1 %v3122_v51 }
 0x170   :  { %702 = vmatprep.subr.bf16.mxu1 %v3127_v52 }
 0x173   :  { %703 = vmatpush1.bf16.msra.mxu1 %v3135_v53 }
 0x174   :  { %704 = vmatprep.subr.bf16.mxu1 %v3140_v54 }
 0x177   :  { %705 = vmatpush1.bf16.msra.mxu1 %v3147_v55 }
 0x178   :  { %902 = vmatprep.subr.bf16.mxu1 %v3104_v48 }
 0x20a   :  { %v361_v26 = vpop.f32.mrf.mxu1 }
 0x20b   :  { %v362_v4 = vadd.f32 %v361_v26, %v287_v28 }
 0x20c   :  { %v363_v27 = vpop.f32.mrf.mxu1 }
 0x20d   :  { %v3189_v29 = vadd.f32 %v363_v27, %v291_v25 }
 0x20e   :  { %v365_v30 = vpop.f32.mrf.mxu1 }
 0x20f   :  { %v3191_v31 = vadd.f32 %v365_v30, %v287_v28 }
 0x210   :  { %v367_v32 = vpop.f32.mrf.mxu1 }
 0x211   :  { %v3193_v33 = vadd.f32 %v367_v32, %v291_v25 }
 0x212   :  { %v371_v34 = vpop.f32.mrf.mxu1 }
 0x213   :  { %v3195_v35 = vadd.f32 %v371_v34, %v287_v28 }
 0x214   :  { %v373_v37 = vpop.f32.mrf.mxu1 }
 0x215   :  { %v3197_v38 = vadd.f32 %v373_v37, %v291_v25 }
 0x216   :  { %v375_v39 = vpop.f32.mrf.mxu1 }
 0x217   :  { %v3199_v40 = vadd.f32 %v375_v39, %v287_v28 }
 0x218   :  { %v377_v41 = vpop.f32.mrf.mxu1 }
 0x219   :  { %v3201_v42 = vadd.f32 %v377_v41, %v291_v25 }
 0x21a   :  { %v381_v43 = vpop.f32.mrf.mxu1 }
 0x21b   :  { %v3203_v44 = vadd.f32 %v381_v43, %v287_v28 }
 0x21c   :  { %v383_v45 = vpop.f32.mrf.mxu1 }
 0x21d   :  { %v3205_v46 = vadd.f32 %v383_v45, %v291_v25 }
 0x21e   :  { %v385_v47 = vpop.f32.mrf.mxu1 }
 0x21f   :  { %v3207_v56 = vadd.f32 %v385_v47, %v287_v28 }
 0x220   :  { %v387_v57 = vpop.f32.mrf.mxu1 }
 0x221   :  { %v3209_v58 = vadd.f32 %v387_v57, %v291_v25 }
 0x222   :  { %v391_v59 = vpop.f32.mrf.mxu1 }
 0x223   :  { %v3211_v60 = vadd.f32 %v391_v59, %v287_v28 }
 0x224   :  { %v393_v61 = vpop.f32.mrf.mxu1 }
 0x225   :  { %v3213_v62 = vadd.f32 %v393_v61, %v291_v25 }
 0x226   :  { %v395_v63 = vpop.f32.mrf.mxu1 }
 0x227   :  { %v3216_v2 = vadd.f32 %v395_v63, %v287_v28 }
 0x228   :  { %v397_v3 = vpop.f32.mrf.mxu1 }
 0x229   :  { %v398_v6 = vadd.f32 %v397_v3, %v291_v25 }
 0x22a   :  { %v519_v5 = vpop.f32.mrf.mxu1 }
 0x22b   :  { %v526_v7 = vadd.f32 %v519_v5, %v362_v4 }
 0x22c   :  { %v521_v9 = vpop.f32.mrf.mxu1 }
 0x22d   :  { %v528_v10 = vmul.f32 2.0, %v526_v7  ;;  %v527_v11 = vadd.f32 %v521_v9, %v398_v6 }
 0x22e   :  { %v523_v13 = vpop.f32.mrf.mxu1 }
 0x22f   :  { %v530_v36 = vsel %vm3220_vm13, %v528_v10, %v526_v7  ;;  %v529_v14 = vmul.f32 2.0, %v527_v11 }
 0x230   :  { %v2501_v15 = vmul.f32 -1.442695, %v530_v36  ;;  %v524_v16 = vpop.f32.mrf.mxu1 }
 0x231   :  { %v531_v17 = vsel %vm3224_vm14, %v529_v14, %v527_v11 }
 0x232   :  { %2753 = vpow2.f32 %v2501_v15  ;;  %v2502_v18 = vmul.f32 -1.442695, %v531_v17 }
 0x234   :  { %2755 = vpow2.f32 %v2502_v18 }
 0x23f   :  { %v2754_v19 = vpop.eup %2753 }
 0x240   :  { %v538_v20 = vadd.f32 1.0, %v2754_v19 }
 0x241   :  { %v2756_v23 = vpop.eup %2755 }
 0x242   :  { %2757 = vrcp.f32 %v538_v20  ;;  %v539_v25 = vadd.f32 1.0, %v2756_v23 }
 0x244   :  { %2759 = vrcp.f32 %v539_v25 }
 0x24f   :  { %v2758_v26 = vpop.eup %2757 }
 0x250   :  { %v544_v27 = vmul.f32 2.0, %v2758_v26 }
 0x251   :  { %v2760_v28 = vpop.eup %2759 }
 0x252   :  { %v2503_v30 = vadd.f32 -1.0, %v544_v27  ;;  %v545_v32 = vmul.f32 2.0, %v2760_v28 }
 0x254   :  { %v548_v34 = vsel %vm3220_vm13, %v2503_v30, %v2758_v26  ;;  %v2504_v37 = vadd.f32 -1.0, %v545_v32 }
 0x255   :  { %556 = vrot.lane.b32.xlu1 %v548_v34, %s2915_s4 }
 0x256   :  { %v549_v39 = vsel %vm3224_vm14, %v2504_v37, %v2760_v28 }
 0x257   :  { %551 = vrot.lane.b32.xlu0 %v549_v39, %s2916_s23 }
 0x259   :  { %563 = vrot.lane.b32.xlu1 %v549_v39, %s2915_s4 }
 0x25b   :  { %560 = vrot.lane.b32.xlu0 %v548_v34, %s2917_s24 }
 0x25d   :  { %570 = vrot.lane.b32.xlu1 %v549_v39, %s2917_s24 }
 0x25f   :  { %567 = vrot.lane.b32.xlu0 %v548_v34, %s2916_s23 }
 0x2c7   :  { %v557_v41 = vpop.permute.xlu1 %556 }
 0x2c8   :  { %v559_v45 = vsel %vm314_vm8, %v557_v41, %v549_v39 }
 0x2c9   :  { %v552_v43 = vpop.permute.xlu0 %551  ;;  %v574_v63 = vmul.f32 0.0, %v559_v45 }
 0x2ca   :  { %v554_v59 = vsel %vm314_vm8, %v548_v34, %v552_v43 }
 0x2cb   :  { %v564_v47 = vpop.permute.xlu1 %563 }
 0x2cd   :  { %v561_v57 = vpop.permute.xlu0 %560 }
 0x2ce   :  { %v566_v61 = vsel %vm314_vm8, %v561_v57, %v564_v47 }
 0x2cf   :  { %v575_v1 = vmul.f32 %v566_v61, %v554_v59  ;;  %v571_v5 = vpop.permute.xlu1 %570 }
 0x2d1   :  { %v3245_v3 = vadd.f32 %v575_v1, %v574_v63  ;;  %v568_v4 = vpop.permute.xlu0 %567 }
 0x2d2   :  { %v573_v7 = vsel %vm314_vm8, %v568_v4, %v571_v5 }
 0x2d3   :  { %2761 = vtanh.f32 %v3245_v3 }
 0x2e0   :  { %v2762_v6 = vpop.eup %2761 }
 0x2e1   :  { %v578_v9 = vmul.f32 %v2762_v6, %v573_v7 }
 0x2e3   :  { %579 = vst.msk [vmem:[#allocation3] sm:$0xff] %vm314_vm8, %v578_v9  ;;  %v584_v10 = vpack.c.bf16 %v578_v9, %v578_v9 }
 0x2e4   :  { %581 = vst.msk [vmem:[#allocation3 + $0x38] sm:$0xff] %vm580_vm15, %v578_v9 }
 0x2e5   :  { %2505 = vmatmul.mubr.msk.bf16.vlgmr.msra.gmra.mxu0 %vm481_vm0, %v584_v10 }
 0x2e6   :  { %801 = vmatpush1.bf16.msra.mxu0 %v3109_v49  ;;  %824 = vmatprep.mubr.bf16.mxu0 %v2913_v0 }
 0x2e7   :  { %802 = vmatprep.subr.bf16.mxu0 %v3117_v50 }
 0x2ea   :  { %803 = vmatpush1.bf16.msra.mxu0 %v3122_v51 }
 0x2eb   :  { %804 = vmatprep.subr.bf16.mxu0 %v3127_v52 }
 0x2ee   :  { %805 = vmatpush1.bf16.msra.mxu0 %v3135_v53 }
 0x2ef   :  { %806 = vmatprep.subr.bf16.mxu0 %v3140_v54 }
 0x2f2   :  { %807 = vmatpush1.bf16.msra.mxu0 %v3147_v55 }
 0x2f3   :  { %1004 = vmatprep.subr.bf16.mxu0 %v3104_v48 }
 0x3a5   :  { %v622_v11 = vpop.f32.mrf.mxu0 }
 0x3a6   :  { %v629_v13 = vadd.f32 %v622_v11, %v3191_v31 }
 0x3a7   :  { %v624_v36 = vpop.f32.mrf.mxu0 }
 0x3a8   :  { %v631_v14 = vmul.f32 2.0, %v629_v13  ;;  %v630_v15 = vadd.f32 %v624_v36, %v3213_v62 }
 0x3a9   :  { %v626_v16 = vpop.f32.mrf.mxu0 }
 0x3aa   :  { %v633_v17 = vsel %vm3220_vm13, %v631_v14, %v629_v13  ;;  %v632_v18 = vmul.f32 2.0, %v630_v15 }
 0x3ab   :  { %v2506_v19 = vmul.f32 -1.442695, %v633_v17  ;;  %v627_v20 = vpop.f32.mrf.mxu0 }
 0x3ac   :  { %v634_v23 = vsel %vm3224_vm14, %v632_v18, %v630_v15 }
 0x3ad   :  { %2763 = vpow2.f32 %v2506_v19  ;;  %v2507_v25 = vmul.f32 -1.442695, %v634_v23 }
 0x3af   :  { %2765 = vpow2.f32 %v2507_v25 }
 0x3ba   :  { %v2764_v26 = vpop.eup %2763 }
 0x3bb   :  { %v641_v27 = vadd.f32 1.0, %v2764_v26 }
 0x3bc   :  { %v2766_v31 = vpop.eup %2765 }
 0x3bd   :  { %2767 = vrcp.f32 %v641_v27  ;;  %v642_v28 = vadd.f32 1.0, %v2766_v31 }
 0x3bf   :  { %2769 = vrcp.f32 %v642_v28 }
 0x3ca   :  { %v2768_v62 = vpop.eup %2767 }
 0x3cb   :  { %v647_v30 = vmul.f32 2.0, %v2768_v62 }
 0x3cc   :  { %v2770_v32 = vpop.eup %2769 }
 0x3cd   :  { %v2508_v34 = vadd.f32 -1.0, %v647_v30  ;;  %v648_v37 = vmul.f32 2.0, %v2770_v32 }
 0x3cf   :  { %v651_v39 = vsel %vm3220_vm13, %v2508_v34, %v2768_v62  ;;  %v2509_v41 = vadd.f32 -1.0, %v648_v37 }
 0x3d0   :  { %659 = vrot.lane.b32.xlu1 %v651_v39, %s2915_s4 }
 0x3d1   :  { %v652_v43 = vsel %vm3224_vm14, %v2509_v41, %v2770_v32 }
 0x3d2   :  { %654 = vrot.lane.b32.xlu0 %v652_v43, %s2916_s23 }
 0x3d4   :  { %666 = vrot.lane.b32.xlu1 %v652_v43, %s2915_s4 }
 0x3d6   :  { %663 = vrot.lane.b32.xlu0 %v651_v39, %s2917_s24 }
 0x3d8   :  { %673 = vrot.lane.b32.xlu1 %v652_v43, %s2917_s24 }
 0x3da   :  { %670 = vrot.lane.b32.xlu0 %v651_v39, %s2916_s23 }
 0x442   :  { %v660_v45 = vpop.permute.xlu1 %659 }
 0x443   :  { %v662_v57 = vsel %vm314_vm8, %v660_v45, %v652_v43 }
 0x444   :  { %v655_v47 = vpop.permute.xlu0 %654  ;;  %v677_v4 = vmul.f32 %v662_v57, %v3245_v3 }
 0x445   :  { %v657_v63 = vsel %vm314_vm8, %v651_v39, %v655_v47 }
 0x446   :  { %v667_v59 = vpop.permute.xlu1 %666 }
 0x448   :  { %v664_v61 = vpop.permute.xlu0 %663 }
 0x449   :  { %v669_v1 = vsel %vm314_vm8, %v664_v61, %v667_v59 }
 0x44a   :  { %v678_v5 = vmul.f32 %v669_v1, %v657_v63  ;;  %v674_v9 = vpop.permute.xlu1 %673 }
 0x44c   :  { %v679_v6 = vadd.f32 %v678_v5, %v677_v4  ;;  %v671_v7 = vpop.permute.xlu0 %670 }
 0x44d   :  { %v676_v11 = vsel %vm314_vm8, %v671_v7, %v674_v9 }
 0x44e   :  { %2771 = vtanh.f32 %v679_v6 }
 0x45b   :  { %v2772_v10 = vpop.eup %2771 }
 0x45c   :  { %v681_v13 = vmul.f32 %v2772_v10, %v676_v11 }
 0x45e   :  { %682 = vst.msk [vmem:[#allocation3 + $0x8] sm:$0xff] %vm314_vm8, %v681_v13  ;;  %v686_v36 = vpack.c.bf16 %v681_v13, %v681_v13 }
 0x45f   :  { %683 = vst.msk [vmem:[#allocation3 + $0x30] sm:$0xff] %vm580_vm15, %v681_v13 }
 0x460   :  { %2510 = vmatmul.mubr.msk.bf16.vlgmr.msra.gmra.mxu1 %vm481_vm0, %v686_v36 }
 0x461   :  { %903 = vmatpush1.bf16.msra.mxu1 %v3109_v49  ;;  %926 = vmatprep.mubr.bf16.mxu1 %v2913_v0 }
 0x462   :  { %904 = vmatprep.subr.bf16.mxu1 %v3117_v50 }
 0x465   :  { %905 = vmatpush1.bf16.msra.mxu1 %v3122_v51 }
 0x466   :  { %906 = vmatprep.subr.bf16.mxu1 %v3127_v52 }
 0x469   :  { %907 = vmatpush1.bf16.msra.mxu1 %v3135_v53 }
 0x46a   :  { %908 = vmatprep.subr.bf16.mxu1 %v3140_v54 }
 0x46d   :  { %909 = vmatpush1.bf16.msra.mxu1 %v3147_v55 }
 0x46e   :  { %1106 = vmatprep.subr.bf16.mxu1 %v3104_v48 }
 0x520   :  { %v724_v3 = vpop.f32.mrf.mxu1 }
 0x521   :  { %v731_v14 = vadd.f32 %v724_v3, %v3195_v35 }
 0x522   :  { %v726_v15 = vpop.f32.mrf.mxu1 }
 0x523   :  { %v733_v16 = vmul.f32 2.0, %v731_v14  ;;  %v732_v17 = vadd.f32 %v726_v15, %v3209_v58 }
 0x524   :  { %v728_v18 = vpop.f32.mrf.mxu1 }
 0x525   :  { %v735_v19 = vsel %vm3220_vm13, %v733_v16, %v731_v14  ;;  %v734_v20 = vmul.f32 2.0, %v732_v17 }
 0x526   :  { %v2511_v23 = vmul.f32 -1.442695, %v735_v19  ;;  %v729_v25 = vpop.f32.mrf.mxu1 }
 0x527   :  { %v736_v26 = vsel %vm3224_vm14, %v734_v20, %v732_v17 }
 0x528   :  { %2773 = vpow2.f32 %v2511_v23  ;;  %v2512_v27 = vmul.f32 -1.442695, %v736_v26 }
 0x52a   :  { %2775 = vpow2.f32 %v2512_v27 }
 0x535   :  { %v2774_v31 = vpop.eup %2773 }
 0x536   :  { %v743_v28 = vadd.f32 1.0, %v2774_v31 }
 0x537   :  { %v2776_v35 = vpop.eup %2775 }
 0x538   :  { %2777 = vrcp.f32 %v743_v28  ;;  %v744_v62 = vadd.f32 1.0, %v2776_v35 }
 0x53a   :  { %2779 = vrcp.f32 %v744_v62 }
 0x545   :  { %v2778_v58 = vpop.eup %2777 }
 0x546   :  { %v749_v30 = vmul.f32 2.0, %v2778_v58 }
 0x547   :  { %v2780_v32 = vpop.eup %2779 }
 0x548   :  { %v2513_v34 = vadd.f32 -1.0, %v749_v30  ;;  %v750_v37 = vmul.f32 2.0, %v2780_v32 }
 0x54a   :  { %v753_v39 = vsel %vm3220_vm13, %v2513_v34, %v2778_v58  ;;  %v2514_v41 = vadd.f32 -1.0, %v750_v37 }
 0x54b   :  { %761 = vrot.lane.b32.xlu1 %v753_v39, %s2915_s4 }
 0x54c   :  { %v754_v43 = vsel %vm3224_vm14, %v2514_v41, %v2780_v32 }
 0x54d   :  { %756 = vrot.lane.b32.xlu0 %v754_v43, %s2916_s23 }
 0x54f   :  { %768 = vrot.lane.b32.xlu1 %v754_v43, %s2915_s4 }
 0x551   :  { %765 = vrot.lane.b32.xlu0 %v753_v39, %s2917_s24 }
 0x553   :  { %775 = vrot.lane.b32.xlu1 %v754_v43, %s2917_s24 }
 0x555   :  { %772 = vrot.lane.b32.xlu0 %v753_v39, %s2916_s23 }
 0x5bd   :  { %v762_v45 = vpop.permute.xlu1 %761 }
 0x5be   :  { %v764_v57 = vsel %vm314_vm8, %v762_v45, %v754_v43 }
 0x5bf   :  { %v757_v47 = vpop.permute.xlu0 %756  ;;  %v779_v4 = vmul.f32 %v764_v57, %v679_v6 }
 0x5c0   :  { %v759_v63 = vsel %vm314_vm8, %v753_v39, %v757_v47 }
 0x5c1   :  { %v769_v59 = vpop.permute.xlu1 %768 }
 0x5c3   :  { %v766_v61 = vpop.permute.xlu0 %765 }
 0x5c4   :  { %v771_v1 = vsel %vm314_vm8, %v766_v61, %v769_v59 }
 0x5c5   :  { %v780_v5 = vmul.f32 %v771_v1, %v759_v63  ;;  %v776_v10 = vpop.permute.xlu1 %775 }
 0x5c7   :  { %v781_v7 = vadd.f32 %v780_v5, %v779_v4  ;;  %v773_v9 = vpop.permute.xlu0 %772 }
 0x5c8   :  { %v778_v13 = vsel %vm314_vm8, %v773_v9, %v776_v10 }
 0x5c9   :  { %2781 = vtanh.f32 %v781_v7 }
 0x5d6   :  { %v2782_v11 = vpop.eup %2781 }
 0x5d7   :  { %v783_v36 = vmul.f32 %v2782_v11, %v778_v13 }
 0x5d9   :  { %784 = vst.msk [vmem:[#allocation3 + $0x10] sm:$0xff] %vm314_vm8, %v783_v36  ;;  %v788_v3 = vpack.c.bf16 %v783_v36, %v783_v36 }
 0x5da   :  { %785 = vst.msk [vmem:[#allocation3 + $0x28] sm:$0xff] %vm580_vm15, %v783_v36 }
 0x5db   :  { %2515 = vmatmul.mubr.msk.bf16.vlgmr.msra.gmra.mxu0 %vm481_vm0, %v788_v3 }
 0x5dc   :  { %1005 = vmatpush1.bf16.msra.mxu0 %v3109_v49  ;;  %1028 = vmatprep.mubr.bf16.mxu0 %v2913_v0 }
 0x5dd   :  { %1006 = vmatprep.subr.bf16.mxu0 %v3117_v50 }
 0x5e0   :  { %1007 = vmatpush1.bf16.msra.mxu0 %v3122_v51 }
 0x5e1   :  { %1008 = vmatprep.subr.bf16.mxu0 %v3127_v52 }
 0x5e4   :  { %1009 = vmatpush1.bf16.msra.mxu0 %v3135_v53 }
 0x5e5   :  { %1010 = vmatprep.subr.bf16.mxu0 %v3140_v54 }
 0x5e8   :  { %1011 = vmatpush1.bf16.msra.mxu0 %v3147_v55 }
 0x5e9   :  { %1208 = vmatprep.subr.bf16.mxu0 %v3104_v48 }
 0x69b   :  { %v826_v6 = vpop.f32.mrf.mxu0 }
 0x69c   :  { %v833_v14 = vadd.f32 %v826_v6, %v3199_v40 }
 0x69d   :  { %v828_v15 = vpop.f32.mrf.mxu0 }
 0x69e   :  { %v835_v16 = vmul.f32 2.0, %v833_v14  ;;  %v834_v17 = vadd.f32 %v828_v15, %v3205_v46 }
 0x69f   :  { %v830_v18 = vpop.f32.mrf.mxu0 }
 0x6a0   :  { %v837_v19 = vsel %vm3220_vm13, %v835_v16, %v833_v14  ;;  %v836_v20 = vmul.f32 2.0, %v834_v17 }
 0x6a1   :  { %v2516_v23 = vmul.f32 -1.442695, %v837_v19  ;;  %v831_v25 = vpop.f32.mrf.mxu0 }
 0x6a2   :  { %v838_v26 = vsel %vm3224_vm14, %v836_v20, %v834_v17 }
 0x6a3   :  { %2783 = vpow2.f32 %v2516_v23  ;;  %v2517_v27 = vmul.f32 -1.442695, %v838_v26 }
 0x6a5   :  { %2785 = vpow2.f32 %v2517_v27 }
 0x6b0   :  { %v2784_v48 = vpop.eup %2783 }
 0x6b1   :  { %v845_v31 = vadd.f32 1.0, %v2784_v48 }
 0x6b2   :  { %v2786_v40 = vpop.eup %2785 }
 0x6b3   :  { %2787 = vrcp.f32 %v845_v31  ;;  %v846_v28 = vadd.f32 1.0, %v2786_v40 }
 0x6b5   :  { %2789 = vrcp.f32 %v846_v28 }
 0x6c0   :  { %v2788_v46 = vpop.eup %2787 }
 0x6c1   :  { %v851_v35 = vmul.f32 2.0, %v2788_v46 }
 0x6c2   :  { %v2790_v62 = vpop.eup %2789 }
 0x6c3   :  { %v2518_v58 = vadd.f32 -1.0, %v851_v35  ;;  %v852_v30 = vmul.f32 2.0, %v2790_v62 }
 0x6c5   :  { %v855_v32 = vsel %vm3220_vm13, %v2518_v58, %v2788_v46  ;;  %v2519_v34 = vadd.f32 -1.0, %v852_v30 }
 0x6c6   :  { %863 = vrot.lane.b32.xlu1 %v855_v32, %s2915_s4 }
 0x6c7   :  { %v856_v37 = vsel %vm3224_vm14, %v2519_v34, %v2790_v62 }
 0x6c8   :  { %858 = vrot.lane.b32.xlu0 %v856_v37, %s2916_s23 }
 0x6ca   :  { %870 = vrot.lane.b32.xlu1 %v856_v37, %s2915_s4 }
 0x6cc   :  { %867 = vrot.lane.b32.xlu0 %v855_v32, %s2917_s24 }
 0x6ce   :  { %877 = vrot.lane.b32.xlu1 %v856_v37, %s2917_s24 }
 0x6d0   :  { %874 = vrot.lane.b32.xlu0 %v855_v32, %s2916_s23 }
 0x738   :  { %v864_v39 = vpop.permute.xlu1 %863 }
 0x739   :  { %v866_v43 = vsel %vm314_vm8, %v864_v39, %v856_v37 }
 0x73a   :  { %v859_v41 = vpop.permute.xlu0 %858  ;;  %v881_v61 = vmul.f32 %v866_v43, %v781_v7 }
 0x73b   :  { %v861_v57 = vsel %vm314_vm8, %v855_v32, %v859_v41 }
 0x73c   :  { %v871_v45 = vpop.permute.xlu1 %870 }
 0x73e   :  { %v868_v47 = vpop.permute.xlu0 %867 }
 0x73f   :  { %v873_v59 = vsel %vm314_vm8, %v868_v47, %v871_v45 }
 0x740   :  { %v882_v63 = vmul.f32 %v873_v59, %v861_v57  ;;  %v878_v5 = vpop.permute.xlu1 %877 }
 0x742   :  { %v883_v1 = vadd.f32 %v882_v63, %v881_v61  ;;  %v875_v4 = vpop.permute.xlu0 %874 }
 0x743   :  { %v880_v10 = vsel %vm314_vm8, %v875_v4, %v878_v5 }
 0x744   :  { %2791 = vtanh.f32 %v883_v1 }
 0x751   :  { %v2792_v9 = vpop.eup %2791 }
 0x752   :  { %v885_v11 = vmul.f32 %v2792_v9, %v880_v10 }
 0x754   :  { %886 = vst.msk [vmem:[#allocation3 + $0x18] sm:$0xff] %vm314_vm8, %v885_v11  ;;  %v890_v13 = vpack.c.bf16 %v885_v11, %v885_v11 }
 0x755   :  { %887 = vst.msk [vmem:[#allocation3 + $0x20] sm:$0xff] %vm580_vm15, %v885_v11 }
 0x756   :  { %2520 = vmatmul.mubr.msk.bf16.vlgmr.msra.gmra.mxu1 %vm481_vm0, %v890_v13 }
 0x757   :  { %1107 = vmatpush1.bf16.msra.mxu1 %v3109_v49  ;;  %1130 = vmatprep.mubr.bf16.mxu1 %v2913_v0 }
 0x758   :  { %1108 = vmatprep.subr.bf16.mxu1 %v3117_v50 }
 0x75b   :  { %1109 = vmatpush1.bf16.msra.mxu1 %v3122_v51 }
 0x75c   :  { %1110 = vmatprep.subr.bf16.mxu1 %v3127_v52 }
 0x75f   :  { %1111 = vmatpush1.bf16.msra.mxu1 %v3135_v53 }
 0x760   :  { %1112 = vmatprep.subr.bf16.mxu1 %v3140_v54 }
 0x763   :  { %1113 = vmatpush1.bf16.msra.mxu1 %v3147_v55 }
 0x816   :  { %v928_v7 = vpop.f32.mrf.mxu1 }
 0x817   :  { %v935_v36 = vadd.f32 %v928_v7, %v3203_v44 }
 0x818   :  { %v930_v3 = vpop.f32.mrf.mxu1 }
 0x819   :  { %v937_v6 = vmul.f32 2.0, %v935_v36  ;;  %v936_v14 = vadd.f32 %v930_v3, %v3201_v42 }
 0x81a   :  { %v932_v15 = vpop.f32.mrf.mxu1 }
 0x81b   :  { %v939_v16 = vsel %vm3220_vm13, %v937_v6, %v935_v36  ;;  %v938_v17 = vmul.f32 2.0, %v936_v14 }
 0x81c   :  { %v2521_v18 = vmul.f32 -1.442695, %v939_v16  ;;  %v933_v19 = vpop.f32.mrf.mxu1 }
 0x81d   :  { %v940_v20 = vsel %vm3224_vm14, %v938_v17, %v936_v14 }
 0x81e   :  { %2793 = vpow2.f32 %v2521_v18  ;;  %v2522_v23 = vmul.f32 -1.442695, %v940_v20 }
 0x820   :  { %2795 = vpow2.f32 %v2522_v23 }
 0x82b   :  { %v2794_v25 = vpop.eup %2793 }
 0x82c   :  { %v947_v26 = vadd.f32 1.0, %v2794_v25 }
 0x82d   :  { %v2796_v44 = vpop.eup %2795 }
 0x82e   :  { %2797 = vrcp.f32 %v947_v26  ;;  %v948_v27 = vadd.f32 1.0, %v2796_v44 }
 0x830   :  { %2799 = vrcp.f32 %v948_v27 }
 0x83b   :  { %v2798_v42 = vpop.eup %2797 }
 0x83c   :  { %v953_v48 = vmul.f32 2.0, %v2798_v42 }
 0x83d   :  { %v2800_v31 = vpop.eup %2799 }
 0x83e   :  { %v2523_v40 = vadd.f32 -1.0, %v953_v48  ;;  %v954_v28 = vmul.f32 2.0, %v2800_v31 }
 0x840   :  { %v957_v46 = vsel %vm3220_vm13, %v2523_v40, %v2798_v42  ;;  %v2524_v35 = vadd.f32 -1.0, %v954_v28 }
 0x841   :  { %965 = vrot.lane.b32.xlu1 %v957_v46, %s2915_s4 }
 0x842   :  { %v958_v62 = vsel %vm3224_vm14, %v2524_v35, %v2800_v31 }
 0x843   :  { %960 = vrot.lane.b32.xlu0 %v958_v62, %s2916_s23 }
 0x845   :  { %972 = vrot.lane.b32.xlu1 %v958_v62, %s2915_s4 }
 0x847   :  { %969 = vrot.lane.b32.xlu0 %v957_v46, %s2917_s24 }
 0x849   :  { %979 = vrot.lane.b32.xlu1 %v958_v62, %s2917_s24 }
 0x84b   :  { %976 = vrot.lane.b32.xlu0 %v957_v46, %s2916_s23 }
 0x8b3   :  { %v966_v58 = vpop.permute.xlu1 %965 }
 0x8b4   :  { %v968_v32 = vsel %vm314_vm8, %v966_v58, %v958_v62 }
 0x8b5   :  { %v961_v30 = vpop.permute.xlu0 %960  ;;  %v983_v43 = vmul.f32 %v968_v32, %v883_v1 }
 0x8b6   :  { %v963_v39 = vsel %vm314_vm8, %v957_v46, %v961_v30 }
 0x8b7   :  { %v973_v34 = vpop.permute.xlu1 %972 }
 0x8b9   :  { %v970_v37 = vpop.permute.xlu0 %969 }
 0x8ba   :  { %v975_v41 = vsel %vm314_vm8, %v970_v37, %v973_v34 }
 0x8bb   :  { %v984_v45 = vmul.f32 %v975_v41, %v963_v39  ;;  %v980_v59 = vpop.permute.xlu1 %979 }
 0x8bd   :  { %v985_v47 = vadd.f32 %v984_v45, %v983_v43  ;;  %v977_v57 = vpop.permute.xlu0 %976 }
 0x8be   :  { %v982_v63 = vsel %vm314_vm8, %v977_v57, %v980_v59 }
 0x8bf   :  { %2801 = vtanh.f32 %v985_v47 }
 0x8cc   :  { %v2802_v61 = vpop.eup %2801 }
 0x8cd   :  { %v987_v4 = vmul.f32 %v2802_v61, %v982_v63 }
 0x8cf   :  { %988 = vst.msk [vmem:[#allocation3 + $0x20] sm:$0xff] %vm314_vm8, %v987_v4  ;;  %v992_v5 = vpack.c.bf16 %v987_v4, %v987_v4 }
 0x8d0   :  { %989 = vst.msk [vmem:[#allocation3 + $0x18] sm:$0xff] %vm580_vm15, %v987_v4 }
 0x8d1   :  { %2525 = vmatmul.mubr.msk.bf16.vlgmr.msra.gmra.mxu0 %vm481_vm0, %v992_v5 }
 0x8d2   :  { %1209 = vmatpush1.bf16.msra.mxu0 %v3109_v49  ;;  %1232 = vmatprep.mubr.bf16.mxu0 %v2913_v0 }
 0x8d3   :  { %1210 = vmatprep.subr.bf16.mxu0 %v3117_v50 }
 0x8d6   :  { %1211 = vmatpush1.bf16.msra.mxu0 %v3122_v51 }
 0x8d7   :  { %1212 = vmatprep.subr.bf16.mxu0 %v3127_v52 }
 0x8da   :  { %1213 = vmatpush1.bf16.msra.mxu0 %v3135_v53 }
 0x8db   :  { %1214 = vmatprep.subr.bf16.mxu0 %v3140_v54 }
 0x8de   :  { %1215 = vmatpush1.bf16.msra.mxu0 %v3147_v55 }
 0x991   :  { %v1030_v1 = vpop.f32.mrf.mxu0 }
 0x992   :  { %v1037_v9 = vadd.f32 %v1030_v1, %v3207_v56 }
 0x993   :  { %v1032_v10 = vpop.f32.mrf.mxu0 }
 0x994   :  { %v1039_v11 = vmul.f32 2.0, %v1037_v9  ;;  %v1038_v49 = vadd.f32 %v1032_v10, %v3197_v38 }
 0x995   :  { %v1034_v13 = vpop.f32.mrf.mxu0 }
 0x996   :  { %v1041_v50 = vsel %vm3220_vm13, %v1039_v11, %v1037_v9  ;;  %v1040_v51 = vmul.f32 2.0, %v1038_v49 }
 0x997   :  { %v2526_v7 = vmul.f32 -1.442695, %v1041_v50  ;;  %v1035_v52 = vpop.f32.mrf.mxu0 }
 0x998   :  { %v1042_v53 = vsel %vm3224_vm14, %v1040_v51, %v1038_v49 }
 0x999   :  { %2803 = vpow2.f32 %v2526_v7  ;;  %v2527_v54 = vmul.f32 -1.442695, %v1042_v53 }
 0x99b   :  { %2805 = vpow2.f32 %v2527_v54 }
 0x9a6   :  { %v2804_v55 = vpop.eup %2803 }
 0x9a7   :  { %v1049_v36 = vadd.f32 1.0, %v2804_v55 }
 0x9a8   :  { %v2806_v56 = vpop.eup %2805 }
 0x9a9   :  { %2807 = vrcp.f32 %v1049_v36  ;;  %v1050_v3 = vadd.f32 1.0, %v2806_v56 }
 0x9ab   :  { %2809 = vrcp.f32 %v1050_v3 }
 0x9b6   :  { %v2808_v38 = vpop.eup %2807 }
 0x9b7   :  { %v1055_v6 = vmul.f32 2.0, %v2808_v38 }
 0x9b8   :  { %v2810_v14 = vpop.eup %2809 }
 0x9b9   :  { %v2528_v15 = vadd.f32 -1.0, %v1055_v6  ;;  %v1056_v16 = vmul.f32 2.0, %v2810_v14 }
 0x9bb   :  { %v1059_v17 = vsel %vm3220_vm13, %v2528_v15, %v2808_v38  ;;  %v2529_v18 = vadd.f32 -1.0, %v1056_v16 }
 0x9bc   :  { %1067 = vrot.lane.b32.xlu1 %v1059_v17, %s2915_s4 }
 0x9bd   :  { %v1060_v19 = vsel %vm3224_vm14, %v2529_v18, %v2810_v14 }
 0x9be   :  { %1062 = vrot.lane.b32.xlu0 %v1060_v19, %s2916_s23 }
 0x9c0   :  { %1074 = vrot.lane.b32.xlu1 %v1060_v19, %s2915_s4 }
 0x9c2   :  { %1071 = vrot.lane.b32.xlu0 %v1059_v17, %s2917_s24 }
 0x9c4   :  { %1081 = vrot.lane.b32.xlu1 %v1060_v19, %s2917_s24 }
 0x9c6   :  { %1078 = vrot.lane.b32.xlu0 %v1059_v17, %s2916_s23 }
 0xa2e   :  { %v1068_v20 = vpop.permute.xlu1 %1067 }
 0xa2f   :  { %v1070_v25 = vsel %vm314_vm8, %v1068_v20, %v1060_v19 }
 0xa30   :  { %v1063_v23 = vpop.permute.xlu0 %1062  ;;  %v1085_v48 = vmul.f32 %v1070_v25, %v985_v47 }
 0xa31   :  { %v1065_v27 = vsel %vm314_vm8, %v1059_v17, %v1063_v23 }
 0xa32   :  { %v1075_v26 = vpop.permute.xlu1 %1074 }
 0xa34   :  { %v1072_v44 = vpop.permute.xlu0 %1071 }
 0xa35   :  { %v1077_v42 = vsel %vm314_vm8, %v1072_v44, %v1075_v26 }
 0xa36   :  { %v1086_v31 = vmul.f32 %v1077_v42, %v1065_v27  ;;  %v1082_v46 = vpop.permute.xlu1 %1081 }
 0xa38   :  { %v1087_v40 = vadd.f32 %v1086_v31, %v1085_v48  ;;  %v1079_v28 = vpop.permute.xlu0 %1078 }
 0xa39   :  { %v1084_v62 = vsel %vm314_vm8, %v1079_v28, %v1082_v46 }
 0xa3a   :  { %2811 = vtanh.f32 %v1087_v40 }
 0xa47   :  { %v2812_v35 = vpop.eup %2811 }
 0xa48   :  { %v1089_v58 = vmul.f32 %v2812_v35, %v1084_v62 }
 0xa4a   :  { %1090 = vst.msk [vmem:[#allocation3 + $0x28] sm:$0xff] %vm314_vm8, %v1089_v58  ;;  %v1094_v30 = vpack.c.bf16 %v1089_v58, %v1089_v58 }
 0xa4b   :  { %1091 = vst.msk [vmem:[#allocation3 + $0x10] sm:$0xff] %vm580_vm15, %v1089_v58 }
 0xa4c   :  { %2530 = vmatmul.mubr.msk.bf16.vlgmr.msra.gmra.mxu1 %vm481_vm0, %v1094_v30 }
 0xa4d   :  { %1412 = vmatprep.mubr.bf16.mxu1 %v2913_v0 }
 0xb0c   :  { %v1132_v32 = vpop.f32.mrf.mxu1 }
 0xb0d   :  { %v1139_v34 = vadd.f32 %v1132_v32, %v3211_v60 }
 0xb0e   :  { %v1134_v37 = vpop.f32.mrf.mxu1 }
 0xb0f   :  { %v1141_v39 = vmul.f32 2.0, %v1139_v34  ;;  %v1140_v41 = vadd.f32 %v1134_v37, %v3193_v33 }
 0xb10   :  { %v1136_v43 = vpop.f32.mrf.mxu1 }
 0xb11   :  { %v1143_v45 = vsel %vm3220_vm13, %v1141_v39, %v1139_v34  ;;  %v1142_v47 = vmul.f32 2.0, %v1140_v41 }
 0xb12   :  { %v2531_v57 = vmul.f32 -1.442695, %v1143_v45  ;;  %v1137_v59 = vpop.f32.mrf.mxu1  ;;  %v2727_v45 = vld [vmem:[%s3871_s6 + $0x34] ss:$8 sps:$4 sm:$0xff]  }
 0xb13   :  { %v1144_v61 = vsel %vm3224_vm14, %v1142_v47, %v1140_v41  ;;  %v2725_v47 = vld [vmem:[%s3871_s6 + $0x30] ss:$8 sps:$4 sm:$0xff]   ;;  %1388 = vmatprep.subr.bf16.mxu1 %v2727_v45 }
 0xb14   :  { %2813 = vpow2.f32 %v2531_v57  ;;  %v2532_v63 = vmul.f32 -1.442695, %v1144_v61  ;;  %v3463_v57 = vld [vmem:[%s3872_s8 + $0x34] ss:$8 sps:$4 sm:$0xff]   ;;  %1389 = vmatpush1.bf16.msra.mxu1 %v2725_v47  ;;  %v3468_v59 = vld [vmem:[%s3872_s8 + $0x30] ss:$8 sps:$4 sm:$0xff]  }
 0xb15   :  { %1527 = vmatprep.subr.bf16.mxu0 %v3463_v57  ;;  %v2733_v61 = vld [vmem:[%s3871_s6 + $0x24] ss:$8 sps:$4 sm:$0xff]  }
 0xb16   :  { %2815 = vpow2.f32 %v2532_v63  ;;  %v2731_v63 = vld [vmem:[%s3871_s6 + $0x20] ss:$8 sps:$4 sm:$0xff]   ;;  %1390 = vmatprep.subr.bf16.mxu1 %v2733_v61 }
 0xb18   :  { %1391 = vmatpush1.bf16.msra.mxu1 %v2731_v63 }
 0xb21   :  { %v2814_v4 = vpop.eup %2813 }
 0xb22   :  { %v1151_v5 = vadd.f32 1.0, %v2814_v4  ;;  %v3482_v4 = vld [vmem:[%s3872_s8 + $0x24] ss:$8 sps:$4 sm:$0xff]  }
 0xb23   :  { %v2816_v60 = vpop.eup %2815 }
 0xb24   :  { %2817 = vrcp.f32 %v1151_v5  ;;  %v1152_v1 = vadd.f32 1.0, %v2816_v60  ;;  %v3487_v5 = vld [vmem:[%s3872_s8 + $0x20] ss:$8 sps:$4 sm:$0xff]   ;;  %v2737_v60 = vld [vmem:[%s3871_s6 + $0x10] ss:$8 sps:$4 sm:$0xff]  }
 0xb26   :  { %2819 = vrcp.f32 %v1152_v1  ;;  %v2739_v1 = vld [vmem:[%s3871_s6 + $0x14] ss:$8 sps:$4 sm:$0xff]  }
 0xb27   :  { %1392 = vmatprep.subr.bf16.mxu1 %v2739_v1 }
 0xb28   :  { %1393 = vmatpush1.bf16.msra.mxu1 %v2737_v60 }
 0xb31   :  { %v2818_v33 = vpop.eup %2817 }
 0xb32   :  { %v1157_v9 = vmul.f32 2.0, %v2818_v33 }
 0xb33   :  { %v2820_v10 = vpop.eup %2819 }
 0xb34   :  { %v2533_v11 = vadd.f32 -1.0, %v1157_v9  ;;  %v1158_v49 = vmul.f32 2.0, %v2820_v10  ;;  %v3505_v9 = vld [vmem:[%s3872_s8 + $0x10] ss:$8 sps:$4 sm:$0xff]  }
 0xb36   :  { %v1161_v13 = vsel %vm3220_vm13, %v2533_v11, %v2818_v33  ;;  %v2534_v50 = vadd.f32 -1.0, %v1158_v49  ;;  %v3499_v33 = vld [vmem:[%s3872_s8 + $0x14] ss:$8 sps:$4 sm:$0xff]   ;;  %v3514_v11 = vld [vmem:[%s3872_s8 + $0x4] ss:$8 sps:$4 sm:$0xff]  }
 0xb37   :  { %1169 = vrot.lane.b32.xlu1 %v1161_v13, %s2915_s4  ;;  %v2743_v49 = vld [vmem:[%s3871_s6] ss:$8 sps:$4 sm:$0xff]  }
 0xb38   :  { %v1162_v51 = vsel %vm3224_vm14, %v2534_v50, %v2820_v10  ;;  %v2745_v10 = vld [vmem:[%s3871_s6 + $0x4] ss:$8 sps:$4 sm:$0xff]  }
 0xb39   :  { %1164 = vrot.lane.b32.xlu0 %v1162_v51, %s2916_s23  ;;  %1394 = vmatprep.subr.bf16.mxu1 %v2745_v10 }
 0xb3a   :  { %1395 = vmatpush1.bf16.msra.mxu1 %v2743_v49 }
 0xb3b   :  { %1176 = vrot.lane.b32.xlu1 %v1162_v51, %s2915_s4  ;;  %1731 = vmatprep.subr.bf16.mxu1 %v3463_v57 }
 0xb3d   :  { %1173 = vrot.lane.b32.xlu0 %v1161_v13, %s2917_s24 }
 0xb3f   :  { %1183 = vrot.lane.b32.xlu1 %v1162_v51, %s2917_s24 }
 0xb41   :  { %1180 = vrot.lane.b32.xlu0 %v1161_v13, %s2916_s23 }
 0xba9   :  { %v1170_v7 = vpop.permute.xlu1 %1169 }
 0xbaa   :  { %v1172_v53 = vsel %vm314_vm8, %v1170_v7, %v1162_v51 }
 0xbab   :  { %v1165_v52 = vpop.permute.xlu0 %1164  ;;  %v1187_v3 = vmul.f32 %v1172_v53, %v1087_v40 }
 0xbac   :  { %v1167_v36 = vsel %vm314_vm8, %v1161_v13, %v1165_v52  ;;  %v3523_v13 = vld [vmem:[%s3872_s8] ss:$8 sps:$4 sm:$0xff]  }
 0xbad   :  { %v1177_v54 = vpop.permute.xlu1 %1176 }
 0xbaf   :  { %v1174_v55 = vpop.permute.xlu0 %1173 }
 0xbb0   :  { %v1179_v56 = vsel %vm314_vm8, %v1174_v55, %v1177_v54 }
 0xbb1   :  { %v1188_v38 = vmul.f32 %v1179_v56, %v1167_v36  ;;  %v1184_v15 = vpop.permute.xlu1 %1183 }
 0xbb3   :  { %v3431_v6 = vadd.f32 %v1188_v38, %v1187_v3  ;;  %v1181_v14 = vpop.permute.xlu0 %1180 }
 0xbb4   :  { %v1186_v17 = vsel %vm314_vm8, %v1181_v14, %v1184_v15 }
 0xbb5   :  { %2821 = vtanh.f32 %v3431_v6 }
 0xbc2   :  { %v2822_v16 = vpop.eup %2821 }
 0xbc3   :  { %v1191_v18 = vmul.f32 %v2822_v16, %v1186_v17 }
 0xbc5   :  { %1192 = vst.msk [vmem:[#allocation3 + $0x30] sm:$0xff] %vm314_vm8, %v1191_v18  ;;  %v1196_v19 = vpack.c.bf16 %v1191_v18, %v1191_v18 }
 0xbc6   :  { %1193 = vst.msk [vmem:[#allocation3 + $0x8] sm:$0xff] %vm580_vm15, %v1191_v18 }
 0xbc7   :  { %2535 = vmatmul.mubr.msk.bf16.vlgmr.msra.gmra.mxu0 %vm481_vm0, %v1196_v19 }
 0xbc8   :  { %1551 = vmatprep.mubr.bf16.mxu0 %v2913_v0  ;;  %1528 = vmatpush1.bf16.msra.mxu0 %v3468_v59 }
 0xbc9   :  { %1529 = vmatprep.subr.bf16.mxu0 %v3482_v4 }
 0xbcc   :  { %1530 = vmatpush1.bf16.msra.mxu0 %v3487_v5 }
 0xbcd   :  { %1531 = vmatprep.subr.bf16.mxu0 %v3499_v33  ;;  %v1297_v19 = vld [vmem:[#allocation3 + $0x8] sm:$0xff] }
 0xbd0   :  { %1532 = vmatpush1.bf16.msra.mxu0 %v3505_v9 }
 0xbd1   :  { %1533 = vmatprep.subr.bf16.mxu0 %v3514_v11 }
 0xbd4   :  { %1534 = vmatpush1.bf16.msra.mxu0 %v3523_v13 }
 0xbd5   :  { %1629 = vmatprep.subr.bf16.mxu0 %v3463_v57 }
 0xbd7   :  { %1552 = vmatmul.mubr.bf16.vlgmr.msra.gmra.mxu0 %v2913_v0 }
 0xbd8   :  { %1630 = vmatpush1.bf16.msra.mxu0 %v3468_v59  ;;  %1653 = vmatprep.mubr.bf16.mxu0 %v2913_v0 }
 0xbd9   :  { %1631 = vmatprep.subr.bf16.mxu0 %v3482_v4 }
 0xbdc   :  { %1632 = vmatpush1.bf16.msra.mxu0 %v3487_v5 }
 0xbdd   :  { %1633 = vmatprep.subr.bf16.mxu0 %v3499_v33 }
 0xbe0   :  { %1634 = vmatpush1.bf16.msra.mxu0 %v3505_v9 }
 0xbe1   :  { %1635 = vmatprep.subr.bf16.mxu0 %v3514_v11 }
 0xbe4   :  { %1636 = vmatpush1.bf16.msra.mxu0 %v3523_v13 }
 0xbe5   :  { %1833 = vmatprep.subr.bf16.mxu0 %v3463_v57 }
 0xc87   :  { %v1234_v20 = vpop.f32.mrf.mxu0 }
 0xc88   :  { %v1241_v23 = vadd.f32 %v1234_v20, %v3216_v2 }
 0xc89   :  { %v1236_v25 = vpop.f32.mrf.mxu0 }
 0xc8a   :  { %v1243_v26 = vmul.f32 2.0, %v1241_v23  ;;  %v1242_v44 = vadd.f32 %v1236_v25, %v3189_v29 }
 0xc8b   :  { %v1238_v27 = vpop.f32.mrf.mxu0 }
 0xc8c   :  { %v1245_v42 = vsel %vm3220_vm13, %v1243_v26, %v1241_v23  ;;  %v1244_v48 = vmul.f32 2.0, %v1242_v44  ;;  %v1299_v23 = vld [vmem:[#allocation3 + $0x18] sm:$0xff]  ;;  %v1301_v26 = vld [vmem:[#allocation3 + $0x28] sm:$0xff] }
 0xc8d   :  { %v2536_v31 = vmul.f32 -1.442695, %v1245_v42  ;;  %v1239_v40 = vpop.f32.mrf.mxu0 }
 0xc8e   :  { %v1246_v28 = vsel %vm3224_vm14, %v1244_v48, %v1242_v44  ;;  %v1300_v44 = vld [vmem:[#allocation3 + $0x20] sm:$0xff]  ;;  %v1302_v48 = vld [vmem:[#allocation3 + $0x30] sm:$0xff] }
 0xc8f   :  { %2823 = vpow2.f32 %v2536_v31  ;;  %v2537_v46 = vmul.f32 -1.442695, %v1246_v28  ;;  %v1306_v27 = vpack.c.bf16 %v1301_v26, %v1300_v44 }
 0xc91   :  { %2825 = vpow2.f32 %v2537_v46 }
 0xc97   :  { %v1553_v40 = vpop.f32.mrf.mxu0 }
 0xc99   :  { %v1555_v28 = vpop.f32.mrf.mxu0 }
 0xc9b   :  { %v1557_v46 = vpop.f32.mrf.mxu0 }
 0xc9c   :  { %v2824_v35 = vpop.eup %2823 }
 0xc9d   :  { %v1253_v62 = vadd.f32 1.0, %v2824_v35  ;;  %v1558_v35 = vpop.f32.mrf.mxu0 }
 0xc9e   :  { %v2826_v2 = vpop.eup %2825 }
 0xc9f   :  { %2827 = vrcp.f32 %v1253_v62  ;;  %v1254_v58 = vadd.f32 1.0, %v2826_v2  ;;  %v1316_v62 = vld [vmem:[%s3873_s7] sm:$0x3] }
 0xca0   :  { %v1321_v2 = vrot.slane %v1316_v62, %v286_v24 }
 0xca1   :  { %2829 = vrcp.f32 %v1254_v58  ;;  %v1325_v58 = vrot.slane %v1316_v62, %v290_v22 }
 0xcac   :  { %v2828_v29 = vpop.eup %2827 }
 0xcad   :  { %v1259_v30 = vmul.f32 2.0, %v2828_v29 }
 0xcae   :  { %v2830_v32 = vpop.eup %2829 }
 0xcaf   :  { %v2538_v34 = vadd.f32 -1.0, %v1259_v30  ;;  %v1260_v37 = vmul.f32 2.0, %v2830_v32 }
 0xcb1   :  { %v1263_v39 = vsel %vm3220_vm13, %v2538_v34, %v2828_v29  ;;  %v2539_v41 = vadd.f32 -1.0, %v1260_v37 }
 0xcb2   :  { %1271 = vrot.lane.b32.xlu1 %v1263_v39, %s2915_s4 }
 0xcb3   :  { %v1264_v43 = vsel %vm3224_vm14, %v2539_v41, %v2830_v32 }
 0xcb4   :  { %1266 = vrot.lane.b32.xlu0 %v1264_v43, %s2916_s23 }
 0xcb6   :  { %1278 = vrot.lane.b32.xlu1 %v1264_v43, %s2915_s4 }
 0xcb8   :  { %1275 = vrot.lane.b32.xlu0 %v1263_v39, %s2917_s24 }
 0xcba   :  { %1285 = vrot.lane.b32.xlu1 %v1264_v43, %s2917_s24 }
 0xcbc   :  { %1282 = vrot.lane.b32.xlu0 %v1263_v39, %s2916_s23 }
 0xd24   :  { %v1272_v50 = vpop.permute.xlu1 %1271 }
 0xd25   :  { %v1274_v7 = vsel %vm314_vm8, %v1272_v50, %v1264_v43 }
 0xd26   :  { %v1267_v51 = vpop.permute.xlu0 %1266  ;;  %v1289_v36 = vmul.f32 %v1274_v7, %v3431_v6  ;;  %v1298_v6 = vld [vmem:[#allocation3 + $0x10] sm:$0xff] }
 0xd27   :  { %v1269_v54 = vsel %vm314_vm8, %v1263_v39, %v1267_v51  ;;  %v1305_v25 = vpack.c.bf16 %v1299_v23, %v1298_v6 }
 0xd28   :  { %v1279_v52 = vpop.permute.xlu1 %1278 }
 0xd2a   :  { %v1276_v53 = vpop.permute.xlu0 %1275 }
 0xd2b   :  { %v1281_v55 = vsel %vm314_vm8, %v1276_v53, %v1279_v52 }
 0xd2c   :  { %v1290_v56 = vmul.f32 %v1281_v55, %v1269_v54  ;;  %v1286_v14 = vpop.permute.xlu1 %1285 }
 0xd2e   :  { %v1291_v3 = vadd.f32 %v1290_v56, %v1289_v36  ;;  %v1283_v38 = vpop.permute.xlu0 %1282 }
 0xd2f   :  { %v1288_v16 = vsel %vm314_vm8, %v1283_v38, %v1286_v14 }
 0xd30   :  { %2831 = vtanh.f32 %v1291_v3 }
 0xd3d   :  { %v2832_v15 = vpop.eup %2831 }
 0xd3e   :  { %v1293_v17 = vmul.f32 %v2832_v15, %v1288_v16 }
 0xd40   :  { %1294 = vst.msk [vmem:[#allocation3 + $0x38] sm:$0xff] %vm314_vm8, %v1293_v17 }
 0xd41   :  { %1295 = vst.msk [vmem:[#allocation3] sm:$0xff] %vm580_vm15, %v1293_v17 }
 0xd47   :  { %v1303_v42 = vld [vmem:[#allocation3 + $0x38] sm:$0xff] }
 0xd48   :  { %v1296_v18 = vld [vmem:[#allocation3] sm:$0xff]  ;;  %v1307_v31 = vpack.c.bf16 %v1303_v42, %v1302_v48 }
 0xd49   :  { %v1304_v20 = vpack.c.bf16 %v1297_v19, %v1296_v18 }
 0xd4b   :  { %2548 = vmatmul.mubr.msk.bf16.vlgmr.msra.gmra.mxu1 %vm481_vm0, %v1304_v20 }
 0xd4c   :  { %1422 = vmatprep.mubr.bf16.mxu1 %v2913_v0  ;;  %1732 = vmatpush1.bf16.msra.mxu1 %v3468_v59 }
 0xd4d   :  { %1733 = vmatprep.subr.bf16.mxu1 %v3482_v4 }
 0xd50   :  { %1734 = vmatpush1.bf16.msra.mxu1 %v3487_v5 }
 0xd51   :  { %1735 = vmatprep.subr.bf16.mxu1 %v3499_v33 }
 0xd53   :  { %2549 = vmatmul.mubr.msk.bf16.gmra.mxu1 %vm481_vm0, %v1305_v25 }
 0xd54   :  { %1432 = vmatprep.mubr.bf16.mxu1 %v2913_v0  ;;  %1736 = vmatpush1.bf16.msra.mxu1 %v3505_v9 }
 0xd55   :  { %1737 = vmatprep.subr.bf16.mxu1 %v3514_v11 }
 0xd58   :  { %1738 = vmatpush1.bf16.msra.mxu1 %v3523_v13 }
 0xd59   :  { %1935 = vmatprep.subr.bf16.mxu1 %v3463_v57 }
 0xd5b   :  { %2550 = vmatmul.mubr.msk.bf16.gmra.mxu1 %vm481_vm0, %v1306_v27 }
 0xd5c   :  { %1442 = vmatprep.mubr.bf16.mxu1 %v2913_v0 }
 0xd63   :  { %2551 = vmatmul.mubr.msk.bf16.gmra.mxu1 %vm481_vm0, %v1307_v31 }
 0xd64   :  { %1755 = vmatprep.mubr.bf16.mxu1 %v2913_v0 }
 0xe0b   :  { %v1414_v29 = vpop.f32.mrf.mxu1 }
 0xe0c   :  { %v1415_v30 = vadd.f32 %v1414_v29, %v1321_v2 }
 0xe0d   :  { %v1416_v32 = vpop.f32.mrf.mxu1 }
 0xe0e   :  { %v3569_v34 = vadd.f32 %v1416_v32, %v1325_v58  ;;  %v1560_v37 = vadd.f32 %v1553_v40, %v1415_v30 }
 0xe0f   :  { %v1418_v39 = vpop.f32.mrf.mxu1 }
 0xe10   :  { %v1562_v41 = vmul.f32 2.0, %v1560_v37  ;;  %v3571_v43 = vadd.f32 %v1418_v39, %v1321_v2 }
 0xe11   :  { %v1420_v45 = vpop.f32.mrf.mxu1 }
 0xe12   :  { %v1564_v47 = vsel %vm3220_vm13, %v1562_v41, %v1560_v37  ;;  %v3575_v61 = vadd.f32 %v1420_v45, %v1325_v58 }
 0xe13   :  { %v2560_v24 = vmul.f32 -1.442695, %v1564_v47  ;;  %v1424_v63 = vpop.f32.mrf.mxu1 }
 0xe14   :  { %v3577_v21 = vadd.f32 %v1424_v63, %v1321_v2 }
 0xe15   :  { %2833 = vpow2.f32 %v2560_v24  ;;  %v1426_v22 = vpop.f32.mrf.mxu1 }
 0xe16   :  { %v3579_v60 = vadd.f32 %v1426_v22, %v1325_v58 }
 0xe17   :  { %v1428_v1 = vpop.f32.mrf.mxu1 }
 0xe18   :  { %v3581_v10 = vadd.f32 %v1428_v1, %v1321_v2 }
 0xe19   :  { %v1430_v49 = vpop.f32.mrf.mxu1 }
 0xe1a   :  { %v3583_v50 = vadd.f32 %v1430_v49, %v1325_v58 }
 0xe1b   :  { %v1434_v51 = vpop.f32.mrf.mxu1 }
 0xe1c   :  { %v3585_v7 = vadd.f32 %v1434_v51, %v1321_v2 }
 0xe1d   :  { %v1436_v52 = vpop.f32.mrf.mxu1 }
 0xe1e   :  { %v3587_v53 = vadd.f32 %v1436_v52, %v1325_v58 }
 0xe1f   :  { %v1438_v54 = vpop.f32.mrf.mxu1 }
 0xe20   :  { %v3589_v55 = vadd.f32 %v1438_v54, %v1321_v2 }
 0xe21   :  { %v1440_v36 = vpop.f32.mrf.mxu1 }
 0xe22   :  { %v2834_v56 = vpop.eup %2833  ;;  %v3591_v3 = vadd.f32 %v1440_v36, %v1325_v58 }
 0xe23   :  { %v1572_v38 = vadd.f32 1.0, %v2834_v56  ;;  %v1444_v14 = vpop.f32.mrf.mxu1 }
 0xe24   :  { %v3593_v15 = vadd.f32 %v1444_v14, %v1321_v2 }
 0xe25   :  { %2835 = vrcp.f32 %v1572_v38  ;;  %v1446_v16 = vpop.f32.mrf.mxu1 }
 0xe26   :  { %v1447_v17 = vadd.f32 %v1446_v16, %v1325_v58 }
 0xe27   :  { %v1448_v18 = vpop.f32.mrf.mxu1 }
 0xe28   :  { %v3595_v19 = vadd.f32 %v1448_v18, %v1321_v2 }
 0xe29   :  { %v1450_v20 = vpop.f32.mrf.mxu1 }
 0xe2a   :  { %v1451_v6 = vadd.f32 %v1450_v20, %v1325_v58 }
 0xe2c   :  { %v1561_v23 = vadd.f32 %v1555_v28, %v1451_v6 }
 0xe2e   :  { %v1563_v25 = vmul.f32 2.0, %v1561_v23 }
 0xe30   :  { %v1565_v26 = vsel %vm3224_vm14, %v1563_v25, %v1561_v23 }
 0xe31   :  { %v2561_v44 = vmul.f32 -1.442695, %v1565_v26 }
 0xe32   :  { %v2836_v27 = vpop.eup %2835 }
 0xe33   :  { %2837 = vpow2.f32 %v2561_v44  ;;  %v1578_v42 = vmul.f32 2.0, %v2836_v27 }
 0xe35   :  { %v2562_v48 = vadd.f32 -1.0, %v1578_v42 }
 0xe37   :  { %v1582_v31 = vsel %vm3220_vm13, %v2562_v48, %v2836_v27 }
 0xe38   :  { %1590 = vrot.lane.b32.xlu1 %v1582_v31, %s2915_s4 }
 0xe40   :  { %v2838_v40 = vpop.eup %2837 }
 0xe41   :  { %v1573_v46 = vadd.f32 1.0, %v2838_v40 }
 0xe43   :  { %2839 = vrcp.f32 %v1573_v46 }
 0xe50   :  { %v2840_v35 = vpop.eup %2839 }
 0xe51   :  { %v1579_v62 = vmul.f32 2.0, %v2840_v35 }
 0xe53   :  { %v2563_v28 = vadd.f32 -1.0, %v1579_v62 }
 0xe55   :  { %v1583_v2 = vsel %vm3224_vm14, %v2563_v28, %v2840_v35 }
 0xe56   :  { %1597 = vrot.lane.b32.xlu1 %v1583_v2, %s2915_s4  ;;  %1585 = vrot.lane.b32.xlu0 %v1583_v2, %s2916_s23 }
 0xe5a   :  { %1604 = vrot.lane.b32.xlu1 %v1583_v2, %s2917_s24  ;;  %1594 = vrot.lane.b32.xlu0 %v1582_v31, %s2917_s24 }
 0xe5e   :  { %1601 = vrot.lane.b32.xlu0 %v1582_v31, %s2916_s23 }
 0xeaa   :  { %v1591_v58 = vpop.permute.xlu1 %1590 }
 0xeab   :  { %v1593_v30 = vsel %vm314_vm8, %v1591_v58, %v1583_v2 }
 0xeac   :  { %v1608_v45 = vmul.f32 0.0, %v1593_v30 }
 0xec8   :  { %v1586_v29 = vpop.permute.xlu0 %1585  ;;  %v1598_v32 = vpop.permute.xlu1 %1597 }
 0xec9   :  { %v1588_v39 = vsel %vm314_vm8, %v1582_v31, %v1586_v29 }
 0xecc   :  { %v1595_v37 = vpop.permute.xlu0 %1594  ;;  %v1605_v22 = vpop.permute.xlu1 %1604 }
 0xecd   :  { %v1600_v41 = vsel %vm314_vm8, %v1595_v37, %v1598_v32 }
 0xece   :  { %v1609_v47 = vmul.f32 %v1600_v41, %v1588_v39 }
 0xed0   :  { %v1610_v24 = vadd.f32 %v1609_v47, %v1608_v45  ;;  %v1602_v63 = vpop.permute.xlu0 %1601 }
 0xed1   :  { %v1607_v49 = vsel %vm314_vm8, %v1602_v63, %v1605_v22 }
 0xed2   :  { %2841 = vtanh.f32 %v1610_v24 }
 0xedf   :  { %v2842_v1 = vpop.eup %2841 }
 0xee0   :  { %v1612_v51 = vmul.f32 %v2842_v1, %v1607_v49 }
 0xee2   :  { %v1617_v52 = vpack.c.bf16 %v1612_v51, %v1612_v51  ;;  %1613 = vst.msk [vmem:[#allocation3] sm:$0xff] %vm314_vm8, %v1612_v51 }
 0xee3   :  { %1614 = vst.msk [vmem:[#allocation3 + $0x38] sm:$0xff] %vm580_vm15, %v1612_v51 }
 0xee4   :  { %2564 = vmatmul.mubr.msk.bf16.vlgmr.msra.gmra.mxu0 %vm481_vm0, %v1617_v52 }
 0xee5   :  { %1834 = vmatpush1.bf16.msra.mxu0 %v3468_v59  ;;  %1857 = vmatprep.mubr.bf16.mxu0 %v2913_v0 }
 0xee6   :  { %1835 = vmatprep.subr.bf16.mxu0 %v3482_v4 }
 0xee9   :  { %1836 = vmatpush1.bf16.msra.mxu0 %v3487_v5 }
 0xeea   :  { %1837 = vmatprep.subr.bf16.mxu0 %v3499_v33 }
 0xeed   :  { %1838 = vmatpush1.bf16.msra.mxu0 %v3505_v9 }
 0xeee   :  { %1839 = vmatprep.subr.bf16.mxu0 %v3514_v11 }
 0xef1   :  { %1840 = vmatpush1.bf16.msra.mxu0 %v3523_v13 }
 0xef2   :  { %2037 = vmatprep.subr.bf16.mxu0 %v3463_v57 }
 0xfa4   :  { %v1655_v54 = vpop.f32.mrf.mxu0 }
 0xfa5   :  { %v1662_v36 = vadd.f32 %v1655_v54, %v3571_v43 }
 0xfa6   :  { %v1657_v56 = vpop.f32.mrf.mxu0 }
 0xfa7   :  { %v1664_v38 = vmul.f32 2.0, %v1662_v36  ;;  %v1663_v14 = vadd.f32 %v1657_v56, %v1447_v17 }
 0xfa8   :  { %v1659_v16 = vpop.f32.mrf.mxu0 }
 0xfa9   :  { %v1666_v18 = vsel %vm3220_vm13, %v1664_v38, %v1662_v36  ;;  %v1665_v20 = vmul.f32 2.0, %v1663_v14 }
 0xfaa   :  { %v2565_v6 = vmul.f32 -1.442695, %v1666_v18  ;;  %v1660_v23 = vpop.f32.mrf.mxu0 }
 0xfab   :  { %v1667_v25 = vsel %vm3224_vm14, %v1665_v20, %v1663_v14 }
 0xfac   :  { %2843 = vpow2.f32 %v2565_v6  ;;  %v2566_v26 = vmul.f32 -1.442695, %v1667_v25 }
 0xfae   :  { %2845 = vpow2.f32 %v2566_v26 }
 0xfb9   :  { %v2844_v44 = vpop.eup %2843 }
 0xfba   :  { %v1674_v27 = vadd.f32 1.0, %v2844_v44 }
 0xfbb   :  { %v2846_v42 = vpop.eup %2845 }
 0xfbc   :  { %2847 = vrcp.f32 %v1674_v27  ;;  %v1675_v43 = vadd.f32 1.0, %v2846_v42 }
 0xfbe   :  { %2849 = vrcp.f32 %v1675_v43 }
 0xfc9   :  { %v2848_v17 = vpop.eup %2847 }
 0xfca   :  { %v1680_v48 = vmul.f32 2.0, %v2848_v17 }
 0xfcb   :  { %v2850_v31 = vpop.eup %2849 }
 0xfcc   :  { %v2567_v40 = vadd.f32 -1.0, %v1680_v48  ;;  %v1681_v46 = vmul.f32 2.0, %v2850_v31 }
 0xfce   :  { %v1684_v35 = vsel %vm3220_vm13, %v2567_v40, %v2848_v17  ;;  %v2568_v62 = vadd.f32 -1.0, %v1681_v46 }
 0xfcf   :  { %1692 = vrot.lane.b32.xlu1 %v1684_v35, %s2915_s4 }
 0xfd0   :  { %v1685_v28 = vsel %vm3224_vm14, %v2568_v62, %v2850_v31 }
 0xfd1   :  { %1687 = vrot.lane.b32.xlu0 %v1685_v28, %s2916_s23 }
 0xfd3   :  { %1699 = vrot.lane.b32.xlu1 %v1685_v28, %s2915_s4 }
 0xfd5   :  { %1696 = vrot.lane.b32.xlu0 %v1684_v35, %s2917_s24 }
 0xfd7   :  { %1706 = vrot.lane.b32.xlu1 %v1685_v28, %s2917_s24 }
 0xfd9   :  { %1703 = vrot.lane.b32.xlu0 %v1684_v35, %s2916_s23 }
0x1041   :  { %v1693_v2 = vpop.permute.xlu1 %1692 }
0x1042   :  { %v1695_v29 = vsel %vm314_vm8, %v1693_v2, %v1685_v28 }
0x1043   :  { %v1688_v58 = vpop.permute.xlu0 %1687  ;;  %v1710_v41 = vmul.f32 %v1695_v29, %v1610_v24 }
0x1044   :  { %v1690_v37 = vsel %vm314_vm8, %v1684_v35, %v1688_v58 }
0x1045   :  { %v1700_v30 = vpop.permute.xlu1 %1699 }
0x1047   :  { %v1697_v32 = vpop.permute.xlu0 %1696 }
0x1048   :  { %v1702_v39 = vsel %vm314_vm8, %v1697_v32, %v1700_v30 }
0x1049   :  { %v1711_v45 = vmul.f32 %v1702_v39, %v1690_v37  ;;  %v1707_v22 = vpop.permute.xlu1 %1706 }
0x104b   :  { %v1712_v47 = vadd.f32 %v1711_v45, %v1710_v41  ;;  %v1704_v63 = vpop.permute.xlu0 %1703 }
0x104c   :  { %v1709_v49 = vsel %vm314_vm8, %v1704_v63, %v1707_v22 }
0x104d   :  { %2851 = vtanh.f32 %v1712_v47 }
0x105a   :  { %v2852_v1 = vpop.eup %2851 }
0x105b   :  { %v1714_v51 = vmul.f32 %v2852_v1, %v1709_v49 }
0x105d   :  { %v1719_v52 = vpack.c.bf16 %v1714_v51, %v1714_v51  ;;  %1715 = vst.msk [vmem:[#allocation3 + $0x8] sm:$0xff] %vm314_vm8, %v1714_v51 }
0x105e   :  { %1716 = vst.msk [vmem:[#allocation3 + $0x30] sm:$0xff] %vm580_vm15, %v1714_v51 }
0x105f   :  { %2569 = vmatmul.mubr.msk.bf16.vlgmr.msra.gmra.mxu1 %vm481_vm0, %v1719_v52 }
0x1060   :  { %1936 = vmatpush1.bf16.msra.mxu1 %v3468_v59  ;;  %1959 = vmatprep.mubr.bf16.mxu1 %v2913_v0 }
0x1061   :  { %1937 = vmatprep.subr.bf16.mxu1 %v3482_v4 }
0x1064   :  { %1938 = vmatpush1.bf16.msra.mxu1 %v3487_v5 }
0x1065   :  { %1939 = vmatprep.subr.bf16.mxu1 %v3499_v33 }
0x1068   :  { %1940 = vmatpush1.bf16.msra.mxu1 %v3505_v9 }
0x1069   :  { %1941 = vmatprep.subr.bf16.mxu1 %v3514_v11 }
0x106c   :  { %1942 = vmatpush1.bf16.msra.mxu1 %v3523_v13 }
0x106d   :  { %2139 = vmatprep.subr.bf16.mxu1 %v3463_v57 }
0x111f   :  { %v1757_v24 = vpop.f32.mrf.mxu1 }
0x1120   :  { %v1764_v54 = vadd.f32 %v1757_v24, %v3577_v21 }
0x1121   :  { %v1759_v36 = vpop.f32.mrf.mxu1 }
0x1122   :  { %v1766_v56 = vmul.f32 2.0, %v1764_v54  ;;  %v1765_v38 = vadd.f32 %v1759_v36, %v3591_v3 }
0x1123   :  { %v1761_v14 = vpop.f32.mrf.mxu1 }
0x1124   :  { %v1768_v16 = vsel %vm3220_vm13, %v1766_v56, %v1764_v54  ;;  %v1767_v18 = vmul.f32 2.0, %v1765_v38 }
0x1125   :  { %v2570_v20 = vmul.f32 -1.442695, %v1768_v16  ;;  %v1762_v6 = vpop.f32.mrf.mxu1 }
0x1126   :  { %v1769_v23 = vsel %vm3224_vm14, %v1767_v18, %v1765_v38 }
0x1127   :  { %2853 = vpow2.f32 %v2570_v20  ;;  %v2571_v25 = vmul.f32 -1.442695, %v1769_v23 }
0x1129   :  { %2855 = vpow2.f32 %v2571_v25 }
0x1134   :  { %v2854_v26 = vpop.eup %2853 }
0x1135   :  { %v1776_v44 = vadd.f32 1.0, %v2854_v26 }
0x1136   :  { %v2856_v21 = vpop.eup %2855 }
0x1137   :  { %2857 = vrcp.f32 %v1776_v44  ;;  %v1777_v27 = vadd.f32 1.0, %v2856_v21 }
0x1139   :  { %2859 = vrcp.f32 %v1777_v27 }
0x1144   :  { %v2858_v3 = vpop.eup %2857 }
0x1145   :  { %v1782_v42 = vmul.f32 2.0, %v2858_v3 }
0x1146   :  { %v2860_v43 = vpop.eup %2859 }
0x1147   :  { %v2572_v17 = vadd.f32 -1.0, %v1782_v42  ;;  %v1783_v48 = vmul.f32 2.0, %v2860_v43 }
0x1149   :  { %v1786_v31 = vsel %vm3220_vm13, %v2572_v17, %v2858_v3  ;;  %v2573_v40 = vadd.f32 -1.0, %v1783_v48 }
0x114a   :  { %1794 = vrot.lane.b32.xlu1 %v1786_v31, %s2915_s4 }
0x114b   :  { %v1787_v46 = vsel %vm3224_vm14, %v2573_v40, %v2860_v43 }
0x114c   :  { %1789 = vrot.lane.b32.xlu0 %v1787_v46, %s2916_s23 }
0x114e   :  { %1801 = vrot.lane.b32.xlu1 %v1787_v46, %s2915_s4 }
0x1150   :  { %1798 = vrot.lane.b32.xlu0 %v1786_v31, %s2917_s24 }
0x1152   :  { %1808 = vrot.lane.b32.xlu1 %v1787_v46, %s2917_s24 }
0x1154   :  { %1805 = vrot.lane.b32.xlu0 %v1786_v31, %s2916_s23 }
0x11bc   :  { %v1795_v35 = vpop.permute.xlu1 %1794 }
0x11bd   :  { %v1797_v28 = vsel %vm314_vm8, %v1795_v35, %v1787_v46 }
0x11be   :  { %v1790_v62 = vpop.permute.xlu0 %1789  ;;  %v1812_v32 = vmul.f32 %v1797_v28, %v1712_v47 }
0x11bf   :  { %v1792_v29 = vsel %vm314_vm8, %v1786_v31, %v1790_v62 }
0x11c0   :  { %v1802_v2 = vpop.permute.xlu1 %1801 }
0x11c2   :  { %v1799_v58 = vpop.permute.xlu0 %1798 }
0x11c3   :  { %v1804_v30 = vsel %vm314_vm8, %v1799_v58, %v1802_v2 }
0x11c4   :  { %v1813_v37 = vmul.f32 %v1804_v30, %v1792_v29  ;;  %v1809_v45 = vpop.permute.xlu1 %1808 }
0x11c6   :  { %v1814_v39 = vadd.f32 %v1813_v37, %v1812_v32  ;;  %v1806_v41 = vpop.permute.xlu0 %1805 }
0x11c7   :  { %v1811_v22 = vsel %vm314_vm8, %v1806_v41, %v1809_v45 }
0x11c8   :  { %2861 = vtanh.f32 %v1814_v39 }
0x11d5   :  { %v2862_v63 = vpop.eup %2861 }
0x11d6   :  { %v1816_v1 = vmul.f32 %v2862_v63, %v1811_v22 }
0x11d8   :  { %v1821_v49 = vpack.c.bf16 %v1816_v1, %v1816_v1  ;;  %1817 = vst.msk [vmem:[#allocation3 + $0x10] sm:$0xff] %vm314_vm8, %v1816_v1 }
0x11d9   :  { %1818 = vst.msk [vmem:[#allocation3 + $0x28] sm:$0xff] %vm580_vm15, %v1816_v1 }
0x11da   :  { %2574 = vmatmul.mubr.msk.bf16.vlgmr.msra.gmra.mxu0 %vm481_vm0, %v1821_v49 }
0x11db   :  { %2038 = vmatpush1.bf16.msra.mxu0 %v3468_v59  ;;  %2061 = vmatprep.mubr.bf16.mxu0 %v2913_v0 }
0x11dc   :  { %2039 = vmatprep.subr.bf16.mxu0 %v3482_v4 }
0x11df   :  { %2040 = vmatpush1.bf16.msra.mxu0 %v3487_v5 }
0x11e0   :  { %2041 = vmatprep.subr.bf16.mxu0 %v3499_v33 }
0x11e3   :  { %2042 = vmatpush1.bf16.msra.mxu0 %v3505_v9 }
0x11e4   :  { %2043 = vmatprep.subr.bf16.mxu0 %v3514_v11 }
0x11e7   :  { %2044 = vmatpush1.bf16.msra.mxu0 %v3523_v13 }
0x11e8   :  { %2241 = vmatprep.subr.bf16.mxu0 %v3463_v57 }
0x129a   :  { %v1859_v47 = vpop.f32.mrf.mxu0 }
0x129b   :  { %v1866_v51 = vadd.f32 %v1859_v47, %v3581_v10 }
0x129c   :  { %v1861_v52 = vpop.f32.mrf.mxu0 }
0x129d   :  { %v1868_v24 = vmul.f32 2.0, %v1866_v51  ;;  %v1867_v54 = vadd.f32 %v1861_v52, %v3587_v53 }
0x129e   :  { %v1863_v36 = vpop.f32.mrf.mxu0 }
0x129f   :  { %v1870_v56 = vsel %vm3220_vm13, %v1868_v24, %v1866_v51  ;;  %v1869_v38 = vmul.f32 2.0, %v1867_v54 }
0x12a0   :  { %v2575_v14 = vmul.f32 -1.442695, %v1870_v56  ;;  %v1864_v16 = vpop.f32.mrf.mxu0 }
0x12a1   :  { %v1871_v18 = vsel %vm3224_vm14, %v1869_v38, %v1867_v54 }
0x12a2   :  { %2863 = vpow2.f32 %v2575_v14  ;;  %v2576_v20 = vmul.f32 -1.442695, %v1871_v18 }
0x12a4   :  { %2865 = vpow2.f32 %v2576_v20 }
0x12af   :  { %v2864_v57 = vpop.eup %2863 }
0x12b0   :  { %v1878_v6 = vadd.f32 1.0, %v2864_v57 }
0x12b1   :  { %v2866_v10 = vpop.eup %2865 }
0x12b2   :  { %2867 = vrcp.f32 %v1878_v6  ;;  %v1879_v23 = vadd.f32 1.0, %v2866_v10 }
0x12b4   :  { %2869 = vrcp.f32 %v1879_v23 }
0x12bf   :  { %v2868_v53 = vpop.eup %2867 }
0x12c0   :  { %v1884_v25 = vmul.f32 2.0, %v2868_v53 }
0x12c1   :  { %v2870_v26 = vpop.eup %2869 }
0x12c2   :  { %v2577_v44 = vadd.f32 -1.0, %v1884_v25  ;;  %v1885_v21 = vmul.f32 2.0, %v2870_v26 }
0x12c4   :  { %v1888_v27 = vsel %vm3220_vm13, %v2577_v44, %v2868_v53  ;;  %v2578_v3 = vadd.f32 -1.0, %v1885_v21 }
0x12c5   :  { %1896 = vrot.lane.b32.xlu1 %v1888_v27, %s2915_s4 }
0x12c6   :  { %v1889_v42 = vsel %vm3224_vm14, %v2578_v3, %v2870_v26 }
0x12c7   :  { %1891 = vrot.lane.b32.xlu0 %v1889_v42, %s2916_s23 }
0x12c9   :  { %1903 = vrot.lane.b32.xlu1 %v1889_v42, %s2915_s4 }
0x12cb   :  { %1900 = vrot.lane.b32.xlu0 %v1888_v27, %s2917_s24 }
0x12cd   :  { %1910 = vrot.lane.b32.xlu1 %v1889_v42, %s2917_s24 }
0x12cf   :  { %1907 = vrot.lane.b32.xlu0 %v1888_v27, %s2916_s23 }
0x1337   :  { %v1897_v43 = vpop.permute.xlu1 %1896 }
0x1338   :  { %v1899_v48 = vsel %vm314_vm8, %v1897_v43, %v1889_v42 }
0x1339   :  { %v1892_v17 = vpop.permute.xlu0 %1891  ;;  %v1914_v62 = vmul.f32 %v1899_v48, %v1814_v39 }
0x133a   :  { %v1894_v46 = vsel %vm314_vm8, %v1888_v27, %v1892_v17 }
0x133b   :  { %v1904_v31 = vpop.permute.xlu1 %1903 }
0x133d   :  { %v1901_v40 = vpop.permute.xlu0 %1900 }
0x133e   :  { %v1906_v35 = vsel %vm314_vm8, %v1901_v40, %v1904_v31 }
0x133f   :  { %v1915_v28 = vmul.f32 %v1906_v35, %v1894_v46  ;;  %v1911_v29 = vpop.permute.xlu1 %1910 }
0x1341   :  { %v1916_v2 = vadd.f32 %v1915_v28, %v1914_v62  ;;  %v1908_v58 = vpop.permute.xlu0 %1907 }
0x1342   :  { %v1913_v32 = vsel %vm314_vm8, %v1908_v58, %v1911_v29 }
0x1343   :  { %2871 = vtanh.f32 %v1916_v2 }
0x1350   :  { %v2872_v30 = vpop.eup %2871 }
0x1351   :  { %v1918_v37 = vmul.f32 %v2872_v30, %v1913_v32 }
0x1353   :  { %v1923_v41 = vpack.c.bf16 %v1918_v37, %v1918_v37  ;;  %1919 = vst.msk [vmem:[#allocation3 + $0x18] sm:$0xff] %vm314_vm8, %v1918_v37 }
0x1354   :  { %1920 = vst.msk [vmem:[#allocation3 + $0x20] sm:$0xff] %vm580_vm15, %v1918_v37 }
0x1355   :  { %2579 = vmatmul.mubr.msk.bf16.vlgmr.msra.gmra.mxu1 %vm481_vm0, %v1923_v41 }
0x1356   :  { %2140 = vmatpush1.bf16.msra.mxu1 %v3468_v59  ;;  %2163 = vmatprep.mubr.bf16.mxu1 %v2913_v0 }
0x1357   :  { %2141 = vmatprep.subr.bf16.mxu1 %v3482_v4 }
0x135a   :  { %2142 = vmatpush1.bf16.msra.mxu1 %v3487_v5 }
0x135b   :  { %2143 = vmatprep.subr.bf16.mxu1 %v3499_v33 }
0x135e   :  { %2144 = vmatpush1.bf16.msra.mxu1 %v3505_v9 }
0x135f   :  { %2145 = vmatprep.subr.bf16.mxu1 %v3514_v11 }
0x1362   :  { %2146 = vmatpush1.bf16.msra.mxu1 %v3523_v13 }
0x1415   :  { %v1961_v39 = vpop.f32.mrf.mxu1 }
0x1416   :  { %v1968_v45 = vadd.f32 %v1961_v39, %v3585_v7 }
0x1417   :  { %v1963_v63 = vpop.f32.mrf.mxu1 }
0x1418   :  { %v1970_v22 = vmul.f32 2.0, %v1968_v45  ;;  %v1969_v1 = vadd.f32 %v1963_v63, %v3583_v50 }
0x1419   :  { %v1965_v49 = vpop.f32.mrf.mxu1 }
0x141a   :  { %v1972_v47 = vsel %vm3220_vm13, %v1970_v22, %v1968_v45  ;;  %v1971_v51 = vmul.f32 2.0, %v1969_v1 }
0x141b   :  { %v2580_v52 = vmul.f32 -1.442695, %v1972_v47  ;;  %v1966_v24 = vpop.f32.mrf.mxu1 }
0x141c   :  { %v1973_v54 = vsel %vm3224_vm14, %v1971_v51, %v1969_v1 }
0x141d   :  { %2873 = vpow2.f32 %v2580_v52  ;;  %v2581_v36 = vmul.f32 -1.442695, %v1973_v54 }
0x141f   :  { %2875 = vpow2.f32 %v2581_v36 }
0x142a   :  { %v2874_v56 = vpop.eup %2873 }
0x142b   :  { %v1980_v38 = vadd.f32 1.0, %v2874_v56 }
0x142c   :  { %v2876_v7 = vpop.eup %2875 }
0x142d   :  { %2877 = vrcp.f32 %v1980_v38  ;;  %v1981_v14 = vadd.f32 1.0, %v2876_v7 }
0x142f   :  { %2879 = vrcp.f32 %v1981_v14 }
0x143a   :  { %v2878_v50 = vpop.eup %2877 }
0x143b   :  { %v1986_v16 = vmul.f32 2.0, %v2878_v50 }
0x143c   :  { %v2880_v18 = vpop.eup %2879 }
0x143d   :  { %v2582_v20 = vadd.f32 -1.0, %v1986_v16  ;;  %v1987_v57 = vmul.f32 2.0, %v2880_v18 }
0x143f   :  { %v1990_v6 = vsel %vm3220_vm13, %v2582_v20, %v2878_v50  ;;  %v2583_v10 = vadd.f32 -1.0, %v1987_v57 }
0x1440   :  { %1998 = vrot.lane.b32.xlu1 %v1990_v6, %s2915_s4 }
0x1441   :  { %v1991_v23 = vsel %vm3224_vm14, %v2583_v10, %v2880_v18 }
0x1442   :  { %1993 = vrot.lane.b32.xlu0 %v1991_v23, %s2916_s23 }
0x1444   :  { %2005 = vrot.lane.b32.xlu1 %v1991_v23, %s2915_s4 }
0x1446   :  { %2002 = vrot.lane.b32.xlu0 %v1990_v6, %s2917_s24 }
0x1448   :  { %2012 = vrot.lane.b32.xlu1 %v1991_v23, %s2917_s24 }
0x144a   :  { %2009 = vrot.lane.b32.xlu0 %v1990_v6, %s2916_s23 }
0x14b2   :  { %v1999_v53 = vpop.permute.xlu1 %1998 }
0x14b3   :  { %v2001_v26 = vsel %vm314_vm8, %v1999_v53, %v1991_v23 }
0x14b4   :  { %v1994_v25 = vpop.permute.xlu0 %1993  ;;  %v2016_v42 = vmul.f32 %v2001_v26, %v1916_v2 }
0x14b5   :  { %v1996_v27 = vsel %vm314_vm8, %v1990_v6, %v1994_v25 }
0x14b6   :  { %v2006_v44 = vpop.permute.xlu1 %2005 }
0x14b8   :  { %v2003_v21 = vpop.permute.xlu0 %2002 }
0x14b9   :  { %v2008_v3 = vsel %vm314_vm8, %v2003_v21, %v2006_v44 }
0x14ba   :  { %v2017_v43 = vmul.f32 %v2008_v3, %v1996_v27  ;;  %v2013_v31 = vpop.permute.xlu1 %2012 }
0x14bc   :  { %v2018_v17 = vadd.f32 %v2017_v43, %v2016_v42  ;;  %v2010_v48 = vpop.permute.xlu0 %2009 }
0x14bd   :  { %v2015_v46 = vsel %vm314_vm8, %v2010_v48, %v2013_v31 }
0x14be   :  { %2881 = vtanh.f32 %v2018_v17 }
0x14cb   :  { %v2882_v40 = vpop.eup %2881 }
0x14cc   :  { %v2020_v35 = vmul.f32 %v2882_v40, %v2015_v46 }
0x14ce   :  { %2021 = vst.msk [vmem:[#allocation3 + $0x20] sm:$0xff] %vm314_vm8, %v2020_v35  ;;  %v2025_v62 = vpack.c.bf16 %v2020_v35, %v2020_v35 }
0x14cf   :  { %2022 = vst.msk [vmem:[#allocation3 + $0x18] sm:$0xff] %vm580_vm15, %v2020_v35 }
0x14d0   :  { %2584 = vmatmul.mubr.msk.bf16.vlgmr.msra.gmra.mxu0 %vm481_vm0, %v2025_v62 }
0x14d1   :  { %2242 = vmatpush1.bf16.msra.mxu0 %v3468_v59  ;;  %2265 = vmatprep.mubr.bf16.mxu0 %v2913_v0 }
0x14d2   :  { %2243 = vmatprep.subr.bf16.mxu0 %v3482_v4 }
0x14d5   :  { %2244 = vmatpush1.bf16.msra.mxu0 %v3487_v5 }
0x14d6   :  { %2245 = vmatprep.subr.bf16.mxu0 %v3499_v33 }
0x14d9   :  { %2246 = vmatpush1.bf16.msra.mxu0 %v3505_v9 }
0x14da   :  { %2247 = vmatprep.subr.bf16.mxu0 %v3514_v11 }
0x14dd   :  { %2248 = vmatpush1.bf16.msra.mxu0 %v3523_v13 }
0x1590   :  { %v2063_v28 = vpop.f32.mrf.mxu0 }
0x1591   :  { %v2070_v2 = vadd.f32 %v2063_v28, %v3589_v55 }
0x1592   :  { %v2065_v58 = vpop.f32.mrf.mxu0 }
0x1593   :  { %v2072_v29 = vmul.f32 2.0, %v2070_v2  ;;  %v2071_v59 = vadd.f32 %v2065_v58, %v3579_v60 }
0x1594   :  { %v2067_v0 = vpop.f32.mrf.mxu0 }
0x1595   :  { %v2074_v4 = vsel %vm3220_vm13, %v2072_v29, %v2070_v2  ;;  %v2073_v5 = vmul.f32 2.0, %v2071_v59 }
0x1596   :  { %v2585_v30 = vmul.f32 -1.442695, %v2074_v4  ;;  %v2068_v33 = vpop.f32.mrf.mxu0 }
0x1597   :  { %v2075_v9 = vsel %vm3224_vm14, %v2073_v5, %v2071_v59 }
0x1598   :  { %2883 = vpow2.f32 %v2585_v30  ;;  %v2586_v11 = vmul.f32 -1.442695, %v2075_v9 }
0x159a   :  { %2885 = vpow2.f32 %v2586_v11 }
0x15a5   :  { %v2884_v13 = vpop.eup %2883 }
0x15a6   :  { %v2082_v32 = vadd.f32 1.0, %v2884_v13 }
0x15a7   :  { %v2886_v55 = vpop.eup %2885 }
0x15a8   :  { %2887 = vrcp.f32 %v2082_v32  ;;  %v2083_v37 = vadd.f32 1.0, %v2886_v55 }
0x15aa   :  { %2889 = vrcp.f32 %v2083_v37 }
0x15b5   :  { %v2888_v60 = vpop.eup %2887 }
0x15b6   :  { %v2088_v41 = vmul.f32 2.0, %v2888_v60 }
0x15b7   :  { %v2890_v39 = vpop.eup %2889 }
0x15b8   :  { %v2587_v45 = vadd.f32 -1.0, %v2088_v41  ;;  %v2089_v63 = vmul.f32 2.0, %v2890_v39 }
0x15ba   :  { %v2092_v22 = vsel %vm3220_vm13, %v2587_v45, %v2888_v60  ;;  %v2588_v1 = vadd.f32 -1.0, %v2089_v63 }
0x15bb   :  { %2100 = vrot.lane.b32.xlu1 %v2092_v22, %s2915_s4 }
0x15bc   :  { %v2093_v49 = vsel %vm3224_vm14, %v2588_v1, %v2890_v39 }
0x15bd   :  { %2095 = vrot.lane.b32.xlu0 %v2093_v49, %s2916_s23 }
0x15bf   :  { %2107 = vrot.lane.b32.xlu1 %v2093_v49, %s2915_s4 }
0x15c1   :  { %2104 = vrot.lane.b32.xlu0 %v2092_v22, %s2917_s24 }
0x15c3   :  { %2114 = vrot.lane.b32.xlu1 %v2093_v49, %s2917_s24 }
0x15c5   :  { %2111 = vrot.lane.b32.xlu0 %v2092_v22, %s2916_s23 }
0x162d   :  { %v2101_v47 = vpop.permute.xlu1 %2100 }
0x162e   :  { %v2103_v52 = vsel %vm314_vm8, %v2101_v47, %v2093_v49 }
0x162f   :  { %v2096_v51 = vpop.permute.xlu0 %2095  ;;  %v2118_v38 = vmul.f32 %v2103_v52, %v2018_v17 }
0x1630   :  { %v2098_v36 = vsel %vm314_vm8, %v2092_v22, %v2096_v51 }
0x1631   :  { %v2108_v24 = vpop.permute.xlu1 %2107 }
0x1633   :  { %v2105_v54 = vpop.permute.xlu0 %2104 }
0x1634   :  { %v2110_v56 = vsel %vm314_vm8, %v2105_v54, %v2108_v24 }
0x1635   :  { %v2119_v7 = vmul.f32 %v2110_v56, %v2098_v36  ;;  %v2115_v16 = vpop.permute.xlu1 %2114 }
0x1637   :  { %v2120_v14 = vadd.f32 %v2119_v7, %v2118_v38  ;;  %v2112_v50 = vpop.permute.xlu0 %2111 }
0x1638   :  { %v2117_v20 = vsel %vm314_vm8, %v2112_v50, %v2115_v16 }
0x1639   :  { %2891 = vtanh.f32 %v2120_v14 }
0x1646   :  { %v2892_v18 = vpop.eup %2891 }
0x1647   :  { %v2122_v57 = vmul.f32 %v2892_v18, %v2117_v20 }
0x1649   :  { %2123 = vst.msk [vmem:[#allocation3 + $0x28] sm:$0xff] %vm314_vm8, %v2122_v57  ;;  %v2127_v6 = vpack.c.bf16 %v2122_v57, %v2122_v57 }
0x164a   :  { %2124 = vst.msk [vmem:[#allocation3 + $0x10] sm:$0xff] %vm580_vm15, %v2122_v57 }
0x164b   :  { %2589 = vmatmul.mubr.msk.bf16.vlgmr.msra.gmra.mxu1 %vm481_vm0, %v2127_v6 }
0x170b   :  { %v2165_v10 = vpop.f32.mrf.mxu1 }
0x170c   :  { %v2172_v23 = vadd.f32 %v2165_v10, %v3593_v15 }
0x170d   :  { %v2167_v53 = vpop.f32.mrf.mxu1 }
0x170e   :  { %v2174_v25 = vmul.f32 2.0, %v2172_v23  ;;  %v2173_v26 = vadd.f32 %v2167_v53, %v3575_v61  ;;  %v2749_v53 = vld [vmem:[%s3874_s9 + $0x18] sm:$0xff]  }
0x170f   :  { %v2169_v44 = vpop.f32.mrf.mxu1  ;;  %2684 = vmatprep.subr.bf16.mxu1 %v2749_v53 }
0x1710   :  { %v2176_v21 = vsel %vm3220_vm13, %v2174_v25, %v2172_v23  ;;  %v2175_v27 = vmul.f32 2.0, %v2173_v26  ;;  %2685 = vmatpush3.bf16.msra.mxu1 %v2749_v53  ;;  %v2752_v25 = vld [vmem:[%s3874_s9] sm:$0xff]  }
0x1711   :  { %v2590_v3 = vmul.f32 -1.442695, %v2176_v21  ;;  %v2170_v42 = vpop.f32.mrf.mxu1  ;;  %2686 = vmatprep.subr.bf16.mxu1 %v2750_v8 }
0x1712   :  { %v2177_v43 = vsel %vm3224_vm14, %v2175_v27, %v2173_v26 }
0x1713   :  { %2893 = vpow2.f32 %v2590_v3  ;;  %v2591_v17 = vmul.f32 -1.442695, %v2177_v43 }
0x1714   :  { %2687 = vmatpush3.bf16.msra.mxu1 %v2750_v8 }
0x1715   :  { %2895 = vpow2.f32 %v2591_v17  ;;  %2688 = vmatprep.subr.bf16.mxu1 %v2751_v12 }
0x1718   :  { %2689 = vmatpush3.bf16.msra.mxu1 %v2751_v12 }
0x1719   :  { %2690 = vmatprep.subr.bf16.mxu1 %v2752_v25 }
0x171c   :  { %2691 = vmatpush3.bf16.msra.mxu1 %v2752_v25 }
0x1720   :  { %v2894_v48 = vpop.eup %2893 }
0x1721   :  { %v2184_v31 = vadd.f32 1.0, %v2894_v48 }
0x1722   :  { %v2896_v15 = vpop.eup %2895 }
0x1723   :  { %2897 = vrcp.f32 %v2184_v31  ;;  %v2185_v40 = vadd.f32 1.0, %v2896_v15 }
0x1725   :  { %2899 = vrcp.f32 %v2185_v40 }
0x1730   :  { %v2898_v61 = vpop.eup %2897 }
0x1731   :  { %v2190_v46 = vmul.f32 2.0, %v2898_v61 }
0x1732   :  { %v2900_v35 = vpop.eup %2899 }
0x1733   :  { %v2592_v62 = vadd.f32 -1.0, %v2190_v46  ;;  %v2191_v28 = vmul.f32 2.0, %v2900_v35 }
0x1735   :  { %v2194_v2 = vsel %vm3220_vm13, %v2592_v62, %v2898_v61  ;;  %v2593_v58 = vadd.f32 -1.0, %v2191_v28  ;;  %v2331_v62 = vld [vmem:[#allocation3 + $0x10] sm:$0xff] }
0x1736   :  { %2202 = vrot.lane.b32.xlu1 %v2194_v2, %s2915_s4 }
0x1737   :  { %v2195_v29 = vsel %vm3224_vm14, %v2593_v58, %v2900_v35  ;;  %v2334_v58 = vld [vmem:[#allocation3 + $0x28] sm:$0xff] }
0x1738   :  { %2197 = vrot.lane.b32.xlu0 %v2195_v29, %s2916_s23 }
0x173a   :  { %2209 = vrot.lane.b32.xlu1 %v2195_v29, %s2915_s4 }
0x173c   :  { %2206 = vrot.lane.b32.xlu0 %v2194_v2, %s2917_s24 }
0x173e   :  { %2216 = vrot.lane.b32.xlu1 %v2195_v29, %s2917_s24 }
0x1740   :  { %2213 = vrot.lane.b32.xlu0 %v2194_v2, %s2916_s23 }
0x17a8   :  { %v2203_v59 = vpop.permute.xlu1 %2202 }
0x17a9   :  { %v2205_v4 = vsel %vm314_vm8, %v2203_v59, %v2195_v29  ;;  %v2332_v59 = vld [vmem:[#allocation3 + $0x18] sm:$0xff] }
0x17aa   :  { %v2198_v0 = vpop.permute.xlu0 %2197  ;;  %v2220_v11 = vmul.f32 %v2205_v4, %v2120_v14  ;;  %v2333_v4 = vld [vmem:[#allocation3 + $0x20] sm:$0xff] }
0x17ab   :  { %v2200_v33 = vsel %vm314_vm8, %v2194_v2, %v2198_v0  ;;  %v2338_v0 = vpack.c.bf16 %v2332_v59, %v2331_v62 }
0x17ac   :  { %v2210_v5 = vpop.permute.xlu1 %2209 }
0x17ae   :  { %v2207_v30 = vpop.permute.xlu0 %2206 }
0x17af   :  { %v2212_v9 = vsel %vm314_vm8, %v2207_v30, %v2210_v5  ;;  %v2339_v5 = vpack.c.bf16 %v2334_v58, %v2333_v4 }
0x17b0   :  { %v2221_v13 = vmul.f32 %v2212_v9, %v2200_v33  ;;  %v2217_v37 = vpop.permute.xlu1 %2216 }
0x17b2   :  { %v3792_v32 = vadd.f32 %v2221_v13, %v2220_v11  ;;  %v2214_v55 = vpop.permute.xlu0 %2213  ;;  %v2599_v11 = vld [vmem:[%s3875_s10] ss:$0 sm:$0xff] }
0x17b3   :  { %v2219_v41 = vsel %vm314_vm8, %v2214_v55, %v2217_v37 }
0x17b4   :  { %2901 = vtanh.f32 %v3792_v32 }
0x17c1   :  { %v2902_v60 = vpop.eup %2901 }
0x17c2   :  { %v2224_v39 = vmul.f32 %v2902_v60, %v2219_v41 }
0x17c4   :  { %2225 = vst.msk [vmem:[#allocation3 + $0x30] sm:$0xff] %vm314_vm8, %v2224_v39  ;;  %v2229_v45 = vpack.c.bf16 %v2224_v39, %v2224_v39 }
0x17c5   :  { %2226 = vst.msk [vmem:[#allocation3 + $0x8] sm:$0xff] %vm580_vm15, %v2224_v39 }
0x17c6   :  { %2594 = vmatmul.mubr.msk.bf16.vlgmr.msra.gmra.mxu0 %vm481_vm0, %v2229_v45 }
0x17cb   :  { %v2335_v33 = vld [vmem:[#allocation3 + $0x30] sm:$0xff] }
0x17cc   :  { %v2330_v2 = vld [vmem:[#allocation3 + $0x8] sm:$0xff] }
0x1886   :  { %v2267_v63 = vpop.f32.mrf.mxu0 }
0x1887   :  { %v2274_v22 = vadd.f32 %v2267_v63, %v3595_v19 }
0x1888   :  { %v2269_v1 = vpop.f32.mrf.mxu0 }
0x1889   :  { %v2276_v49 = vmul.f32 2.0, %v2274_v22  ;;  %v2275_v47 = vadd.f32 %v2269_v1, %v3569_v34 }
0x188a   :  { %v2271_v51 = vpop.f32.mrf.mxu0 }
0x188b   :  { %v2278_v52 = vsel %vm3220_vm13, %v2276_v49, %v2274_v22  ;;  %v2277_v24 = vmul.f32 2.0, %v2275_v47 }
0x188c   :  { %v2595_v54 = vmul.f32 -1.442695, %v2278_v52  ;;  %v2272_v36 = vpop.f32.mrf.mxu0 }
0x188d   :  { %v2279_v56 = vsel %vm3224_vm14, %v2277_v24, %v2275_v47 }
0x188e   :  { %2903 = vpow2.f32 %v2595_v54  ;;  %v2596_v38 = vmul.f32 -1.442695, %v2279_v56 }
0x1890   :  { %2905 = vpow2.f32 %v2596_v38 }
0x189b   :  { %v2904_v7 = vpop.eup %2903 }
0x189c   :  { %v2286_v14 = vadd.f32 1.0, %v2904_v7 }
0x189d   :  { %v2906_v19 = vpop.eup %2905 }
0x189e   :  { %2907 = vrcp.f32 %v2286_v14  ;;  %v2287_v50 = vadd.f32 1.0, %v2906_v19 }
0x18a0   :  { %2909 = vrcp.f32 %v2287_v50 }
0x18ab   :  { %v2908_v34 = vpop.eup %2907 }
0x18ac   :  { %v2292_v16 = vmul.f32 2.0, %v2908_v34 }
0x18ad   :  { %v2910_v18 = vpop.eup %2909 }
0x18ae   :  { %v2597_v20 = vadd.f32 -1.0, %v2292_v16  ;;  %v2293_v57 = vmul.f32 2.0, %v2910_v18 }
0x18b0   :  { %v2296_v6 = vsel %vm3220_vm13, %v2597_v20, %v2908_v34  ;;  %v2598_v10 = vadd.f32 -1.0, %v2293_v57 }
0x18b1   :  { %2304 = vrot.lane.b32.xlu1 %v2296_v6, %s2915_s4 }
0x18b2   :  { %v2297_v23 = vsel %vm3224_vm14, %v2598_v10, %v2910_v18 }
0x18b3   :  { %2299 = vrot.lane.b32.xlu0 %v2297_v23, %s2916_s23 }
0x18b5   :  { %2311 = vrot.lane.b32.xlu1 %v2297_v23, %s2915_s4 }
0x18b7   :  { %2308 = vrot.lane.b32.xlu0 %v2296_v6, %s2917_s24 }
0x18b9   :  { %2318 = vrot.lane.b32.xlu1 %v2297_v23, %s2917_s24 }
0x18bb   :  { %2315 = vrot.lane.b32.xlu0 %v2296_v6, %s2916_s23 }
0x1923   :  { %v2305_v26 = vpop.permute.xlu1 %2304 }
0x1924   :  { %v2307_v21 = vsel %vm314_vm8, %v2305_v26, %v2297_v23 }
0x1925   :  { %v2300_v44 = vpop.permute.xlu0 %2299  ;;  %v2322_v17 = vmul.f32 %v2307_v21, %v3792_v32 }
0x1926   :  { %v2302_v42 = vsel %vm314_vm8, %v2296_v6, %v2300_v44 }
0x1927   :  { %v2312_v27 = vpop.permute.xlu1 %2311 }
0x1929   :  { %v2309_v3 = vpop.permute.xlu0 %2308 }
0x192a   :  { %v2314_v43 = vsel %vm314_vm8, %v2309_v3, %v2312_v27 }
0x192b   :  { %v2323_v48 = vmul.f32 %v2314_v43, %v2302_v42  ;;  %v2319_v40 = vpop.permute.xlu1 %2318 }
0x192d   :  { %v2324_v31 = vadd.f32 %v2323_v48, %v2322_v17  ;;  %v2316_v15 = vpop.permute.xlu0 %2315 }
0x192e   :  { %v2321_v46 = vsel %vm314_vm8, %v2316_v15, %v2319_v40 }
0x192f   :  { %2911 = vtanh.f32 %v2324_v31 }
0x193c   :  { %v2912_v61 = vpop.eup %2911 }
0x193d   :  { %v2326_v35 = vmul.f32 %v2912_v61, %v2321_v46 }
0x193f   :  { %2327 = vst.msk [vmem:[#allocation3 + $0x38] sm:$0xff] %vm314_vm8, %v2326_v35 }
0x1940   :  { %2328 = vst.msk [vmem:[#allocation3] sm:$0xff] %vm580_vm15, %v2326_v35 }
0x1946   :  { %v2336_v30 = vld [vmem:[#allocation3 + $0x38] sm:$0xff] }
0x1947   :  { %v2329_v28 = vld [vmem:[#allocation3] sm:$0xff]  ;;  %v2340_v9 = vpack.c.bf16 %v2336_v30, %v2335_v33 }
0x1948   :  { %v2337_v29 = vpack.c.bf16 %v2330_v2, %v2329_v28 }
0x194a   :  { %2692 = vmatprep.mubr.msk.bf16.mxu1 %vm481_vm0, %v2337_v29 }
0x194b   :  { %2693 = vmatmul.mubr.msk.bf16.vlgmr.msra.gmra.mxu1 %vm481_vm0, %v2338_v0 }
0x194c   :  { %2696 = vmatprep.mubr.msk.bf16.mxu1 %vm481_vm0, %v2339_v5 }
0x1953   :  { %2697 = vmatmul.mubr.msk.bf16.gmra.mxu1 %vm481_vm0, %v2340_v9 }
0x1a0b   :  { %v2694_v13 = vpop.f32.mrf.mxu1 }
0x1a0c   :  { %v2435_v32 = vadd.f32 %v2694_v13, %v2599_v11 }
0x1a0d   :  { %v2426_v55 = vpop.f32.mrf.mxu1 }
0x1a0e   :  { %2459 = vst [vmem:[%s3876_s11 + $0x10] sm:$0xff] %v2435_v32  ;;  %v2427_v37 = vadd.f32 %v2599_v11, %v2426_v55 }
0x1a0f   :  { %v2695_v60 = vpop.f32.mrf.mxu1 }
0x1a10   :  { %2457 = vst [vmem:[%s3876_s11] sm:$0xff] %v2427_v37  ;;  %v2438_v41 = vadd.f32 %v2695_v60, %v2599_v11 }
0x1a11   :  { %v2429_v39 = vpop.f32.mrf.mxu1 }
0x1a12   :  { %2460 = vst [vmem:[%s3876_s11 + $0x18] sm:$0xff] %v2438_v41  ;;  %v2430_v45 = vadd.f32 %v2599_v11, %v2429_v39 }
0x1a13   :  { %v2698_v63 = vpop.f32.mrf.mxu1 }
0x1a14   :  { %2458 = vst [vmem:[%s3876_s11 + $0x8] sm:$0xff] %v2430_v45  ;;  %v2451_v22 = vadd.f32 %v2698_v63, %v2599_v11 }
0x1a15   :  { %v2442_v1 = vpop.f32.mrf.mxu1 }
0x1a16   :  { %2463 = vst [vmem:[%s3876_s11 + $0x30] sm:$0xff] %v2451_v22  ;;  %v2443_v49 = vadd.f32 %v2599_v11, %v2442_v1 }
0x1a17   :  { %v2699_v47 = vpop.f32.mrf.mxu1 }
0x1a18   :  { %2461 = vst [vmem:[%s3876_s11 + $0x20] sm:$0xff] %v2443_v49  ;;  %v2454_v51 = vadd.f32 %v2699_v47, %v2599_v11 }
0x1a19   :  { %v2445_v52 = vpop.f32.mrf.mxu1 }
0x1a1a   :  { %2464 = vst [vmem:[%s3876_s11 + $0x38] sm:$0xff] %v2454_v51  ;;  %v2446_v24 = vadd.f32 %v2599_v11, %v2445_v52 }
0x1a1c   :  { %2462 = vst [vmem:[%s3876_s11 + $0x28] sm:$0xff] %v2446_v24 }

</bundles_post_ra>
